<compile_context>
chip_gen: v6e
topology: v6e:2x2x1
jax: 0.10.0
libtpu: 0.0.40
codegen_flags: <defaults>
</compile_context>

<pallas_src>
import functools
from collections import namedtuple

import jax
import jax.numpy as jnp
from jax.experimental import pallas as pl
from jax.experimental.pallas import tpu as pltpu

_LANE = 128

_TpuCfg = namedtuple("_TpuCfg", ["vmem_limit", "tile_budget", "two_cores"])


# ----------------------------- small helpers --------------------------------
def _make_divisible(ch, divisor=8, min_ch=None):
    if min_ch is None:
        min_ch = divisor
    new_ch = max(min_ch, int(ch + divisor / 2) // divisor * divisor)
    if new_ch < 0.9 * ch:
        new_ch += divisor
    return new_ch


def _round_up(v, m):
    return (v + m - 1) // m * m


def _cdiv(a, b):
    return (a + b - 1) // b


@functools.lru_cache(maxsize=None)
def _tpu_config():
    """Generation-aware VMEM budgeting.

    v7x exposes 64 MiB VMEM per TensorCore and has 2 TCs/chip; v5e/v6e expose
    128 MiB and have a single TC.  vmem_limit stays at <= half the physical
    capacity and the tile-picker budget at <= a quarter of it.
    """
    cap = 128 << 20
    two_cores = False
    try:
        info = pltpu.get_tpu_info()
        cap = int(getattr(info, "vmem_capacity_bytes", cap)) or cap
        two_cores = cap <= (64 << 20)      # proxy for v7x (64 MiB / TC, 2 TCs)
    except Exception:
        pass
    cap = max(cap, 32 << 20)
    return _TpuCfg(vmem_limit=min(cap // 2, 64 << 20),
                   tile_budget=cap // 4,
                   two_cores=two_cores)


def _cparams(cfg, *dimension_semantics):
    return pltpu.CompilerParams(dimension_semantics=dimension_semantics,
                                vmem_limit_bytes=cfg.vmem_limit)


def _pick_row_tile(total_rows, per_row_bytes, fixed_bytes, budget, *,
                   max_tile, ensure_multi_step):
    """Largest 128-multiple row tile that fits the VMEM budget (weights and all
    double-buffered streams accounted via per_row/fixed bytes).  On 2-TC chips
    (v7x) optionally capped so the grid keeps >= 2 steps."""
    tile = max_tile
    while tile > _LANE and tile * per_row_bytes + fixed_bytes > budget:
        tile //= 2
    if ensure_multi_step and total_rows > _LANE:
        tile = min(tile, _round_up((total_rows + 1) // 2, _LANE))
    tile = min(tile, _round_up(total_rows, _LANE))
    return max(tile, _LANE)


def _pick_channel_tile(H, W, C, c1, act_bytes, budget):
    """Channel tile for the fused cv1+cv2+pool kernel (full spatial / step)."""
    if C % _LANE != 0 or C <= _LANE:
        return C     # tiny / odd widths: one full-channel (lane-masked) block
    fixed = 2 * H * W * c1 * act_bytes                       # x block (x2 bufs)

    def cost(tc):
        return (fixed
                + 2 * H * W * tc * act_bytes                 # y2 output (x2 bufs)
                + (H + 2) * (W + 2) * tc * act_bytes         # y1 halo scratch
                + 3 * H * W * tc * 4                         # f32 acc + temps
                + 2 * (c1 + 11) * tc * 4)                    # weight/bias blocks

    tc = _LANE
    while C % (tc * 2) == 0 and cost(tc * 2) <= budget:
        tc *= 2
    # TODO(synk): if cost(_LANE) still exceeds the budget (very large spatial
    # extents on v7x), add H-strip tiling with an accumulated SE pool
    # (pl.when init/finalize, divide by H*W at the end) rather than shrinking
    # the channel tile below one lane-width.
    return tc


def _fold_bn(w_2d, gamma, beta, mean, var, eps):
    """Fold eval-mode BatchNorm into a [K, Cout] weight (f32) + [1, Cout] bias."""
    scale = (gamma / jnp.sqrt(var + eps)).astype(jnp.float32)
    w_eff = w_2d.astype(jnp.float32) * scale[None, :]
    b_eff = (beta - mean * scale).astype(jnp.float32).reshape(1, -1)
    return w_eff, b_eff


# ------------------------------ Pallas kernels -------------------------------
def _cv1_dw_pool_kernel(x_ref, w1_ref, b1_ref, w2_ref, b2_ref,
                        y2_ref, pool_ref, y1p_ref):
    """cv1 (1x1 conv + BN + SiLU) fused with cv2 (depthwise 3x3 + BN + SiLU) and
    the SqueezeExcitation global average pool, for one (sample, channel-tile).

    x:(1,H*W,C1)  w1:(C1,tc) b1:(1,tc)  w2:(9,tc) b2:(1,tc)
    y2:(1,H,W,tc) pool:(1,1,tc)         y1p scratch:(H+2,W+2,tc)
    """
    _, H, W, tc = y2_ref.shape
    Hp, Wp = H + 2, W + 2

    # Keep the scratch's one-pixel halo border at zero.  Re-done every grid
    # step (cheap thin slabs) so it is correct no matter how the parallel grid
    # is split across TensorCores.
    zrow = jnp.zeros((1, Wp, tc), y1p_ref.dtype)
    zcol = jnp.zeros((Hp, 1, tc), y1p_ref.dtype)
    y1p_ref[0:1, :, :] = zrow
    y1p_ref[Hp - 1:Hp, :, :] = zrow
    y1p_ref[:, 0:1, :] = zcol
    y1p_ref[:, Wp - 1:Wp, :] = zcol

    # cv1: pointwise conv == [H*W, C1] @ [C1, tc] on the MXU, folded BN + SiLU.
    y1 = jnp.dot(x_ref[0], w1_ref[...], preferred_element_type=jnp.float32)
    y1 = y1 + b1_ref[...]
    y1 = y1 * jax.nn.sigmoid(y1)
    y1p_ref[1:H + 1, 1:W + 1, :] = y1.reshape(H, W, tc).astype(y1p_ref.dtype)

    # cv2: depthwise 3x3 as 9 per-tap ref loads from the halo scratch (no nine
    # shifted full-tensor copies / vreg blowup); the multiplies run in the
    # activation dtype (packed bf16 VPU on v6e/v7x), accumulation in f32.
    acc = jnp.zeros((H, W, tc), jnp.float32)
    tap = 0
    for dy in range(3):
        for dx in range(3):
            t = y1p_ref[dy:dy + H, dx:dx + W, :]
            acc = acc + (t * w2_ref[tap]).astype(jnp.float32)
            tap += 1
    y2 = acc + b2_ref[...]
    y2 = y2 * jax.nn.sigmoid(y2)
    y2_ref[0] = y2.astype(y2_ref.dtype)
    # SE global average pool (exact: the full spatial extent lives in this step).
    pool_ref[...] = jnp.mean(y2, axis=(0, 1), keepdims=True).astype(pool_ref.dtype)


def _cv3_kernel(y_ref, s_ref, w_ref, b_ref, o_ref):
    # SE channel scale applied in f32, 1x1 conv on the MXU, folded BN + SiLU.
    ys = (y_ref[0].astype(jnp.float32) * s_ref[0]).astype(y_ref.dtype)
    z = jnp.dot(ys, w_ref[...], preferred_element_type=jnp.float32) + b_ref[...]
    z = z * jax.nn.sigmoid(z)
    o_ref[0] = z.astype(o_ref.dtype)


def _cv3_res_kernel(y_ref, s_ref, r_ref, w_ref, b_ref, o_ref):
    # Same as above, plus the residual shortcut add fused into the epilogue.
    ys = (y_ref[0].astype(jnp.float32) * s_ref[0]).astype(y_ref.dtype)
    z = jnp.dot(ys, w_ref[...], preferred_element_type=jnp.float32) + b_ref[...]
    z = z * jax.nn.sigmoid(z)
    z = z + r_ref[0].astype(jnp.float32)
    o_ref[0] = z.astype(o_ref.dtype)


# --------------------------- pallas_call wrappers ----------------------------
def _fused_cv1_dw_pool(x_flat, w1, b1, w2, b2, *, H, W, act_dtype):
    """cv1 + cv2 + SE average pool in one pallas_call: no y1 HBM round trip,
    no jnp.pad halo pass (the halo lives in a zero-bordered VMEM scratch)."""
    N, HW, C1 = x_flat.shape
    C_ = w1.shape[1]
    cfg = _tpu_config()
    bpe = jnp.dtype(act_dtype).itemsize
    tc = _pick_channel_tile(H, W, C_, C1, bpe, cfg.tile_budget)
    y2, pooled = pl.pallas_call(
        _cv1_dw_pool_kernel,
        out_shape=(jax.ShapeDtypeStruct((N, H, W, C_), act_dtype),
                   jax.ShapeDtypeStruct((N, 1, C_), jnp.float32)),
        grid=(N, C_ // tc),
        in_specs=[pl.BlockSpec((1, HW, C1), lambda n, c: (n, 0, 0)),
                  pl.BlockSpec((C1, tc), lambda n, c: (0, c)),
                  pl.BlockSpec((1, tc), lambda n, c: (0, c)),
                  pl.BlockSpec((9, tc), lambda n, c: (0, c)),
                  pl.BlockSpec((1, tc), lambda n, c: (0, c))],
        out_specs=(pl.BlockSpec((1, H, W, tc), lambda n, c: (n, 0, 0, c)),
                   pl.BlockSpec((1, 1, tc), lambda n, c: (n, 0, c))),
        scratch_shapes=[pltpu.VMEM((H + 2, W + 2, tc), act_dtype)],
        compiler_params=_cparams(cfg, "parallel", "parallel"),
    )(x_flat, w1.astype(act_dtype), b1, w2.astype(act_dtype), b2)
    return y2, pooled


def _conv1x1_se_res(y2_flat, se_scale, residual, w3, b3, *, act_dtype, out_dtype):
    """cv3: [HW, C_] @ [C_, C2] with the SE scale (f32), folded BN, SiLU and
    the optional residual fused; ragged last row-block (no pad pass)."""
    N, HW, Cin = y2_flat.shape
    C2 = w3.shape[1]

    # Lane-dense output columns: pad Cout to a 128 multiple at production
    # widths (>= 128) where the relative HBM inflation is small; tiny widths
    # keep the exact size (masked stores on a small tensor are cheaper than
    # 16x more HBM traffic).
    Cp = C2
    if C2 >= _LANE and C2 % _LANE != 0:
        Cp = _round_up(C2, _LANE)
        w3 = jnp.pad(w3, ((0, 0), (0, Cp - C2)))
        b3 = jnp.pad(b3, ((0, 0), (0, Cp - C2)))
        if residual is not None:
            residual = jnp.pad(residual, ((0, 0), (0, 0), (0, Cp - C2)))

    cfg = _tpu_config()
    bpe = jnp.dtype(act_dtype).itemsize
    out_bpe = jnp.dtype(out_dtype).itemsize
    res_bpe = residual.dtype.itemsize if residual is not None else 0
    per_row = 2 * (Cin * bpe + Cp * out_bpe + Cp * res_bpe) + 2 * Cp * 4
    fixed = 2 * (Cin * Cp * bpe + Cp * 4) + Cin * 4            # weights + bias + scale
    thw = _pick_row_tile(HW, per_row, fixed, cfg.tile_budget,
                         max_tile=1024 if cfg.two_cores else 2048,
                         ensure_multi_step=(cfg.two_cores and N == 1))

    in_specs = [pl.BlockSpec((1, thw, Cin), lambda n, t: (n, t, 0)),
                pl.BlockSpec((1, 1, Cin), lambda n, t: (n, 0, 0))]
    args = [y2_flat, se_scale]
    kernel = _cv3_kernel
    if residual is not None:
        in_specs.append(pl.BlockSpec((1, thw, Cp), lambda n, t: (n, t, 0)))
        args.append(residual)
        kernel = _cv3_res_kernel
    in_specs += [pl.BlockSpec((Cin, Cp), lambda n, t: (0, 0)),
                 pl.BlockSpec((1, Cp), lambda n, t: (0, 0))]
    args += [w3.astype(act_dtype), b3]

    out = pl.pallas_call(
        kernel,
        out_shape=jax.ShapeDtypeStruct((N, HW, Cp), out_dtype),
        grid=(N, _cdiv(HW, thw)),          # ragged last block handled by Pallas
        in_specs=in_specs,
        out_specs=pl.BlockSpec((1, thw, Cp), lambda n, t: (n, t, 0)),
        compiler_params=_cparams(cfg, "parallel", "parallel"),
    )(*args)
    return out[:, :, :C2] if Cp != C2 else out


# ------------------------------ Bottleneck ----------------------------------
def bottleneck_forward(x_nchw, params, *, shortcut=True, e=4, eps=1e-5,
                       shuffle_groups=2, compute_dtype=None):
    """Forward of Bottleneck: channel_shuffle(x + cv3(SE(cv2(cv1(x))))).

    `x_nchw` is NCHW (PyTorch convention); everything runs NHWC internally.
    `compute_dtype` selects the MXU/VPU operand dtype (e.g. jnp.bfloat16);
    accumulation, biases, SiLU, SE scale and the pool stay in f32.
    """
    N, C1, H, W = x_nchw.shape
    C_ = int(C1 * e)
    C2 = params["cv3_w"].shape[0]
    add = shortcut and C1 == C2
    cdt = (jnp.dtype(compute_dtype) if compute_dtype is not None
           else jnp.dtype(x_nchw.dtype))
    out_dtype = x_nchw.dtype

    # Single NCHW -> NHWC layout change of the (narrow, C1-wide) input tensor.
    # TODO(synk): fold this transpose into the fused kernel (read NCHW blocks,
    # transpose in-VMEM on the XLU) once in-kernel minor-dim transposes are
    # validated on every target generation.
    x_nhwc = jnp.transpose(x_nchw, (0, 2, 3, 1))
    x_flat = x_nhwc.reshape(N, H * W, C1)

    # cv1 + cv2 + SE average pool fused in one kernel (folded eval-mode BN).
    w1, b1 = _fold_bn(params["cv1_w"].reshape(C_, C1).T,
                      params["cv1_gamma"], params["cv1_beta"],
                      params["cv1_mean"], params["cv1_var"], eps)
    w2, b2 = _fold_bn(params["cv2_w"].reshape(C_, 9).T,
                      params["cv2_gamma"], params["cv2_beta"],
                      params["cv2_mean"], params["cv2_var"], eps)
    y2, pooled = _fused_cv1_dw_pool(x_flat.astype(cdt), w1, b1, w2, b2,
                                    H=H, W=W, act_dtype=cdt)

    # SqueezeExcitation excitation on the tiny pooled (N, C_) vectors (f32 JAX).
    p = pooled[:, 0, :]
    h = jax.nn.relu(p @ params["fc1_w"].astype(jnp.float32).T
                    + params["fc1_b"].astype(jnp.float32))
    s = h @ params["fc2_w"].astype(jnp.float32).T + params["fc2_b"].astype(jnp.float32)
    s = s * jnp.clip(s + 3.0, 0.0, 6.0) * (1.0 / 6.0)                 # Hardswish
    se_scale = s.reshape(N, 1, C_).astype(jnp.float32)                # stays f32

    # cv3: 1x1 conv + folded BN + SiLU, SE scale (f32) & residual fused.
    w3, b3 = _fold_bn(params["cv3_w"].reshape(C2, C_).T,
                      params["cv3_gamma"], params["cv3_beta"],
                      params["cv3_mean"], params["cv3_var"], eps)
    residual = x_flat if add else None
    out = _conv1x1_se_res(y2.reshape(N, H * W, C_), se_scale, residual, w3, b3,
                          act_dtype=cdt, out_dtype=out_dtype)

    # channel_shuffle(groups=2) folded into the single NHWC -> NCHW exit
    # transform (one layout pass either way; kept out of the cv3 weights since
    # the residual add happens before the shuffle and NCHW output is required).
    g = shuffle_groups
    out = out.reshape(N, H, W, g, C2 // g)
    out = jnp.transpose(out, (0, 4, 3, 1, 2)).reshape(N, C2, H, W)
    return out


# ----------------------------- reference & demo ------------------------------
def bottleneck_reference(x, p, *, shortcut=True, eps=1e-5):
    """Pure-JAX (XLA) reference mirroring the PyTorch module op-for-op."""
    def conv_bn_silu(inp, w, gamma, beta, mean, var, pad, groups):
        y = jax.lax.conv_general_dilated(
            inp, w, window_strides=(1, 1), padding=[(pad, pad), (pad, pad)],
            dimension_numbers=("NCHW", "OIHW", "NCHW"),
            feature_group_count=groups)
        sc = gamma / jnp.sqrt(var + eps)
        y = y * sc[None, :, None, None] + (beta - mean * sc)[None, :, None, None]
        return y * jax.nn.sigmoid(y)

    c1 = x.shape[1]
    c_ = p["cv1_w"].shape[0]
    c2 = p["cv3_w"].shape[0]
    y = conv_bn_silu(x, p["cv1_w"], p["cv1_gamma"], p["cv1_beta"],
                     p["cv1_mean"], p["cv1_var"], 0, 1)
    y = conv_bn_silu(y, p["cv2_w"], p["cv2_gamma"], p["cv2_beta"],
                     p["cv2_mean"], p["cv2_var"], 1, c_)
    pooled = jnp.mean(y, axis=(2, 3))
    h = jax.nn.relu(pooled @ p["fc1_w"].T + p["fc1_b"])
    s = h @ p["fc2_w"].T + p["fc2_b"]
    s = s * jnp.clip(s + 3.0, 0.0, 6.0) / 6.0                 # Hardswish
    y = y * s[:, :, None, None]
    z = conv_bn_silu(y, p["cv3_w"], p["cv3_gamma"], p["cv3_beta"],
                     p["cv3_mean"], p["cv3_var"], 0, 1)
    out = x + z if (shortcut and c1 == c2) else z
    n, c, hh, ww = out.shape
    out = out.reshape(n, 2, c // 2, hh, ww).transpose(0, 2, 1, 3, 4)
    return out.reshape(n, c, hh, ww)


def make_bottleneck_params(key, c1, c2, e=4):
    c_ = int(c1 * e)
    sq = _make_divisible(c_ // 4, 8)
    ks = iter(jax.random.split(key, 24))

    def nrm(shape, s=0.2):
        return jax.random.normal(next(ks), shape, jnp.float32) * s

    def uni(shape):
        return jax.random.uniform(next(ks), shape, jnp.float32,
                                  minval=0.5, maxval=1.5)

    return {
        "cv1_w": nrm((c_, c1, 1, 1)),
        "cv1_gamma": uni((c_,)), "cv1_beta": nrm((c_,), 0.1),
        "cv1_mean": nrm((c_,), 0.1), "cv1_var": uni((c_,)),
        "cv2_w": nrm((c_, 1, 3, 3)),
        "cv2_gamma": uni((c_,)), "cv2_beta": nrm((c_,), 0.1),
        "cv2_mean": nrm((c_,), 0.1), "cv2_var": uni((c_,)),
        "cv3_w": nrm((c2, c_, 1, 1)),
        "cv3_gamma": uni((c2,)), "cv3_beta": nrm((c2,), 0.1),
        "cv3_mean": nrm((c2,), 0.1), "cv3_var": uni((c2,)),
        "fc1_w": nrm((sq, c_)), "fc1_b": nrm((sq,), 0.1),
        "fc2_w": nrm((c_, sq)), "fc2_b": nrm((c_,), 0.1),
    }


if __name__ == "__main__":
    key = jax.random.PRNGKey(0)
    k_x, k_p = jax.random.split(key)

    # Small shapes consistent with Bottleneck: c1 == c2 so the shortcut is on,
    # e=4 -> hidden width c_ = 32, SE squeeze width = 8, shuffle groups = 2.
    N, C1, H, W = 2, 8, 16, 16
    C2, E = 8, 4

    x = jax.random.normal(k_x, (N, C1, H, W), jnp.float32)
    params = make_bottleneck_params(k_p, C1, C2, E)

    ref = bottleneck_reference(x, params, shortcut=True)

    # f32 path
    fwd = jax.jit(functools.partial(bottleneck_forward, shortcut=True, e=E))
    out = jax.block_until_ready(fwd(x, params))
    assert out.shape == (N, C2, H, W)
    assert jnp.allclose(out, ref, atol=2e-4, rtol=2e-4), \
        float(jnp.max(jnp.abs(out - ref)))

    # bf16 operand path (v5e/v6e/v7x): bf16 MXU/VPU operands, f32 accumulate,
    # f32 SE scale -> tolerance tightened vs. the previous 2e-1.
    fwd_bf16 = jax.jit(functools.partial(bottleneck_forward, shortcut=True, e=E,
                                         compute_dtype=jnp.bfloat16))
    out_bf16 = jax.block_until_ready(fwd_bf16(x, params))
    assert out_bf16.shape == (N, C2, H, W)
    assert jnp.allclose(out_bf16, ref, atol=1e-1, rtol=1e-1), \
        float(jnp.max(jnp.abs(out_bf16 - ref)))

    print("KERNEL_OK")
</pallas_src>

<mosaic_0001>
module attributes {stable_mosaic.version = 11 : i64} {
  func.func @_cv1_dw_pool_kernel(%arg0: i32, %arg1: i32, %arg2: memref<1x256x8xf32, #tpu.memory_space<vmem>>, %arg3: memref<8x32xf32, #tpu.memory_space<vmem>>, %arg4: memref<1x32xf32, #tpu.memory_space<vmem>>, %arg5: memref<9x32xf32, #tpu.memory_space<vmem>>, %arg6: memref<1x32xf32, #tpu.memory_space<vmem>>, %arg7: memref<1x16x16x32xf32, #tpu.memory_space<vmem>>, %arg8: memref<1x1x32xf32, #tpu.memory_space<vmem>>, %arg9: memref<18x18x32xf32, #tpu.memory_space<vmem>>) attributes {dimension_semantics = [#tpu.dimension_semantics<parallel>, #tpu.dimension_semantics<parallel>], iteration_bounds = array<i64: 2, 1>, scalar_prefetch = 0 : i64, scratch_operands = 1 : i64, tpu.core_type = #tpu.core_type<tc>, window_params = [{transform_indices = @transform_0, window_bounds = array<i64: 1, 256, 8>}, {transform_indices = @transform_1, window_bounds = array<i64: 8, 32>}, {transform_indices = @transform_2, window_bounds = array<i64: 1, 32>}, {transform_indices = @transform_3, window_bounds = array<i64: 9, 32>}, {transform_indices = @transform_4, window_bounds = array<i64: 1, 32>}, {transform_indices = @transform_5, window_bounds = array<i64: 1, 16, 16, 32>}, {transform_indices = @transform_6, window_bounds = array<i64: 1, 1, 32>}]} {
    %cst = arith.constant 0.000000e+00 : f32
    %0 = vector.broadcast %cst : f32 to vector<1x18x32xf32>
    %cst_0 = arith.constant 0.000000e+00 : f32
    %1 = vector.broadcast %cst_0 : f32 to vector<18x1x32xf32>
    %c0 = arith.constant 0 : index
    %c0_1 = arith.constant 0 : index
    %c0_2 = arith.constant 0 : index
    %2 = vector.load %arg9[%c0, %c0_1, %c0_2] : memref<18x18x32xf32, #tpu.memory_space<vmem>>, vector<1x18x32xf32>
    tpu.vector_store %arg9[%c0, %c0_1, %c0_2], %0 {strides = array<i32>} : memref<18x18x32xf32, #tpu.memory_space<vmem>>, vector<1x18x32xf32>,
    %c17 = arith.constant 17 : index
    %c0_3 = arith.constant 0 : index
    %c0_4 = arith.constant 0 : index
    %3 = vector.load %arg9[%c17, %c0_3, %c0_4] : memref<18x18x32xf32, #tpu.memory_space<vmem>>, vector<1x18x32xf32>
    tpu.vector_store %arg9[%c17, %c0_3, %c0_4], %0 {strides = array<i32>} : memref<18x18x32xf32, #tpu.memory_space<vmem>>, vector<1x18x32xf32>,
    %c0_5 = arith.constant 0 : index
    %c0_6 = arith.constant 0 : index
    %c0_7 = arith.constant 0 : index
    %4 = vector.load %arg9[%c0_5, %c0_6, %c0_7] : memref<18x18x32xf32, #tpu.memory_space<vmem>>, vector<18x1x32xf32>
    tpu.vector_store %arg9[%c0_5, %c0_6, %c0_7], %1 {strides = array<i32>} : memref<18x18x32xf32, #tpu.memory_space<vmem>>, vector<18x1x32xf32>,
    %c0_8 = arith.constant 0 : index
    %c17_9 = arith.constant 17 : index
    %c0_10 = arith.constant 0 : index
    %5 = vector.load %arg9[%c0_8, %c17_9, %c0_10] : memref<18x18x32xf32, #tpu.memory_space<vmem>>, vector<18x1x32xf32>
    tpu.vector_store %arg9[%c0_8, %c17_9, %c0_10], %1 {strides = array<i32>} : memref<18x18x32xf32, #tpu.memory_space<vmem>>, vector<18x1x32xf32>,
    %c0_11 = arith.constant 0 : index
    %c0_12 = arith.constant 0 : index
    %c0_13 = arith.constant 0 : index
    %6 = vector.load %arg2[%c0_11, %c0_12, %c0_13] : memref<1x256x8xf32, #tpu.memory_space<vmem>>, vector<1x256x8xf32>
    %7 = vector.shape_cast %6 : vector<1x256x8xf32> to vector<256x8xf32>
    %c0_14 = arith.constant 0 : index
    %c0_15 = arith.constant 0 : index
    %8 = vector.load %arg3[%c0_14, %c0_15] : memref<8x32xf32, #tpu.memory_space<vmem>>, vector<8x32xf32>
    %cst_16 = arith.constant dense<0.000000e+00> : vector<256x32xf32>
    %9 = tpu.matmul %7, %8, %cst_16 {dimension_numbers = #tpu.dot_dimension_numbers<[1], [0], [0], [1], [0, 0, 1, 1], [], []>} : vector<256x8xf32>, vector<8x32xf32>, vector<256x32xf32> -> vector<256x32xf32>
    %c0_17 = arith.constant 0 : index
    %c0_18 = arith.constant 0 : index
    %10 = vector.load %arg4[%c0_17, %c0_18] : memref<1x32xf32, #tpu.memory_space<vmem>>, vector<1x32xf32>
    %11 = vector.broadcast %10 : vector<1x32xf32> to vector<256x32xf32>
    %12 = arith.addf %9, %11 : vector<256x32xf32>
    %13 = arith.negf %12 : vector<256x32xf32>
    %14 = math.exp %13 : vector<256x32xf32>
    %cst_19 = arith.constant 1.000000e+00 : f32
    %15 = vector.broadcast %cst_19 : f32 to vector<256x32xf32>
    %16 = arith.addf %15, %14 : vector<256x32xf32>
    %17 = arith.divf %15, %16 : vector<256x32xf32>
    %18 = arith.mulf %12, %17 : vector<256x32xf32>
    %19 = vector.shape_cast %18 : vector<256x32xf32> to vector<16x16x32xf32>
    %c1 = arith.constant 1 : index
    %c1_20 = arith.constant 1 : index
    %c0_21 = arith.constant 0 : index
    %20 = vector.load %arg9[%c1, %c1_20, %c0_21] : memref<18x18x32xf32, #tpu.memory_space<vmem>>, vector<16x16x32xf32>
    tpu.vector_store %arg9[%c1, %c1_20, %c0_21], %19 {strides = array<i32>} : memref<18x18x32xf32, #tpu.memory_space<vmem>>, vector<16x16x32xf32>,
    %cst_22 = arith.constant 0.000000e+00 : f32
    %21 = vector.broadcast %cst_22 : f32 to vector<16x16x32xf32>
    %c0_23 = arith.constant 0 : index
    %c0_24 = arith.constant 0 : index
    %c0_25 = arith.constant 0 : index
    %22 = vector.load %arg9[%c0_23, %c0_24, %c0_25] : memref<18x18x32xf32, #tpu.memory_space<vmem>>, vector<16x16x32xf32>
    %c0_26 = arith.constant 0 : index
    %c0_27 = arith.constant 0 : index
    %23 = vector.load %arg5[%c0_26, %c0_27] : memref<9x32xf32, #tpu.memory_space<vmem>>, vector<1x32xf32>
    %24 = vector.shape_cast %23 : vector<1x32xf32> to vector<32xf32>
    %25 = vector.shape_cast %24 : vector<32xf32> to vector<1x1x32xf32>
    %26 = vector.broadcast %25 : vector<1x1x32xf32> to vector<16x16x32xf32>
    %27 = arith.mulf %22, %26 : vector<16x16x32xf32>
    %28 = arith.addf %21, %27 : vector<16x16x32xf32>
    %c0_28 = arith.constant 0 : index
    %c1_29 = arith.constant 1 : index
    %c0_30 = arith.constant 0 : index
    %29 = vector.load %arg9[%c0_28, %c1_29, %c0_30] : memref<18x18x32xf32, #tpu.memory_space<vmem>>, vector<16x16x32xf32>
    %c1_31 = arith.constant 1 : index
    %c0_32 = arith.constant 0 : index
    %30 = vector.load %arg5[%c1_31, %c0_32] : memref<9x32xf32, #tpu.memory_space<vmem>>, vector<1x32xf32>
    %31 = vector.shape_cast %30 : vector<1x32xf32> to vector<32xf32>
    %32 = vector.shape_cast %31 : vector<32xf32> to vector<1x1x32xf32>
    %33 = vector.broadcast %32 : vector<1x1x32xf32> to vector<16x16x32xf32>
    %34 = arith.mulf %29, %33 : vector<16x16x32xf32>
    %35 = arith.addf %28, %34 : vector<16x16x32xf32>
    %c0_33 = arith.constant 0 : index
    %c2 = arith.constant 2 : index
    %c0_34 = arith.constant 0 : index
    %36 = vector.load %arg9[%c0_33, %c2, %c0_34] : memref<18x18x32xf32, #tpu.memory_space<vmem>>, vector<16x16x32xf32>
    %c2_35 = arith.constant 2 : index
    %c0_36 = arith.constant 0 : index
    %37 = vector.load %arg5[%c2_35, %c0_36] : memref<9x32xf32, #tpu.memory_space<vmem>>, vector<1x32xf32>
    %38 = vector.shape_cast %37 : vector<1x32xf32> to vector<32xf32>
    %39 = vector.shape_cast %38 : vector<32xf32> to vector<1x1x32xf32>
    %40 = vector.broadcast %39 : vector<1x1x32xf32> to vector<16x16x32xf32>
    %41 = arith.mulf %36, %40 : vector<16x16x32xf32>
    %42 = arith.addf %35, %41 : vector<16x16x32xf32>
    %c1_37 = arith.constant 1 : index
    %c0_38 = arith.constant 0 : index
    %c0_39 = arith.constant 0 : index
    %43 = vector.load %arg9[%c1_37, %c0_38, %c0_39] : memref<18x18x32xf32, #tpu.memory_space<vmem>>, vector<16x16x32xf32>
    %c3 = arith.constant 3 : index
    %c0_40 = arith.constant 0 : index
    %44 = vector.load %arg5[%c3, %c0_40] : memref<9x32xf32, #tpu.memory_space<vmem>>, vector<1x32xf32>
    %45 = vector.shape_cast %44 : vector<1x32xf32> to vector<32xf32>
    %46 = vector.shape_cast %45 : vector<32xf32> to vector<1x1x32xf32>
    %47 = vector.broadcast %46 : vector<1x1x32xf32> to vector<16x16x32xf32>
    %48 = arith.mulf %43, %47 : vector<16x16x32xf32>
    %49 = arith.addf %42, %48 : vector<16x16x32xf32>
    %c1_41 = arith.constant 1 : index
    %c1_42 = arith.constant 1 : index
    %c0_43 = arith.constant 0 : index
    %50 = vector.load %arg9[%c1_41, %c1_42, %c0_43] : memref<18x18x32xf32, #tpu.memory_space<vmem>>, vector<16x16x32xf32>
    %c4 = arith.constant 4 : index
    %c0_44 = arith.constant 0 : index
    %51 = vector.load %arg5[%c4, %c0_44] : memref<9x32xf32, #tpu.memory_space<vmem>>, vector<1x32xf32>
    %52 = vector.shape_cast %51 : vector<1x32xf32> to vector<32xf32>
    %53 = vector.shape_cast %52 : vector<32xf32> to vector<1x1x32xf32>
    %54 = vector.broadcast %53 : vector<1x1x32xf32> to vector<16x16x32xf32>
    %55 = arith.mulf %50, %54 : vector<16x16x32xf32>
    %56 = arith.addf %49, %55 : vector<16x16x32xf32>
    %c1_45 = arith.constant 1 : index
    %c2_46 = arith.constant 2 : index
    %c0_47 = arith.constant 0 : index
    %57 = vector.load %arg9[%c1_45, %c2_46, %c0_47] : memref<18x18x32xf32, #tpu.memory_space<vmem>>, vector<16x16x32xf32>
    %c5 = arith.constant 5 : index
    %c0_48 = arith.constant 0 : index
    %58 = vector.load %arg5[%c5, %c0_48] : memref<9x32xf32, #tpu.memory_space<vmem>>, vector<1x32xf32>
    %59 = vector.shape_cast %58 : vector<1x32xf32> to vector<32xf32>
    %60 = vector.shape_cast %59 : vector<32xf32> to vector<1x1x32xf32>
    %61 = vector.broadcast %60 : vector<1x1x32xf32> to vector<16x16x32xf32>
    %62 = arith.mulf %57, %61 : vector<16x16x32xf32>
    %63 = arith.addf %56, %62 : vector<16x16x32xf32>
    %c2_49 = arith.constant 2 : index
    %c0_50 = arith.constant 0 : index
    %c0_51 = arith.constant 0 : index
    %64 = vector.load %arg9[%c2_49, %c0_50, %c0_51] : memref<18x18x32xf32, #tpu.memory_space<vmem>>, vector<16x16x32xf32>
    %c6 = arith.constant 6 : index
    %c0_52 = arith.constant 0 : index
    %65 = vector.load %arg5[%c6, %c0_52] : memref<9x32xf32, #tpu.memory_space<vmem>>, vector<1x32xf32>
    %66 = vector.shape_cast %65 : vector<1x32xf32> to vector<32xf32>
    %67 = vector.shape_cast %66 : vector<32xf32> to vector<1x1x32xf32>
    %68 = vector.broadcast %67 : vector<1x1x32xf32> to vector<16x16x32xf32>
    %69 = arith.mulf %64, %68 : vector<16x16x32xf32>
    %70 = arith.addf %63, %69 : vector<16x16x32xf32>
    %c2_53 = arith.constant 2 : index
    %c1_54 = arith.constant 1 : index
    %c0_55 = arith.constant 0 : index
    %71 = vector.load %arg9[%c2_53, %c1_54, %c0_55] : memref<18x18x32xf32, #tpu.memory_space<vmem>>, vector<16x16x32xf32>
    %c7 = arith.constant 7 : index
    %c0_56 = arith.constant 0 : index
    %72 = vector.load %arg5[%c7, %c0_56] : memref<9x32xf32, #tpu.memory_space<vmem>>, vector<1x32xf32>
    %73 = vector.shape_cast %72 : vector<1x32xf32> to vector<32xf32>
    %74 = vector.shape_cast %73 : vector<32xf32> to vector<1x1x32xf32>
    %75 = vector.broadcast %74 : vector<1x1x32xf32> to vector<16x16x32xf32>
    %76 = arith.mulf %71, %75 : vector<16x16x32xf32>
    %77 = arith.addf %70, %76 : vector<16x16x32xf32>
    %c2_57 = arith.constant 2 : index
    %c2_58 = arith.constant 2 : index
    %c0_59 = arith.constant 0 : index
    %78 = vector.load %arg9[%c2_57, %c2_58, %c0_59] : memref<18x18x32xf32, #tpu.memory_space<vmem>>, vector<16x16x32xf32>
    %c8 = arith.constant 8 : index
    %c0_60 = arith.constant 0 : index
    %79 = vector.load %arg5[%c8, %c0_60] : memref<9x32xf32, #tpu.memory_space<vmem>>, vector<1x32xf32>
    %80 = vector.shape_cast %79 : vector<1x32xf32> to vector<32xf32>
    %81 = vector.shape_cast %80 : vector<32xf32> to vector<1x1x32xf32>
    %82 = vector.broadcast %81 : vector<1x1x32xf32> to vector<16x16x32xf32>
    %83 = arith.mulf %78, %82 : vector<16x16x32xf32>
    %84 = arith.addf %77, %83 : vector<16x16x32xf32>
    %c0_61 = arith.constant 0 : index
    %c0_62 = arith.constant 0 : index
    %85 = vector.load %arg6[%c0_61, %c0_62] : memref<1x32xf32, #tpu.memory_space<vmem>>, vector<1x32xf32>
    %86 = vector.shape_cast %85 : vector<1x32xf32> to vector<1x1x32xf32>
    %87 = vector.broadcast %86 : vector<1x1x32xf32> to vector<16x16x32xf32>
    %88 = arith.addf %84, %87 : vector<16x16x32xf32>
    %89 = arith.negf %88 : vector<16x16x32xf32>
    %90 = math.exp %89 : vector<16x16x32xf32>
    %cst_63 = arith.constant 1.000000e+00 : f32
    %91 = vector.broadcast %cst_63 : f32 to vector<16x16x32xf32>
    %92 = arith.addf %91, %90 : vector<16x16x32xf32>
    %93 = arith.divf %91, %92 : vector<16x16x32xf32>
    %94 = arith.mulf %88, %93 : vector<16x16x32xf32>
    %c0_64 = arith.constant 0 : index
    %c0_65 = arith.constant 0 : index
    %c0_66 = arith.constant 0 : index
    %c0_67 = arith.constant 0 : index
    %95 = vector.load %arg7[%c0_64, %c0_65, %c0_66, %c0_67] : memref<1x16x16x32xf32, #tpu.memory_space<vmem>>, vector<1x16x16x32xf32>
    %96 = vector.shape_cast %95 : vector<1x16x16x32xf32> to vector<16x16x32xf32>
    %97 = vector.shape_cast %94 : vector<16x16x32xf32> to vector<1x16x16x32xf32>
    tpu.vector_store %arg7[%c0_64, %c0_65, %c0_66, %c0_67], %97 {strides = array<i32>} : memref<1x16x16x32xf32, #tpu.memory_space<vmem>>, vector<1x16x16x32xf32>,
    %cst_68 = arith.constant dense<0.000000e+00> : vector<32xf32>
    %98 = vector.multi_reduction <add>, %94, %cst_68 [0, 1] : vector<16x16x32xf32> to vector<32xf32>
    %99 = vector.shape_cast %98 : vector<32xf32> to vector<1x1x32xf32>
    %cst_69 = arith.constant 2.560000e+02 : f32
    %100 = vector.broadcast %cst_69 : f32 to vector<1x1x32xf32>
    %101 = arith.divf %99, %100 : vector<1x1x32xf32>
    %c0_70 = arith.constant 0 : index
    %c0_71 = arith.constant 0 : index
    %c0_72 = arith.constant 0 : index
    %102 = vector.load %arg8[%c0_70, %c0_71, %c0_72] : memref<1x1x32xf32, #tpu.memory_space<vmem>>, vector<1x1x32xf32>
    tpu.vector_store %arg8[%c0_70, %c0_71, %c0_72], %101 {strides = array<i32>} : memref<1x1x32xf32, #tpu.memory_space<vmem>>, vector<1x1x32xf32>,
    return
  }
  func.func @transform_0(%arg0: i32, %arg1: i32) -> (i32, i32, i32) {
    %c0_i32 = arith.constant 0 : i32
    %c0_i32_0 = arith.constant 0 : i32
    %c0_i32_1 = arith.constant 0 : i32
    return %arg0, %c0_i32, %c0_i32_0 : i32, i32, i32
  }
  func.func @transform_1(%arg0: i32, %arg1: i32) -> (i32, i32) {
    %c0_i32 = arith.constant 0 : i32
    %c0_i32_0 = arith.constant 0 : i32
    return %c0_i32, %arg1 : i32, i32
  }
  func.func @transform_2(%arg0: i32, %arg1: i32) -> (i32, i32) {
    %c0_i32 = arith.constant 0 : i32
    %c0_i32_0 = arith.constant 0 : i32
    return %c0_i32, %arg1 : i32, i32
  }
  func.func @transform_3(%arg0: i32, %arg1: i32) -> (i32, i32) {
    %c0_i32 = arith.constant 0 : i32
    %c0_i32_0 = arith.constant 0 : i32
    return %c0_i32, %arg1 : i32, i32
  }
  func.func @transform_4(%arg0: i32, %arg1: i32) -> (i32, i32) {
    %c0_i32 = arith.constant 0 : i32
    %c0_i32_0 = arith.constant 0 : i32
    return %c0_i32, %arg1 : i32, i32
  }
  func.func @transform_5(%arg0: i32, %arg1: i32) -> (i32, i32, i32, i32) {
    %c0_i32 = arith.constant 0 : i32
    %c0_i32_0 = arith.constant 0 : i32
    %c0_i32_1 = arith.constant 0 : i32
    return %arg0, %c0_i32, %c0_i32_0, %arg1 : i32, i32, i32, i32
  }
  func.func @transform_6(%arg0: i32, %arg1: i32) -> (i32, i32, i32) {
    %c0_i32 = arith.constant 0 : i32
    %c0_i32_0 = arith.constant 0 : i32
    return %arg0, %c0_i32, %arg1 : i32, i32, i32
  }
}

module attributes {stable_mosaic.version = 11 : i64} {
  func.func @_cv3_res_kernel(%arg0: i32, %arg1: i32, %arg2: memref<1x256x32xf32, #tpu.memory_space<vmem>>, %arg3: memref<1x1x32xf32, #tpu.memory_space<vmem>>, %arg4: memref<1x256x8xf32, #tpu.memory_space<vmem>>, %arg5: memref<32x8xf32, #tpu.memory_space<vmem>>, %arg6: memref<1x8xf32, #tpu.memory_space<vmem>>, %arg7: memref<1x256x8xf32, #tpu.memory_space<vmem>>) attributes {dimension_semantics = [#tpu.dimension_semantics<parallel>, #tpu.dimension_semantics<parallel>], iteration_bounds = array<i64: 2, 1>, scalar_prefetch = 0 : i64, scratch_operands = 0 : i64, tpu.core_type = #tpu.core_type<tc>, window_params = [{transform_indices = @transform_0, window_bounds = array<i64: 1, 256, 32>}, {transform_indices = @transform_1, window_bounds = array<i64: 1, 1, 32>}, {transform_indices = @transform_2, window_bounds = array<i64: 1, 256, 8>}, {pipeline_mode = #tpu.pipeline_mode<synchronous>, transform_indices = @transform_3, window_bounds = array<i64: 32, 8>}, {pipeline_mode = #tpu.pipeline_mode<synchronous>, transform_indices = @transform_4, window_bounds = array<i64: 1, 8>}, {transform_indices = @transform_5, window_bounds = array<i64: 1, 256, 8>}]} {
    %c0 = arith.constant 0 : index
    %c0_0 = arith.constant 0 : index
    %c0_1 = arith.constant 0 : index
    %0 = vector.load %arg2[%c0, %c0_0, %c0_1] : memref<1x256x32xf32, #tpu.memory_space<vmem>>, vector<1x256x32xf32>
    %1 = vector.shape_cast %0 : vector<1x256x32xf32> to vector<256x32xf32>
    %c0_2 = arith.constant 0 : index
    %c0_3 = arith.constant 0 : index
    %c0_4 = arith.constant 0 : index
    %2 = vector.load %arg3[%c0_2, %c0_3, %c0_4] : memref<1x1x32xf32, #tpu.memory_space<vmem>>, vector<1x1x32xf32>
    %3 = vector.shape_cast %2 : vector<1x1x32xf32> to vector<1x32xf32>
    %4 = vector.broadcast %3 : vector<1x32xf32> to vector<256x32xf32>
    %5 = arith.mulf %1, %4 : vector<256x32xf32>
    %c0_5 = arith.constant 0 : index
    %c0_6 = arith.constant 0 : index
    %6 = vector.load %arg5[%c0_5, %c0_6] : memref<32x8xf32, #tpu.memory_space<vmem>>, vector<32x8xf32>
    %cst = arith.constant dense<0.000000e+00> : vector<256x8xf32>
    %7 = tpu.matmul %5, %6, %cst {dimension_numbers = #tpu.dot_dimension_numbers<[1], [0], [0], [1], [0, 0, 1, 1], [], []>} : vector<256x32xf32>, vector<32x8xf32>, vector<256x8xf32> -> vector<256x8xf32>
    %c0_7 = arith.constant 0 : index
    %c0_8 = arith.constant 0 : index
    %8 = vector.load %arg6[%c0_7, %c0_8] : memref<1x8xf32, #tpu.memory_space<vmem>>, vector<1x8xf32>
    %9 = vector.broadcast %8 : vector<1x8xf32> to vector<256x8xf32>
    %10 = arith.addf %7, %9 : vector<256x8xf32>
    %11 = arith.negf %10 : vector<256x8xf32>
    %12 = math.exp %11 : vector<256x8xf32>
    %cst_9 = arith.constant 1.000000e+00 : f32
    %13 = vector.broadcast %cst_9 : f32 to vector<256x8xf32>
    %14 = arith.addf %13, %12 : vector<256x8xf32>
    %15 = arith.divf %13, %14 : vector<256x8xf32>
    %16 = arith.mulf %10, %15 : vector<256x8xf32>
    %c0_10 = arith.constant 0 : index
    %c0_11 = arith.constant 0 : index
    %c0_12 = arith.constant 0 : index
    %17 = vector.load %arg4[%c0_10, %c0_11, %c0_12] : memref<1x256x8xf32, #tpu.memory_space<vmem>>, vector<1x256x8xf32>
    %18 = vector.shape_cast %17 : vector<1x256x8xf32> to vector<256x8xf32>
    %19 = arith.addf %16, %18 : vector<256x8xf32>
    %c0_13 = arith.constant 0 : index
    %c0_14 = arith.constant 0 : index
    %c0_15 = arith.constant 0 : index
    %20 = vector.load %arg7[%c0_13, %c0_14, %c0_15] : memref<1x256x8xf32, #tpu.memory_space<vmem>>, vector<1x256x8xf32>
    %21 = vector.shape_cast %20 : vector<1x256x8xf32> to vector<256x8xf32>
    %22 = vector.shape_cast %19 : vector<256x8xf32> to vector<1x256x8xf32>
    tpu.vector_store %arg7[%c0_13, %c0_14, %c0_15], %22 {strides = array<i32>} : memref<1x256x8xf32, #tpu.memory_space<vmem>>, vector<1x256x8xf32>,
    return
  }
  func.func @transform_0(%arg0: i32, %arg1: i32) -> (i32, i32, i32) {
    %c0_i32 = arith.constant 0 : i32
    %c0_i32_0 = arith.constant 0 : i32
    return %arg0, %arg1, %c0_i32 : i32, i32, i32
  }
  func.func @transform_1(%arg0: i32, %arg1: i32) -> (i32, i32, i32) {
    %c0_i32 = arith.constant 0 : i32
    %c0_i32_0 = arith.constant 0 : i32
    %c0_i32_1 = arith.constant 0 : i32
    return %arg0, %c0_i32, %c0_i32_0 : i32, i32, i32
  }
  func.func @transform_2(%arg0: i32, %arg1: i32) -> (i32, i32, i32) {
    %c0_i32 = arith.constant 0 : i32
    %c0_i32_0 = arith.constant 0 : i32
    return %arg0, %arg1, %c0_i32 : i32, i32, i32
  }
  func.func @transform_3(%arg0: i32, %arg1: i32) -> (i32, i32) {
    %c0_i32 = arith.constant 0 : i32
    %c0_i32_0 = arith.constant 0 : i32
    %c0_i32_1 = arith.constant 0 : i32
    return %c0_i32, %c0_i32_0 : i32, i32
  }
  func.func @transform_4(%arg0: i32, %arg1: i32) -> (i32, i32) {
    %c0_i32 = arith.constant 0 : i32
    %c0_i32_0 = arith.constant 0 : i32
    %c0_i32_1 = arith.constant 0 : i32
    return %c0_i32, %c0_i32_0 : i32, i32
  }
  func.func @transform_5(%arg0: i32, %arg1: i32) -> (i32, i32, i32) {
    %c0_i32 = arith.constant 0 : i32
    %c0_i32_0 = arith.constant 0 : i32
    return %arg0, %arg1, %c0_i32 : i32, i32, i32
  }
}

</mosaic_0001>

<bundles_post_ra>
// kernel: bottleneck_forward.3
= control target key start
LH: loop header
LB: loop body
LE: loop exit
PB: predicated region body
PF: predicated region fallthrough
CT: control target
= control target key end

     0   :  { %s1541_s18 = smov 0   ;;  %s1543_s19 = smov 0   ;;  %s1965_s0 = inlined_call_operand.vmem [shape: f32[2,256,32], index: 0, kind: input, shape index: {}]   ;;  %s1966_s1 = inlined_call_operand.vmem [shape: f32[2,1,32], index: 1, kind: input, shape index: {}]   ;;  %s1967_s2 = inlined_call_operand.vmem [shape: f32[2,256,8], index: 2, kind: input, shape index: {}]   ;;  %s1968_s3 = inlined_call_operand.vmem [shape: f32[32,8], index: 3, kind: input, shape index: {}]   ;;  %s1969_s4 = inlined_call_operand.vmem [shape: f32[1,8], index: 4, kind: input, shape index: {}]   ;;  %s1970_s5 = inlined_call_operand.vmem [shape: f32[2,256,8], index: 5, kind: output, shape index: {}]  }
   0x1   :  { %s1545_s20 = smov 0  }
   0x2 LB: > { %s27_s21 = sadd.s32 1, %s1505_s19  ;;  %p1157_p0 = scmp.ge.s32.totalorder %s1509_s20, 1  ;;  %s1509_s20 = sphi %s1545_s20, %s15_s20   ;;  %s1505_s19 = sphi %s1543_s19, %s1972_s19   ;;  %s1501_s18 = sphi %s1541_s18, %s1971_s18  }
   0x3   : > { %p29_p1 = scmp.ge.s32.totalorder %s27_s21, 2  ;;  %p233_p2 = scmp.lt.s32.totalorder %s1509_s20, 3 }
   0x5   : > { %s1974_s21 = smov (%p29_p1, %s27_s21), 0  ;;  %p234_p3 = pnand %p1157_p0, %p233_p2 }
   0x6   : > { %p282_p4 = scmp.lt.s32.totalorder (!%p234_p3), %s1501_s18, 1 }
   0x7   : > { %237 = sbr.rel (%p234_p3) target bundleno = 301 (0x12d), region = 40 }
   0xc   : > { %v388_v0 = vld [vmem:[%s1968_s3 + $0x18] sm:$0xff]  ;;  %v387_v1 = vld [vmem:[%s1968_s3 + $0x10] sm:$0xff]  ;;  %v386_v2 = vld [vmem:[%s1968_s3 + $0x8] sm:$0xff]  ;;  %s1976_s18 = smov (!%p282_p4, %s1501_s18), 1  ;;  %vm396_vm0 = vcmask 261120   ;;  %vm1006_vm1 = vcmask 64512  }
   0xd   : > { %1271 = vmatprep.subr.mxu0 %v388_v0  ;;  %1327 = vmatprep.subr.mxu1 %v388_v0  ;;  %v385_v3 = vld [vmem:[%s1968_s3] sm:$0xff]  ;;  %s1571_s30 = sshll.u32 %s1976_s18, 8  ;;  %s293_s8 = scalar_lea.vmem %s1966_s1, %s1976_s18 }
   0xe   : > { %1272 = vmatpush3.msra.mxu0 %v388_v0  ;;  %1331 = vmatpush3.msra.mxu1 %v388_v0  ;;  %s1580_s11 = scalar_lea.vmem %s1965_s0, %s1571_s30  ;;  %v1582_v4 = vld [vmem:[%s293_s8] ss:$0 sm:$0xff]  ;;  %s1773_s16 = scalar_lea.vmem %s1967_s2, %s1571_s30 }
   0xf   : > { %1273 = vmatprep.subr.mxu0 %v387_v1  ;;  %1328 = vmatprep.subr.mxu1 %v387_v1  ;;  %v314_v5 = vld [vmem:[%s1580_s11] sm:$0xff]  ;;  %v315_v7 = vld [vmem:[%s1580_s11 + $0x8] sm:$0xff]  ;;  %v316_v12 = vld [vmem:[%s1580_s11 + $0x10] sm:$0xff]  ;;  %s1802_s22 = scalar_lea.vmem %s1970_s5, %s1571_s30 }
  0x10   : > { %1274 = vmatpush3.msra.mxu0 %v387_v1  ;;  %1332 = vmatpush3.msra.mxu1 %v387_v1  ;;  %v330_v6 = vld [vmem:[%s1580_s11 + $0x80] sm:$0xff]  ;;  %v353_v8 = vmul.f32 %v1582_v4, %v314_v5  ;;  %v354_v10 = vmul.f32 %v1582_v4, %v315_v7  ;;  %v331_v11 = vld [vmem:[%s1580_s11 + $0x88] sm:$0xff]  ;;  %v332_v13 = vld [vmem:[%s1580_s11 + $0x90] sm:$0xff]  ;;  %v355_v15 = vmul.f32 %v1582_v4, %v316_v12 }
  0x11   : > { %1275 = vmatprep.subr.mxu0 %v386_v2  ;;  %1329 = vmatprep.subr.mxu1 %v386_v2  ;;  %v369_v9 = vmul.f32 %v1582_v4, %v330_v6  ;;  %v370_v14 = vmul.f32 %v1582_v4, %v331_v11  ;;  %v371_v16 = vmul.f32 %v1582_v4, %v332_v13  ;;  %v317_v17 = vld [vmem:[%s1580_s11 + $0x18] sm:$0xff]  ;;  %v318_v19 = vld [vmem:[%s1580_s11 + $0x20] sm:$0xff]  ;;  %v319_v25 = vld [vmem:[%s1580_s11 + $0x28] sm:$0xff] }
  0x12   : > { %1276 = vmatpush3.msra.mxu0 %v386_v2  ;;  %1333 = vmatpush3.msra.mxu1 %v386_v2  ;;  %v333_v18 = vld [vmem:[%s1580_s11 + $0x98] sm:$0xff]  ;;  %v334_v20 = vld [vmem:[%s1580_s11 + $0xa0] sm:$0xff]  ;;  %v356_v21 = vmul.f32 %v1582_v4, %v317_v17  ;;  %v357_v23 = vmul.f32 %v1582_v4, %v318_v19  ;;  %v335_v26 = vld [vmem:[%s1580_s11 + $0xa8] sm:$0xff]  ;;  %v358_v29 = vmul.f32 %v1582_v4, %v319_v25 }
  0x13   : > { %1277 = vmatprep.subr.mxu0 %v385_v3  ;;  %1330 = vmatprep.subr.mxu1 %v385_v3  ;;  %v372_v22 = vmul.f32 %v1582_v4, %v333_v18  ;;  %v373_v24 = vmul.f32 %v1582_v4, %v334_v20  ;;  %v320_v27 = vld [vmem:[%s1580_s11 + $0x30] sm:$0xff]  ;;  %v374_v30 = vmul.f32 %v1582_v4, %v335_v26  ;;  %v321_v33 = vld [vmem:[%s1580_s11 + $0x38] sm:$0xff]  ;;  %v322_v35 = vld [vmem:[%s1580_s11 + $0x40] sm:$0xff] }
  0x14   : > { %1278 = vmatpush3.msra.mxu0 %v385_v3  ;;  %1334 = vmatpush3.msra.mxu1 %v385_v3  ;;  %v336_v28 = vld [vmem:[%s1580_s11 + $0xb0] sm:$0xff]  ;;  %v359_v31 = vmul.f32 %v1582_v4, %v320_v27  ;;  %v337_v34 = vld [vmem:[%s1580_s11 + $0xb8] sm:$0xff]  ;;  %v338_v36 = vld [vmem:[%s1580_s11 + $0xc0] sm:$0xff]  ;;  %v360_v37 = vmul.f32 %v1582_v4, %v321_v33  ;;  %v361_v39 = vmul.f32 %v1582_v4, %v322_v35 }
  0x15   : > { %1279 = vmatprep.mubr.msk.f32.mxu0 %vm396_vm0, %v353_v8  ;;  %1303 = vmatprep.mubr.msk.f32.mxu1 %vm396_vm0, %v369_v9  ;;  %v375_v32 = vmul.f32 %v1582_v4, %v336_v28  ;;  %v376_v38 = vmul.f32 %v1582_v4, %v337_v34  ;;  %v377_v40 = vmul.f32 %v1582_v4, %v338_v36  ;;  %v323_v41 = vld [vmem:[%s1580_s11 + $0x48] sm:$0xff]  ;;  %v324_v43 = vld [vmem:[%s1580_s11 + $0x50] sm:$0xff]  ;;  %v325_v49 = vld [vmem:[%s1580_s11 + $0x58] sm:$0xff] }
  0x16   : > { %1280 = vmatmul.mubr.msk.f32.vlgmr.msra.gmra.mxu0 %vm396_vm0, %v354_v10  ;;  %1304 = vmatmul.mubr.msk.f32.vlgmr.msra.gmra.mxu1 %vm396_vm0, %v370_v14  ;;  %v339_v42 = vld [vmem:[%s1580_s11 + $0xc8] sm:$0xff]  ;;  %v340_v44 = vld [vmem:[%s1580_s11 + $0xd0] sm:$0xff]  ;;  %v362_v45 = vmul.f32 %v1582_v4, %v323_v41  ;;  %v363_v47 = vmul.f32 %v1582_v4, %v324_v43  ;;  %v341_v50 = vld [vmem:[%s1580_s11 + $0xd8] sm:$0xff]  ;;  %v364_v53 = vmul.f32 %v1582_v4, %v325_v49 }
  0x17   : > { %1282 = vmatprep.mubr.msk.f32.mxu0 %vm396_vm0, %v355_v15  ;;  %1306 = vmatprep.mubr.msk.f32.mxu1 %vm396_vm0, %v371_v16  ;;  %v378_v46 = vmul.f32 %v1582_v4, %v339_v42  ;;  %v379_v48 = vmul.f32 %v1582_v4, %v340_v44  ;;  %v326_v51 = vld [vmem:[%s1580_s11 + $0x60] sm:$0xff]  ;;  %v380_v54 = vmul.f32 %v1582_v4, %v341_v50  ;;  %v327_v57 = vld [vmem:[%s1580_s11 + $0x68] sm:$0xff]  ;;  %v328_v59 = vld [vmem:[%s1580_s11 + $0x70] sm:$0xff] }
  0x18   : > { %v342_v52 = vld [vmem:[%s1580_s11 + $0xe0] sm:$0xff]  ;;  %v365_v55 = vmul.f32 %v1582_v4, %v326_v51  ;;  %v343_v58 = vld [vmem:[%s1580_s11 + $0xe8] sm:$0xff]  ;;  %v344_v60 = vld [vmem:[%s1580_s11 + $0xf0] sm:$0xff]  ;;  %v366_v61 = vmul.f32 %v1582_v4, %v327_v57  ;;  %v367_v63 = vmul.f32 %v1582_v4, %v328_v59 }
  0x19   : > { %v381_v56 = vmul.f32 %v1582_v4, %v342_v52  ;;  %v382_v62 = vmul.f32 %v1582_v4, %v343_v58  ;;  %v383_v0 = vmul.f32 %v1582_v4, %v344_v60  ;;  %v329_v1 = vld [vmem:[%s1580_s11 + $0x78] sm:$0xff]  ;;  %v1683_v6 = vld [vmem:[%s1969_s4] ss:$0 sm:$0xff] }
  0x1a   : > { %1283 = vmatmul.mubr.msk.f32.gmra.mxu0 %vm396_vm0, %v356_v21  ;;  %1307 = vmatmul.mubr.msk.f32.gmra.mxu1 %vm396_vm0, %v372_v22  ;;  %v345_v2 = vld [vmem:[%s1580_s11 + $0xf8] sm:$0xff]  ;;  %v368_v3 = vmul.f32 %v1582_v4, %v329_v1 }
  0x1b   : > { %1285 = vmatprep.mubr.msk.f32.mxu0 %vm396_vm0, %v357_v23  ;;  %1309 = vmatprep.mubr.msk.f32.mxu1 %vm396_vm0, %v373_v24  ;;  %v384_v5 = vmul.f32 %v1582_v4, %v345_v2 }
  0x1e   : > { %1286 = vmatmul.mubr.msk.f32.gmra.mxu0 %vm396_vm0, %v358_v29  ;;  %1310 = vmatmul.mubr.msk.f32.gmra.mxu1 %vm396_vm0, %v374_v30 }
  0x1f   : > { %1288 = vmatprep.mubr.msk.f32.mxu0 %vm396_vm0, %v359_v31  ;;  %1312 = vmatprep.mubr.msk.f32.mxu1 %vm396_vm0, %v375_v32 }
  0x22   : > { %1289 = vmatmul.mubr.msk.f32.gmra.mxu0 %vm396_vm0, %v360_v37  ;;  %1313 = vmatmul.mubr.msk.f32.gmra.mxu1 %vm396_vm0, %v376_v38 }
  0x23   : > { %1291 = vmatprep.mubr.msk.f32.mxu0 %vm396_vm0, %v361_v39  ;;  %1315 = vmatprep.mubr.msk.f32.mxu1 %vm396_vm0, %v377_v40 }
  0x26   : > { %1292 = vmatmul.mubr.msk.f32.gmra.mxu0 %vm396_vm0, %v362_v45  ;;  %1316 = vmatmul.mubr.msk.f32.gmra.mxu1 %vm396_vm0, %v378_v46 }
  0x27   : > { %1294 = vmatprep.mubr.msk.f32.mxu0 %vm396_vm0, %v363_v47  ;;  %1318 = vmatprep.mubr.msk.f32.mxu1 %vm396_vm0, %v379_v48 }
  0x2a   : > { %1295 = vmatmul.mubr.msk.f32.gmra.mxu0 %vm396_vm0, %v364_v53  ;;  %1319 = vmatmul.mubr.msk.f32.gmra.mxu1 %vm396_vm0, %v380_v54 }
  0x2b   : > { %1297 = vmatprep.mubr.msk.f32.mxu0 %vm396_vm0, %v365_v55  ;;  %1321 = vmatprep.mubr.msk.f32.mxu1 %vm396_vm0, %v381_v56 }
  0x2e   : > { %1298 = vmatmul.mubr.msk.f32.gmra.mxu0 %vm396_vm0, %v366_v61  ;;  %1322 = vmatmul.mubr.msk.f32.gmra.mxu1 %vm396_vm0, %v382_v62 }
  0x2f   : > { %1300 = vmatprep.mubr.msk.f32.mxu0 %vm396_vm0, %v367_v63  ;;  %1324 = vmatprep.mubr.msk.f32.mxu1 %vm396_vm0, %v383_v0 }
  0x32   : > { %1301 = vmatmul.mubr.msk.f32.gmra.mxu0 %vm396_vm0, %v368_v3  ;;  %1325 = vmatmul.mubr.msk.f32.gmra.mxu1 %vm396_vm0, %v384_v5 }
  0xd6   : > { %v1281_v7 = vpop.f32.mrf.mxu0  ;;  %v1305_v8 = vpop.f32.mrf.mxu1 }
  0xd7   : > { %v1686_v9 = vadd.f32 %v1281_v7, %v1683_v6  ;;  %v1689_v4 = vadd.f32 %v1305_v8, %v1683_v6 }
  0xd8   : > { %v559_v10 = vpop.f32.mrf.mxu0  ;;  %v639_v11 = vpop.f32.mrf.mxu1 }
  0xd9   : > { %v1199_v12 = vmul.f32 -1.442695, %v1686_v9  ;;  %v1215_v13 = vmul.f32 -1.442695, %v1689_v4  ;;  %v1694_v14 = vadd.f32 %v1683_v6, %v559_v10  ;;  %v1697_v15 = vadd.f32 %v1683_v6, %v639_v11 }
  0xda   : > { %v1284_v16 = vpop.f32.mrf.mxu0  ;;  %v1308_v17 = vpop.f32.mrf.mxu1 }
  0xdb   : > { %1359 = vpow2.f32 %v1199_v12  ;;  %v1198_v18 = vmul.f32 -1.442695, %v1694_v14  ;;  %v1214_v19 = vmul.f32 -1.442695, %v1697_v15  ;;  %v1702_v20 = vadd.f32 %v1284_v16, %v1683_v6 }
  0xdc   : > { %1361 = vpow2.f32 %v1215_v13  ;;  %v1705_v21 = vadd.f32 %v1308_v17, %v1683_v6  ;;  %v569_v22 = vpop.f32.mrf.mxu0  ;;  %v649_v23 = vpop.f32.mrf.mxu1 }
  0xdd   : > { %1363 = vpow2.f32 %v1198_v18  ;;  %v1201_v24 = vmul.f32 -1.442695, %v1702_v20  ;;  %v1709_v25 = vadd.f32 %v1683_v6, %v569_v22  ;;  %v1712_v26 = vadd.f32 %v1683_v6, %v649_v23 }
  0xde   : > { %1365 = vpow2.f32 %v1214_v19  ;;  %v1217_v27 = vmul.f32 -1.442695, %v1705_v21  ;;  %v1287_v28 = vpop.f32.mrf.mxu0  ;;  %v1311_v29 = vpop.f32.mrf.mxu1 }
  0xdf   : > { %1367 = vpow2.f32 %v1201_v24  ;;  %v1200_v30 = vmul.f32 -1.442695, %v1709_v25  ;;  %v1216_v31 = vmul.f32 -1.442695, %v1712_v26  ;;  %v1718_v32 = vadd.f32 %v1287_v28, %v1683_v6 }
  0xe0   : > { %1369 = vpow2.f32 %v1217_v27  ;;  %v1721_v33 = vadd.f32 %v1311_v29, %v1683_v6  ;;  %v579_v34 = vpop.f32.mrf.mxu0  ;;  %v659_v35 = vpop.f32.mrf.mxu1 }
  0xe1   : > { %1371 = vpow2.f32 %v1200_v30  ;;  %v1203_v36 = vmul.f32 -1.442695, %v1718_v32  ;;  %v1725_v37 = vadd.f32 %v1683_v6, %v579_v34  ;;  %v1728_v38 = vadd.f32 %v1683_v6, %v659_v35 }
  0xe2   : > { %1373 = vpow2.f32 %v1216_v31  ;;  %v1219_v39 = vmul.f32 -1.442695, %v1721_v33  ;;  %v1290_v40 = vpop.f32.mrf.mxu0  ;;  %v1314_v41 = vpop.f32.mrf.mxu1 }
  0xe3   : > { %1375 = vpow2.f32 %v1203_v36  ;;  %v1202_v42 = vmul.f32 -1.442695, %v1725_v37  ;;  %v1218_v43 = vmul.f32 -1.442695, %v1728_v38  ;;  %v1734_v44 = vadd.f32 %v1290_v40, %v1683_v6 }
  0xe4   : > { %1377 = vpow2.f32 %v1219_v39  ;;  %v1737_v45 = vadd.f32 %v1314_v41, %v1683_v6  ;;  %v589_v46 = vpop.f32.mrf.mxu0  ;;  %v669_v47 = vpop.f32.mrf.mxu1 }
  0xe5   : > { %1379 = vpow2.f32 %v1202_v42  ;;  %v1205_v48 = vmul.f32 -1.442695, %v1734_v44  ;;  %v1741_v49 = vadd.f32 %v1683_v6, %v589_v46  ;;  %v1744_v50 = vadd.f32 %v1683_v6, %v669_v47 }
  0xe6   : > { %1381 = vpow2.f32 %v1218_v43  ;;  %v1221_v51 = vmul.f32 -1.442695, %v1737_v45  ;;  %v1293_v52 = vpop.f32.mrf.mxu0  ;;  %v1317_v53 = vpop.f32.mrf.mxu1 }
  0xe7   : > { %1383 = vpow2.f32 %v1205_v48  ;;  %v1204_v54 = vmul.f32 -1.442695, %v1741_v49  ;;  %v1220_v55 = vmul.f32 -1.442695, %v1744_v50  ;;  %v1750_v12 = vadd.f32 %v1293_v52, %v1683_v6 }
  0xe8   : > { %v1360_v56 = vpop.eup %1359  ;;  %1385 = vpow2.f32 %v1221_v51  ;;  %v599_v57 = vpop.f32.mrf.mxu0  ;;  %v1753_v23 = vadd.f32 %v1317_v53, %v1683_v6 }
  0xe9   : > { %v679_v58 = vpop.f32.mrf.mxu1  ;;  %v1362_v59 = vpop.eup %1361  ;;  %v815_v60 = vadd.f32 1.0, %v1360_v56  ;;  %1387 = vpow2.f32 %v1204_v54  ;;  %v1756_v28 = vadd.f32 %v1683_v6, %v599_v57  ;;  %v1207_v31 = vmul.f32 -1.442695, %v1750_v12 }
  0xea   : > { %v1364_v61 = vpop.eup %1363  ;;  %v831_v62 = vadd.f32 1.0, %v1362_v59  ;;  %1389 = vpow2.f32 %v1220_v55  ;;  %v1296_v63 = vpop.f32.mrf.mxu0  ;;  %v1760_v39 = vadd.f32 %v1683_v6, %v679_v58  ;;  %v1223_v46 = vmul.f32 -1.442695, %v1753_v23 }
  0xeb   : > { %v1366_v0 = vpop.eup %1365  ;;  %1391 = vrcp.f32 %v815_v60  ;;  %v814_v1 = vadd.f32 1.0, %v1364_v61  ;;  %v1320_v2 = vpop.f32.mrf.mxu1  ;;  %v1763_v40 = vadd.f32 %v1296_v63, %v1683_v6  ;;  %v1206_v52 = vmul.f32 -1.442695, %v1756_v28 }
  0xec   : > { %v1368_v3 = vpop.eup %1367  ;;  %1393 = vrcp.f32 %v831_v62  ;;  %v830_v5 = vadd.f32 1.0, %v1366_v0  ;;  %v609_v13 = vpop.f32.mrf.mxu0  ;;  %v1767_v47 = vadd.f32 %v1320_v2, %v1683_v6  ;;  %v1222_v61 = vmul.f32 -1.442695, %v1760_v39 }
  0xed   : > { %v1370_v7 = vpop.eup %1369  ;;  %1395 = vrcp.f32 %v814_v1  ;;  %v817_v8 = vadd.f32 1.0, %v1368_v3  ;;  %v689_v18 = vpop.f32.mrf.mxu1  ;;  %v1777_v53 = vadd.f32 %v1683_v6, %v609_v13  ;;  %v1209_v62 = vmul.f32 -1.442695, %v1763_v40  ;;  %v943_v1 = vld [vmem:[%s1773_s16 + $0x8] sm:$0xff] }
  0xee   : > { %v1372_v10 = vpop.eup %1371  ;;  %1397 = vrcp.f32 %v830_v5  ;;  %v833_v11 = vadd.f32 1.0, %v1370_v7  ;;  %v1299_v34 = vpop.f32.mrf.mxu0  ;;  %v1780_v56 = vadd.f32 %v1683_v6, %v689_v18  ;;  %v1225_v3 = vmul.f32 -1.442695, %v1767_v47  ;;  %v942_v18 = vld [vmem:[%s1773_s16] sm:$0xff] }
  0xef   : > { %v1374_v16 = vpop.eup %1373  ;;  %1399 = vrcp.f32 %v817_v8  ;;  %v816_v17 = vadd.f32 1.0, %v1372_v10  ;;  %v1323_v41 = vpop.f32.mrf.mxu1  ;;  %v1783_v57 = vadd.f32 %v1299_v34, %v1683_v6  ;;  %v959_v10 = vld [vmem:[%s1773_s16 + $0x88] sm:$0xff] }
  0xf0   : > { %v1376_v19 = vpop.eup %1375  ;;  %1401 = vrcp.f32 %v833_v11  ;;  %v832_v22 = vadd.f32 1.0, %v1374_v16  ;;  %v619_v58 = vpop.f32.mrf.mxu0  ;;  %v1790_v5 = vadd.f32 %v1323_v41, %v1683_v6  ;;  %v1208_v11 = vmul.f32 -1.442695, %v1777_v53 }
  0xf1   : > { %v1378_v24 = vpop.eup %1377  ;;  %1403 = vrcp.f32 %v816_v17  ;;  %v819_v27 = vadd.f32 1.0, %v1376_v19  ;;  %v699_v63 = vpop.f32.mrf.mxu1  ;;  %v1796_v13 = vadd.f32 %v1683_v6, %v619_v58  ;;  %v1808_v19 = vmul.f32 -1.442695, %v1783_v57  ;;  %v944_v58 = vld [vmem:[%s1773_s16 + $0x10] sm:$0xff] }
  0xf2   : > { %v1380_v29 = vpop.eup %1379  ;;  %1405 = vrcp.f32 %v832_v22  ;;  %v835_v30 = vadd.f32 1.0, %v1378_v24  ;;  %v1302_v22 = vpop.f32.mrf.mxu0  ;;  %v1813_v34 = vadd.f32 %v1683_v6, %v699_v63 }
  0xf3   : > { %v1382_v35 = vpop.eup %1381  ;;  %1407 = vrcp.f32 %v819_v27  ;;  %v818_v36 = vadd.f32 1.0, %v1380_v29 }
  0xf4   : > { %v1384_v42 = vpop.eup %1383  ;;  %1409 = vrcp.f32 %v835_v30  ;;  %v834_v43 = vadd.f32 1.0, %v1382_v35  ;;  %v958_v30 = vld [vmem:[%s1773_s16 + $0x80] sm:$0xff] }
  0xf5   : > { %v1386_v48 = vpop.eup %1385  ;;  %1411 = vrcp.f32 %v818_v36  ;;  %v821_v51 = vadd.f32 1.0, %v1384_v42  ;;  %v945_v42 = vld [vmem:[%s1773_s16 + $0x18] sm:$0xff] }
  0xf6   : > { %v1388_v54 = vpop.eup %1387  ;;  %1413 = vrcp.f32 %v834_v43  ;;  %v837_v55 = vadd.f32 1.0, %v1386_v48  ;;  %v1227_v43 = vmul.f32 -1.442695, %v1790_v5 }
  0xf7   : > { %v1390_v59 = vpop.eup %1389  ;;  %1415 = vrcp.f32 %v821_v51  ;;  %v820_v60 = vadd.f32 1.0, %v1388_v54  ;;  %v961_v51 = vld [vmem:[%s1773_s16 + $0x98] sm:$0xff]  ;;  %v1210_v54 = vmul.f32 -1.442695, %v1796_v13 }
  0xf8   : > { %v1392_v0 = vpop.eup %1391  ;;  %1417 = vrcp.f32 %v837_v55  ;;  %v836_v2 = vadd.f32 1.0, %v1390_v59  ;;  %v1828_v59 = vadd.f32 %v1302_v22, %v1683_v6 }
  0xf9   : > { %v1394_v7 = vpop.eup %1393  ;;  %v911_v8 = vmul.f32 %v1392_v0, %v1686_v9  ;;  %1419 = vrcp.f32 %v820_v60  ;;  %v1224_v9 = vmul.f32 -1.442695, %v1780_v56  ;;  %v629_v60 = vpop.f32.mrf.mxu0  ;;  %v960_v0 = vld [vmem:[%s1773_s16 + $0x90] sm:$0xff] }
  0xfa   : > { %v1396_v16 = vpop.eup %1395  ;;  %v927_v17 = vmul.f32 %v1394_v7, %v1689_v4  ;;  %1421 = vrcp.f32 %v836_v2  ;;  %v1326_v4 = vpop.f32.mrf.mxu1 }
  0xfb   : > { %v1398_v24 = vpop.eup %1397  ;;  %v975_v27 = vadd.f32 %v943_v1, %v911_v8  ;;  %v910_v29 = vmul.f32 %v1396_v16, %v1694_v14  ;;  %1423 = vpow2.f32 %v1207_v31  ;;  %v1226_v1 = vmul.f32 -1.442695, %v1813_v34  ;;  %v947_v8 = vld [vmem:[%s1773_s16 + $0x28] sm:$0xff] }
  0xfc   : > { %v1400_v35 = vpop.eup %1399  ;;  %v991_v36 = vadd.f32 %v959_v10, %v927_v17  ;;  %v926_v41 = vmul.f32 %v1398_v24, %v1697_v15  ;;  %1425 = vpow2.f32 %v1223_v46  ;;  %v1840_v10 = vadd.f32 %v1326_v4, %v1683_v6  ;;  %v963_v17 = vld [vmem:[%s1773_s16 + $0xa8] sm:$0xff]  ;;  %v946_v24 = vld [vmem:[%s1773_s16 + $0x20] sm:$0xff] }
  0xfd   : > { %v1402_v48 = vpop.eup %1401  ;;  %1008 = vst.msk [vmem:[%s1802_s22 + $0x8] sm:$0xff] %vm1006_vm1, %v975_v27  ;;  %v974_v14 = vadd.f32 %v942_v18, %v910_v29  ;;  %v913_v31 = vmul.f32 %v1400_v35, %v1702_v20  ;;  %1427 = vpow2.f32 %v1206_v52  ;;  %v1847_v18 = vadd.f32 %v1683_v6, %v629_v60  ;;  %v949_v35 = vld [vmem:[%s1773_s16 + $0x38] sm:$0xff] }
  0xfe   : > { %v1404_v55 = vpop.eup %1403  ;;  %1024 = vst.msk [vmem:[%s1802_s22 + $0x88] sm:$0xff] %vm1006_vm1, %v991_v36  ;;  %v990_v15 = vadd.f32 %v958_v30, %v926_v41  ;;  %v929_v46 = vmul.f32 %v1402_v48, %v1705_v21  ;;  %1429 = vpow2.f32 %v1222_v61  ;;  %v709_v21 = vpop.f32.mrf.mxu1  ;;  %v962_v30 = vld [vmem:[%s1773_s16 + $0xa0] sm:$0xff]  ;;  %v1213_v4 = vmul.f32 -1.442695, %v1828_v59 }
  0xff   : > { %v1406_v20 = vpop.eup %1405  ;;  %1007 = vst.msk [vmem:[%s1802_s22] sm:$0xff] %vm1006_vm1, %v974_v14  ;;  %v977_v52 = vadd.f32 %v945_v42, %v913_v31  ;;  %v912_v63 = vmul.f32 %v1404_v55, %v1709_v25  ;;  %1431 = vpow2.f32 %v1209_v62  ;;  %v1854_v27 = vadd.f32 %v1683_v6, %v709_v21  ;;  %v965_v42 = vld [vmem:[%s1773_s16 + $0xb8] sm:$0xff]  ;;  %v948_v31 = vld [vmem:[%s1773_s16 + $0x30] sm:$0xff] }
 0x100   : > { %v1408_v2 = vpop.eup %1407  ;;  %1023 = vst.msk [vmem:[%s1802_s22 + $0x80] sm:$0xff] %vm1006_vm1, %v990_v15  ;;  %v993_v61 = vadd.f32 %v961_v51, %v929_v46  ;;  %v928_v7 = vmul.f32 %v1406_v20, %v1712_v26  ;;  %1433 = vpow2.f32 %v1225_v3  ;;  %v1229_v36 = vmul.f32 -1.442695, %v1840_v10  ;;  %v964_v15 = vld [vmem:[%s1773_s16 + $0xb0] sm:$0xff] }
 0x101   : > { %v1410_v25 = vpop.eup %1409  ;;  %1010 = vst.msk [vmem:[%s1802_s22 + $0x18] sm:$0xff] %vm1006_vm1, %v977_v52  ;;  %v976_v62 = vadd.f32 %v944_v58, %v912_v63  ;;  %v915_v16 = vmul.f32 %v1408_v2, %v1718_v32  ;;  %1435 = vpow2.f32 %v1208_v11  ;;  %v1212_v48 = vmul.f32 -1.442695, %v1847_v18 }
 0x102   : > { %v1412_v26 = vpop.eup %1411  ;;  %1026 = vst.msk [vmem:[%s1802_s22 + $0x98] sm:$0xff] %vm1006_vm1, %v993_v61  ;;  %v992_v3 = vadd.f32 %v960_v0, %v928_v7  ;;  %v931_v22 = vmul.f32 %v1410_v25, %v1721_v33  ;;  %1437 = vpow2.f32 %v1224_v9  ;;  %v1228_v51 = vmul.f32 -1.442695, %v1854_v27 }
 0x103   : > { %v1414_v32 = vpop.eup %1413  ;;  %1009 = vst.msk [vmem:[%s1802_s22 + $0x10] sm:$0xff] %vm1006_vm1, %v976_v62  ;;  %v979_v11 = vadd.f32 %v947_v8, %v915_v16  ;;  %v914_v29 = vmul.f32 %v1412_v26, %v1725_v37  ;;  %1439 = vpow2.f32 %v1808_v19 }
 0x104   : > { %v1416_v33 = vpop.eup %1415  ;;  %1025 = vst.msk [vmem:[%s1802_s22 + $0x90] sm:$0xff] %vm1006_vm1, %v992_v3  ;;  %v995_v9 = vadd.f32 %v963_v17, %v931_v22  ;;  %v930_v6 = vmul.f32 %v1414_v32, %v1728_v38  ;;  %1441 = vpow2.f32 %v1227_v43 }
 0x105   : > { %v1418_v41 = vpop.eup %1417  ;;  %1012 = vst.msk [vmem:[%s1802_s22 + $0x28] sm:$0xff] %vm1006_vm1, %v979_v11  ;;  %v978_v37 = vadd.f32 %v946_v24, %v914_v29  ;;  %v917_v19 = vmul.f32 %v1416_v33, %v1734_v44  ;;  %1443 = vpow2.f32 %v1210_v54 }
 0x106   : > { %v1420_v14 = vpop.eup %1419  ;;  %1028 = vst.msk [vmem:[%s1802_s22 + $0xa8] sm:$0xff] %vm1006_vm1, %v995_v9  ;;  %v994_v38 = vadd.f32 %v962_v30, %v930_v6  ;;  %v933_v43 = vmul.f32 %v1418_v41, %v1737_v45  ;;  %1445 = vpow2.f32 %v1226_v1 }
 0x107   : > { %v1422_v55 = vpop.eup %1421  ;;  %1011 = vst.msk [vmem:[%s1802_s22 + $0x20] sm:$0xff] %vm1006_vm1, %v978_v37  ;;  %v981_v44 = vadd.f32 %v949_v35, %v917_v19  ;;  %v916_v54 = vmul.f32 %v1420_v14, %v1741_v49  ;;  %1447 = vpow2.f32 %v1213_v4  ;;  %v951_v19 = vld [vmem:[%s1773_s16 + $0x48] sm:$0xff] }
 0x108   : > { %v1424_v46 = vpop.eup %1423  ;;  %1027 = vst.msk [vmem:[%s1802_s22 + $0xa0] sm:$0xff] %vm1006_vm1, %v994_v38  ;;  %v997_v58 = vadd.f32 %v965_v42, %v933_v43  ;;  %v932_v45 = vmul.f32 %v1422_v55, %v1744_v50  ;;  %1449 = vpow2.f32 %v1229_v36  ;;  %v967_v38 = vld [vmem:[%s1773_s16 + $0xc8] sm:$0xff] }
 0x109   : > { %v1426_v60 = vpop.eup %1425  ;;  %1014 = vst.msk [vmem:[%s1802_s22 + $0x38] sm:$0xff] %vm1006_vm1, %v981_v44  ;;  %v980_v20 = vadd.f32 %v948_v31, %v916_v54  ;;  %v823_v52 = vadd.f32 1.0, %v1424_v46  ;;  %1451 = vpow2.f32 %v1212_v48 }
 0x10a   : > { %v1428_v63 = vpop.eup %1427  ;;  %1030 = vst.msk [vmem:[%s1802_s22 + $0xb8] sm:$0xff] %vm1006_vm1, %v997_v58  ;;  %v996_v49 = vadd.f32 %v964_v15, %v932_v45  ;;  %v839_v0 = vadd.f32 1.0, %v1426_v60  ;;  %1453 = vpow2.f32 %v1228_v51  ;;  %v950_v51 = vld [vmem:[%s1773_s16 + $0x40] sm:$0xff]  ;;  %v953_v45 = vld [vmem:[%s1773_s16 + $0x58] sm:$0xff] }
 0x10b   : > { %v1430_v1 = vpop.eup %1429  ;;  %1013 = vst.msk [vmem:[%s1802_s22 + $0x30] sm:$0xff] %vm1006_vm1, %v980_v20  ;;  %1455 = vrcp.f32 %v823_v52  ;;  %v822_v21 = vadd.f32 1.0, %v1428_v63  ;;  %v966_v15 = vld [vmem:[%s1773_s16 + $0xc0] sm:$0xff]  ;;  %v969_v52 = vld [vmem:[%s1773_s16 + $0xd8] sm:$0xff] }
 0x10c   : > { %v1432_v50 = vpop.eup %1431  ;;  %1029 = vst.msk [vmem:[%s1802_s22 + $0xb0] sm:$0xff] %vm1006_vm1, %v996_v49  ;;  %1457 = vrcp.f32 %v839_v0  ;;  %v838_v2 = vadd.f32 1.0, %v1430_v1 }
 0x10d   : > { %v1434_v61 = vpop.eup %1433  ;;  %1459 = vrcp.f32 %v822_v21  ;;  %v825_v7 = vadd.f32 1.0, %v1432_v50 }
 0x10e   : > { %v1436_v8 = vpop.eup %1435  ;;  %1461 = vrcp.f32 %v838_v2  ;;  %v841_v25 = vadd.f32 1.0, %v1434_v61 }
 0x10f   : > { %v1438_v62 = vpop.eup %1437  ;;  %1463 = vrcp.f32 %v825_v7  ;;  %v824_v16 = vadd.f32 1.0, %v1436_v8 }
 0x110   : > { %v1440_v17 = vpop.eup %1439  ;;  %1465 = vrcp.f32 %v841_v25  ;;  %v840_v26 = vadd.f32 1.0, %v1438_v62 }
 0x111   : > { %v1442_v3 = vpop.eup %1441  ;;  %1467 = vrcp.f32 %v824_v16  ;;  %v827_v22 = vadd.f32 1.0, %v1440_v17 }
 0x112   : > { %v1444_v24 = vpop.eup %1443  ;;  %1469 = vrcp.f32 %v840_v26  ;;  %v843_v32 = vadd.f32 1.0, %v1442_v3 }
 0x113   : > { %v1446_v11 = vpop.eup %1445  ;;  %1471 = vrcp.f32 %v827_v22  ;;  %v826_v29 = vadd.f32 1.0, %v1444_v24 }
 0x114   : > { %v1448_v30 = vpop.eup %1447  ;;  %1473 = vrcp.f32 %v843_v32  ;;  %v842_v4 = vadd.f32 1.0, %v1446_v11 }
 0x115   : > { %v1450_v33 = vpop.eup %1449  ;;  %1475 = vrcp.f32 %v826_v29  ;;  %v829_v9 = vadd.f32 1.0, %v1448_v30 }
 0x116   : > { %v1452_v6 = vpop.eup %1451  ;;  %1477 = vrcp.f32 %v842_v4  ;;  %v845_v35 = vadd.f32 1.0, %v1450_v33 }
 0x117   : > { %v1454_v36 = vpop.eup %1453  ;;  %1479 = vrcp.f32 %v829_v9  ;;  %v828_v41 = vadd.f32 1.0, %v1452_v6  ;;  %v956_v6 = vld [vmem:[%s1773_s16 + $0x70] sm:$0xff] }
 0x118   : > { %v1456_v37 = vpop.eup %1455  ;;  %1481 = vrcp.f32 %v845_v35  ;;  %v844_v42 = vadd.f32 1.0, %v1454_v36 }
 0x119   : > { %v1458_v48 = vpop.eup %1457  ;;  %v919_v14 = vmul.f32 %v1456_v37, %v1750_v12  ;;  %1483 = vrcp.f32 %v828_v41  ;;  %v972_v37 = vld [vmem:[%s1773_s16 + $0xf0] sm:$0xff] }
 0x11a   : > { %v1460_v43 = vpop.eup %1459  ;;  %v935_v31 = vmul.f32 %v1458_v48, %v1753_v23  ;;  %1485 = vrcp.f32 %v844_v42 }
 0x11b   : > { %v1462_v55 = vpop.eup %1461  ;;  %v983_v44 = vadd.f32 %v951_v19, %v919_v14  ;;  %v918_v54 = vmul.f32 %v1460_v43, %v1756_v28 }
 0x11c   : > { %v1464_v46 = vpop.eup %1463  ;;  %v999_v58 = vadd.f32 %v967_v38, %v935_v31  ;;  %v934_v12 = vmul.f32 %v1462_v55, %v1760_v39  ;;  %v952_v39 = vld [vmem:[%s1773_s16 + $0x50] sm:$0xff] }
 0x11d   : > { %v1466_v60 = vpop.eup %1465  ;;  %1016 = vst.msk [vmem:[%s1802_s22 + $0x48] sm:$0xff] %vm1006_vm1, %v983_v44  ;;  %v982_v23 = vadd.f32 %v950_v51, %v918_v54  ;;  %v921_v20 = vmul.f32 %v1464_v46, %v1763_v40  ;;  %v968_v40 = vld [vmem:[%s1773_s16 + $0xd0] sm:$0xff] }
 0x11e   : > { %v1468_v63 = vpop.eup %1467  ;;  %1032 = vst.msk [vmem:[%s1802_s22 + $0xc8] sm:$0xff] %vm1006_vm1, %v999_v58  ;;  %v998_v28 = vadd.f32 %v966_v15, %v934_v12  ;;  %v937_v49 = vmul.f32 %v1466_v60, %v1767_v47  ;;  %v955_v47 = vld [vmem:[%s1773_s16 + $0x68] sm:$0xff] }
 0x11f   : > { %v1470_v0 = vpop.eup %1469  ;;  %1015 = vst.msk [vmem:[%s1802_s22 + $0x40] sm:$0xff] %vm1006_vm1, %v982_v23  ;;  %v985_v1 = vadd.f32 %v953_v45, %v921_v20  ;;  %v920_v21 = vmul.f32 %v1468_v63, %v1777_v53  ;;  %v971_v53 = vld [vmem:[%s1773_s16 + $0xe8] sm:$0xff] }
 0x120   : > { %v1472_v50 = vpop.eup %1471  ;;  %1031 = vst.msk [vmem:[%s1802_s22 + $0xc0] sm:$0xff] %vm1006_vm1, %v998_v28  ;;  %v1001_v2 = vadd.f32 %v969_v52, %v937_v49  ;;  %v936_v61 = vmul.f32 %v1470_v0, %v1780_v56  ;;  %v954_v56 = vld [vmem:[%s1773_s16 + $0x60] sm:$0xff] }
 0x121   : > { %v1474_v7 = vpop.eup %1473  ;;  %1018 = vst.msk [vmem:[%s1802_s22 + $0x58] sm:$0xff] %vm1006_vm1, %v985_v1  ;;  %v984_v8 = vadd.f32 %v952_v39, %v920_v21  ;;  %v923_v25 = vmul.f32 %v1472_v50, %v1783_v57  ;;  %v970_v57 = vld [vmem:[%s1773_s16 + $0xe0] sm:$0xff] }
 0x122   : > { %v1476_v62 = vpop.eup %1475  ;;  %1034 = vst.msk [vmem:[%s1802_s22 + $0xd8] sm:$0xff] %vm1006_vm1, %v1001_v2  ;;  %v1000_v16 = vadd.f32 %v968_v40, %v936_v61  ;;  %v939_v17 = vmul.f32 %v1474_v7, %v1790_v5  ;;  %v957_v5 = vld [vmem:[%s1773_s16 + $0x78] sm:$0xff] }
 0x123   : > { %v1478_v26 = vpop.eup %1477  ;;  %1017 = vst.msk [vmem:[%s1802_s22 + $0x50] sm:$0xff] %vm1006_vm1, %v984_v8  ;;  %v987_v3 = vadd.f32 %v955_v47, %v923_v25  ;;  %v922_v22 = vmul.f32 %v1476_v62, %v1796_v13  ;;  %v973_v13 = vld [vmem:[%s1773_s16 + $0xf8] sm:$0xff] }
 0x124   : > { %v1480_v24 = vpop.eup %1479  ;;  %1033 = vst.msk [vmem:[%s1802_s22 + $0xd0] sm:$0xff] %vm1006_vm1, %v1000_v16  ;;  %v1003_v32 = vadd.f32 %v971_v53, %v939_v17  ;;  %v938_v11 = vmul.f32 %v1478_v26, %v1813_v34 }
 0x125   : > { %v1482_v29 = vpop.eup %1481  ;;  %1020 = vst.msk [vmem:[%s1802_s22 + $0x68] sm:$0xff] %vm1006_vm1, %v987_v3  ;;  %v986_v30 = vadd.f32 %v954_v56, %v922_v22  ;;  %v925_v4 = vmul.f32 %v1480_v24, %v1828_v59 }
 0x126   : > { %v1484_v33 = vpop.eup %1483  ;;  %1036 = vst.msk [vmem:[%s1802_s22 + $0xe8] sm:$0xff] %vm1006_vm1, %v1003_v32  ;;  %v1002_v9 = vadd.f32 %v970_v57, %v938_v11  ;;  %v941_v34 = vmul.f32 %v1482_v29, %v1840_v10 }
 0x127   : > { %v1486_v35 = vpop.eup %1485  ;;  %1019 = vst.msk [vmem:[%s1802_s22 + $0x60] sm:$0xff] %vm1006_vm1, %v986_v30  ;;  %v989_v36 = vadd.f32 %v957_v5, %v925_v4  ;;  %v924_v41 = vmul.f32 %v1484_v33, %v1847_v18 }
 0x128   : > { %1035 = vst.msk [vmem:[%s1802_s22 + $0xe0] sm:$0xff] %vm1006_vm1, %v1002_v9  ;;  %v1005_v59 = vadd.f32 %v973_v13, %v941_v34  ;;  %v940_v19 = vmul.f32 %v1486_v35, %v1854_v27 }
 0x129   : > { %1022 = vst.msk [vmem:[%s1802_s22 + $0x78] sm:$0xff] %vm1006_vm1, %v989_v36  ;;  %v988_v42 = vadd.f32 %v956_v6, %v924_v41 }
 0x12a   : > { %1038 = vst.msk [vmem:[%s1802_s22 + $0xf8] sm:$0xff] %vm1006_vm1, %v1005_v59  ;;  %v1004_v48 = vadd.f32 %v972_v37, %v940_v19 }
 0x12b   : > { %1021 = vst.msk [vmem:[%s1802_s22 + $0x70] sm:$0xff] %vm1006_vm1, %v988_v42 }
 0x12c   : > { %1037 = vst.msk [vmem:[%s1802_s22 + $0xf0] sm:$0xff] %vm1006_vm1, %v1004_v48 }
 0x12d PF: > { %s15_s20 = sadd.s32 1, %s1509_s20   ;;  %s1971_s18 = smov %s1505_s19 }
 0x12e   : > { %p12_p5 = scmp.ge.s32.totalorder %s15_s20, 4   ;;  %s1972_s19 = smov %s1974_s21 }
 0x130   :  { %14 = sbr.rel (!%p12_p5) target bundleno = 2 (0x2), region = 76 }

// kernel: bottleneck_forward.2
= control target key start
LH: loop header
LB: loop body
LE: loop exit
PB: predicated region body
PF: predicated region fallthrough
CT: control target
= control target key end

     0   :  { %s3033_s21 = smov 0   ;;  %s3035_s22 = smov 0   ;;  %s4587_s0 = inlined_call_operand.vmem [shape: f32[2,256,8], index: 0, kind: input, shape index: {}]   ;;  %s4588_s1 = inlined_call_operand.vmem [shape: f32[8,32], index: 1, kind: input, shape index: {}]   ;;  %s4589_s2 = inlined_call_operand.vmem [shape: f32[1,32], index: 2, kind: input, shape index: {}]   ;;  %s4590_s3 = inlined_call_operand.vmem [shape: f32[9,32], index: 3, kind: input, shape index: {}]   ;;  %s4591_s4 = inlined_call_operand.vmem [shape: f32[1,32], index: 4, kind: input, shape index: {}]   ;;  %s4592_s5 = inlined_call_operand.vmem [shape: f32[2,16,16,32], index: 5, kind: output, shape index: {0}]   ;;  %s4593_s6 = inlined_call_operand.vmem [shape: f32[2,1,32], index: 6, kind: output, shape index: {1}]  }
   0x1   :  { %s3037_s23 = smov 0  }
   0x2 LB: > { %s29_s24 = sadd.s32 1, %s2991_s22  ;;  %p2468_p0 = scmp.ge.s32.totalorder %s2995_s23, 1  ;;  %s2995_s23 = sphi %s3037_s23, %s17_s23   ;;  %s2991_s22 = sphi %s3035_s22, %s4707_s22   ;;  %s2987_s21 = sphi %s3033_s21, %s4706_s21  }
   0x3   : > { %p31_p1 = scmp.ge.s32.totalorder %s29_s24, 2  ;;  %p265_p2 = scmp.lt.s32.totalorder %s2995_s23, 3 }
   0x5   : > { %s4709_s24 = smov (%p31_p1, %s29_s24), 0  ;;  %p266_p3 = pnand %p2468_p0, %p265_p2 }
   0x7   : > { %269 = sbr.rel (%p266_p3) target bundleno = 536 (0x218), region = 40 }
   0xc   : > { %v429_v0 = vld [vmem:[%s4588_s1] sm:$0xff]  ;;  %p318_p4 = scmp.lt.s32.totalorder %s2987_s21, 1  ;;  %vm351_vm0 = vcmask 261120   ;;  %vm360_vm1 = vcmask 253952   ;;  %v2997_v1 = vmov 0.0   ;;  %vm437_vm2 = vcmask 64512  }
   0xd   : > { %2617 = vmatprep.subr.mxu0 %v429_v0  ;;  %2667 = vmatprep.subr.mxu1 %v429_v0  ;;  %380 = vst.msk [vmem:[#allocation2 + $0x29] sm:$0x1] %vm360_vm1, %v2997_v1  ;;  %362 = vst.msk [vmem:[#allocation2 + $0x18] sm:$0x1] %vm360_vm1, %v2997_v1  ;;  %vm354_vm3 = vcmask 254976  }
   0xe   : > { %352 = vst.msk [vmem:[#allocation2] sm:$0xff] %vm351_vm0, %v2997_v1  ;;  %353 = vst.msk [vmem:[#allocation2 + $0x8] sm:$0xff] %vm351_vm0, %v2997_v1  ;;  %2618 = vmatpush3.msra.mxu0 %v429_v0  ;;  %2668 = vmatpush3.msra.mxu1 %v429_v0  ;;  %s4711_s21 = smov (!%p318_p4, %s2987_s21), 1  ;;  %v3219_v34 = vld [vmem:[%s4589_s2] ss:$0 sm:$0xff] }
   0xf   : > { %357 = vst.msk [vmem:[#allocation2 + $0x198] sm:$0xff] %vm351_vm0, %v2997_v1  ;;  %358 = vst.msk [vmem:[#allocation2 + $0x1a0] sm:$0xff] %vm351_vm0, %v2997_v1  ;;  %s2582_s27 = sshll.u32 %s4711_s21, 8  ;;  %s350_s16 = scalar_lea.vmem %s4593_s6, %s4711_s21 }
  0x10   : > { %363 = vst.msk [vmem:[#allocation2 + $0x30] sm:$0x1] %vm360_vm1, %v2997_v1  ;;  %364 = vst.msk [vmem:[#allocation2 + $0x48] sm:$0x1] %vm360_vm1, %v2997_v1  ;;  %s3144_s30 = scalar_lea.vmem %s4587_s0, %s2582_s27  ;;  %s3604_s12 = scalar_lea.vmem %s4592_s5, %s2582_s27 }
  0x11   : > { %365 = vst.msk [vmem:[#allocation2 + $0x60] sm:$0x1] %vm360_vm1, %v2997_v1  ;;  %366 = vst.msk [vmem:[#allocation2 + $0x78] sm:$0x1] %vm360_vm1, %v2997_v1  ;;  %v397_v2 = vld [vmem:[%s3144_s30] sm:$0xff]  ;;  %v398_v4 = vld [vmem:[%s3144_s30 + $0x8] sm:$0xff] }
  0x12   : > { %367 = vst.msk [vmem:[#allocation2 + $0x90] sm:$0x1] %vm360_vm1, %v2997_v1  ;;  %368 = vst.msk [vmem:[#allocation2 + $0xa8] sm:$0x1] %vm360_vm1, %v2997_v1  ;;  %v413_v3 = vld [vmem:[%s3144_s30 + $0x80] sm:$0xff]  ;;  %2619 = vmatprep.mubr.msk.f32.mxu0 %vm437_vm2, %v397_v2  ;;  %v414_v5 = vld [vmem:[%s3144_s30 + $0x88] sm:$0xff] }
  0x13   : > { %369 = vst.msk [vmem:[#allocation2 + $0xc0] sm:$0x1] %vm360_vm1, %v2997_v1  ;;  %370 = vst.msk [vmem:[#allocation2 + $0xd8] sm:$0x1] %vm360_vm1, %v2997_v1  ;;  %2643 = vmatprep.mubr.msk.f32.mxu1 %vm437_vm2, %v413_v3  ;;  %v399_v6 = vld [vmem:[%s3144_s30 + $0x10] sm:$0xff]  ;;  %2620 = vmatmul.mubr.msk.f32.vlgmr.msra.gmra.mxu0 %vm437_vm2, %v398_v4  ;;  %v400_v8 = vld [vmem:[%s3144_s30 + $0x18] sm:$0xff] }
  0x14   : > { %371 = vst.msk [vmem:[#allocation2 + $0xf0] sm:$0x1] %vm360_vm1, %v2997_v1  ;;  %372 = vst.msk [vmem:[#allocation2 + $0x108] sm:$0x1] %vm360_vm1, %v2997_v1  ;;  %v415_v7 = vld [vmem:[%s3144_s30 + $0x90] sm:$0xff]  ;;  %2644 = vmatmul.mubr.msk.f32.vlgmr.msra.gmra.mxu1 %vm437_vm2, %v414_v5  ;;  %2622 = vmatprep.mubr.msk.f32.mxu0 %vm437_vm2, %v399_v6  ;;  %v416_v9 = vld [vmem:[%s3144_s30 + $0x98] sm:$0xff] }
  0x15   : > { %373 = vst.msk [vmem:[#allocation2 + $0x120] sm:$0x1] %vm360_vm1, %v2997_v1  ;;  %374 = vst.msk [vmem:[#allocation2 + $0x138] sm:$0x1] %vm360_vm1, %v2997_v1  ;;  %2646 = vmatprep.mubr.msk.f32.mxu1 %vm437_vm2, %v415_v7  ;;  %v401_v10 = vld [vmem:[%s3144_s30 + $0x20] sm:$0xff]  ;;  %v402_v12 = vld [vmem:[%s3144_s30 + $0x28] sm:$0xff] }
  0x16   : > { %375 = vst.msk [vmem:[#allocation2 + $0x150] sm:$0x1] %vm360_vm1, %v2997_v1  ;;  %376 = vst.msk [vmem:[#allocation2 + $0x168] sm:$0x1] %vm360_vm1, %v2997_v1  ;;  %v417_v11 = vld [vmem:[%s3144_s30 + $0xa0] sm:$0xff]  ;;  %v418_v13 = vld [vmem:[%s3144_s30 + $0xa8] sm:$0xff] }
  0x17   : > { %377 = vst.msk [vmem:[#allocation2 + $0x180] sm:$0x1] %vm360_vm1, %v2997_v1  ;;  %381 = vst.msk [vmem:[#allocation2 + $0x41] sm:$0x1] %vm360_vm1, %v2997_v1  ;;  %2623 = vmatmul.mubr.msk.f32.gmra.mxu0 %vm437_vm2, %v400_v8  ;;  %v403_v14 = vld [vmem:[%s3144_s30 + $0x30] sm:$0xff]  ;;  %v404_v16 = vld [vmem:[%s3144_s30 + $0x38] sm:$0xff] }
  0x18   : > { %382 = vst.msk [vmem:[#allocation2 + $0x59] sm:$0x1] %vm360_vm1, %v2997_v1  ;;  %383 = vst.msk [vmem:[#allocation2 + $0x71] sm:$0x1] %vm360_vm1, %v2997_v1  ;;  %2647 = vmatmul.mubr.msk.f32.gmra.mxu1 %vm437_vm2, %v416_v9  ;;  %2625 = vmatprep.mubr.msk.f32.mxu0 %vm437_vm2, %v401_v10  ;;  %v419_v15 = vld [vmem:[%s3144_s30 + $0xb0] sm:$0xff]  ;;  %v420_v17 = vld [vmem:[%s3144_s30 + $0xb8] sm:$0xff] }
  0x19   : > { %384 = vst.msk [vmem:[#allocation2 + $0x89] sm:$0x1] %vm360_vm1, %v2997_v1  ;;  %385 = vst.msk [vmem:[#allocation2 + $0xa1] sm:$0x1] %vm360_vm1, %v2997_v1  ;;  %2649 = vmatprep.mubr.msk.f32.mxu1 %vm437_vm2, %v417_v11  ;;  %v405_v18 = vld [vmem:[%s3144_s30 + $0x40] sm:$0xff]  ;;  %v406_v20 = vld [vmem:[%s3144_s30 + $0x48] sm:$0xff] }
  0x1a   : > { %386 = vst.msk [vmem:[#allocation2 + $0xb9] sm:$0x1] %vm360_vm1, %v2997_v1  ;;  %387 = vst.msk [vmem:[#allocation2 + $0xd1] sm:$0x1] %vm360_vm1, %v2997_v1  ;;  %v421_v19 = vld [vmem:[%s3144_s30 + $0xc0] sm:$0xff]  ;;  %v422_v21 = vld [vmem:[%s3144_s30 + $0xc8] sm:$0xff] }
  0x1b   : > { %388 = vst.msk [vmem:[#allocation2 + $0xe9] sm:$0x1] %vm360_vm1, %v2997_v1  ;;  %389 = vst.msk [vmem:[#allocation2 + $0x101] sm:$0x1] %vm360_vm1, %v2997_v1  ;;  %2626 = vmatmul.mubr.msk.f32.gmra.mxu0 %vm437_vm2, %v402_v12  ;;  %v407_v22 = vld [vmem:[%s3144_s30 + $0x50] sm:$0xff]  ;;  %v408_v24 = vld [vmem:[%s3144_s30 + $0x58] sm:$0xff] }
  0x1c   : > { %390 = vst.msk [vmem:[#allocation2 + $0x119] sm:$0x1] %vm360_vm1, %v2997_v1  ;;  %391 = vst.msk [vmem:[#allocation2 + $0x131] sm:$0x1] %vm360_vm1, %v2997_v1  ;;  %2650 = vmatmul.mubr.msk.f32.gmra.mxu1 %vm437_vm2, %v418_v13  ;;  %2628 = vmatprep.mubr.msk.f32.mxu0 %vm437_vm2, %v403_v14  ;;  %v423_v23 = vld [vmem:[%s3144_s30 + $0xd0] sm:$0xff]  ;;  %v424_v25 = vld [vmem:[%s3144_s30 + $0xd8] sm:$0xff] }
  0x1d   : > { %392 = vst.msk [vmem:[#allocation2 + $0x149] sm:$0x1] %vm360_vm1, %v2997_v1  ;;  %393 = vst.msk [vmem:[#allocation2 + $0x161] sm:$0x1] %vm360_vm1, %v2997_v1  ;;  %2652 = vmatprep.mubr.msk.f32.mxu1 %vm437_vm2, %v419_v15  ;;  %v409_v26 = vld [vmem:[%s3144_s30 + $0x60] sm:$0xff]  ;;  %v410_v28 = vld [vmem:[%s3144_s30 + $0x68] sm:$0xff] }
  0x1e   : > { %394 = vst.msk [vmem:[#allocation2 + $0x179] sm:$0x1] %vm360_vm1, %v2997_v1  ;;  %395 = vst.msk [vmem:[#allocation2 + $0x191] sm:$0x1] %vm360_vm1, %v2997_v1  ;;  %v425_v27 = vld [vmem:[%s3144_s30 + $0xe0] sm:$0xff]  ;;  %v426_v29 = vld [vmem:[%s3144_s30 + $0xe8] sm:$0xff] }
  0x1f   : > { %361 = vst.msk [vmem:[#allocation2] sm:$0x1] %vm360_vm1, %v2997_v1  ;;  %378 = vst.msk [vmem:[#allocation2 + $0x198] sm:$0x1] %vm360_vm1, %v2997_v1  ;;  %2629 = vmatmul.mubr.msk.f32.gmra.mxu0 %vm437_vm2, %v404_v16  ;;  %v411_v30 = vld [vmem:[%s3144_s30 + $0x70] sm:$0xff]  ;;  %v412_v32 = vld [vmem:[%s3144_s30 + $0x78] sm:$0xff] }
  0x20   : > { %2653 = vmatmul.mubr.msk.f32.gmra.mxu1 %vm437_vm2, %v420_v17  ;;  %2631 = vmatprep.mubr.msk.f32.mxu0 %vm437_vm2, %v405_v18  ;;  %v427_v31 = vld [vmem:[%s3144_s30 + $0xf0] sm:$0xff]  ;;  %v428_v33 = vld [vmem:[%s3144_s30 + $0xf8] sm:$0xff]  ;;  %355 = vst.msk [vmem:[#allocation2 + $0x10] sm:$0x3] %vm354_vm3, %v2997_v1  ;;  %359 = vst.msk [vmem:[#allocation2 + $0x1a8] sm:$0x3] %vm354_vm3, %v2997_v1 }
  0x21   : > { %2655 = vmatprep.mubr.msk.f32.mxu1 %vm437_vm2, %v421_v19  ;;  %379 = vst.msk [vmem:[#allocation2 + $0x11] sm:$0x1] %vm360_vm1, %v2997_v1  ;;  %396 = vst.msk [vmem:[#allocation2 + $0x1a9] sm:$0x1] %vm360_vm1, %v2997_v1 }
  0x23   : > { %2632 = vmatmul.mubr.msk.f32.gmra.mxu0 %vm437_vm2, %v406_v20 }
  0x24   : > { %2656 = vmatmul.mubr.msk.f32.gmra.mxu1 %vm437_vm2, %v422_v21  ;;  %2634 = vmatprep.mubr.msk.f32.mxu0 %vm437_vm2, %v407_v22 }
  0x25   : > { %2658 = vmatprep.mubr.msk.f32.mxu1 %vm437_vm2, %v423_v23 }
  0x27   : > { %2635 = vmatmul.mubr.msk.f32.gmra.mxu0 %vm437_vm2, %v408_v24 }
  0x28   : > { %2659 = vmatmul.mubr.msk.f32.gmra.mxu1 %vm437_vm2, %v424_v25  ;;  %2637 = vmatprep.mubr.msk.f32.mxu0 %vm437_vm2, %v409_v26 }
  0x29   : > { %2661 = vmatprep.mubr.msk.f32.mxu1 %vm437_vm2, %v425_v27 }
  0x2b   : > { %2638 = vmatmul.mubr.msk.f32.gmra.mxu0 %vm437_vm2, %v410_v28 }
  0x2c   : > { %2662 = vmatmul.mubr.msk.f32.gmra.mxu1 %vm437_vm2, %v426_v29  ;;  %2640 = vmatprep.mubr.msk.f32.mxu0 %vm437_vm2, %v411_v30 }
  0x2d   : > { %2664 = vmatprep.mubr.msk.f32.mxu1 %vm437_vm2, %v427_v31 }
  0x2f   : > { %2641 = vmatmul.mubr.msk.f32.gmra.mxu0 %vm437_vm2, %v412_v32 }
  0x30   : > { %2665 = vmatmul.mubr.msk.f32.gmra.mxu1 %vm437_vm2, %v428_v33 }
  0xd3   : > { %v2621_v35 = vpop.f32.mrf.mxu0 }
  0xd4   : > { %v2645_v36 = vpop.f32.mrf.mxu1  ;;  %v3222_v37 = vadd.f32 %v2621_v35, %v3219_v34 }
  0xd5   : > { %v3225_v38 = vadd.f32 %v2645_v36, %v3219_v34  ;;  %v600_v39 = vpop.f32.mrf.mxu0 }
  0xd6   : > { %v680_v40 = vpop.f32.mrf.mxu1  ;;  %v2507_v41 = vmul.f32 -1.442695, %v3222_v37  ;;  %v3230_v43 = vadd.f32 %v3219_v34, %v600_v39 }
  0xd7   : > { %v2523_v42 = vmul.f32 -1.442695, %v3225_v38  ;;  %v3233_v44 = vadd.f32 %v3219_v34, %v680_v40  ;;  %v2624_v45 = vpop.f32.mrf.mxu0 }
  0xd8   : > { %v2648_v46 = vpop.f32.mrf.mxu1  ;;  %2694 = vpow2.f32 %v2507_v41  ;;  %v2506_v47 = vmul.f32 -1.442695, %v3230_v43  ;;  %v3238_v49 = vadd.f32 %v2624_v45, %v3219_v34 }
  0xd9   : > { %v2522_v48 = vmul.f32 -1.442695, %v3233_v44  ;;  %2696 = vpow2.f32 %v2523_v42  ;;  %v3241_v50 = vadd.f32 %v2648_v46, %v3219_v34  ;;  %v610_v51 = vpop.f32.mrf.mxu0  ;;  %v3286_v42 = vld [vmem:[%s4590_s3 + $0x1] ss:$0 sm:$0xff] }
  0xda   : > { %v690_v52 = vpop.f32.mrf.mxu1  ;;  %2698 = vpow2.f32 %v2506_v47  ;;  %v2509_v53 = vmul.f32 -1.442695, %v3238_v49  ;;  %v3245_v54 = vadd.f32 %v3219_v34, %v610_v51  ;;  %v3293_v51 = vld [vmem:[%s4590_s3] ss:$0 sm:$0xff] }
  0xdb   : > { %v3248_v55 = vadd.f32 %v3219_v34, %v690_v52  ;;  %2700 = vpow2.f32 %v2522_v48  ;;  %v2525_v56 = vmul.f32 -1.442695, %v3241_v50  ;;  %v2627_v57 = vpop.f32.mrf.mxu0  ;;  %v1016_v48 = vld [vmem:[#allocation2] sm:$0xff] }
  0xdc   : > { %v2651_v58 = vpop.f32.mrf.mxu1  ;;  %2702 = vpow2.f32 %v2509_v53  ;;  %v2508_v59 = vmul.f32 -1.442695, %v3245_v54  ;;  %v3254_v61 = vadd.f32 %v2627_v57, %v3219_v34  ;;  %v1117_v52 = vld [vmem:[#allocation2 + $0x1] sm:$0xff] }
  0xdd   : > { %v2524_v60 = vmul.f32 -1.442695, %v3248_v55  ;;  %2704 = vpow2.f32 %v2525_v56  ;;  %v3257_v62 = vadd.f32 %v2651_v58, %v3219_v34  ;;  %v620_v8 = vpop.f32.mrf.mxu0 }
  0xde   : > { %2706 = vpow2.f32 %v2508_v59  ;;  %v2511_v63 = vmul.f32 -1.442695, %v3254_v61  ;;  %v700_v11 = vpop.f32.mrf.mxu1  ;;  %v3262_v25 = vadd.f32 %v3219_v34, %v620_v8  ;;  %v1118_v59 = vld [vmem:[#allocation2 + $0x9] sm:$0xff] }
  0xdf   : > { %2708 = vpow2.f32 %v2524_v60  ;;  %v2527_v0 = vmul.f32 -1.442695, %v3257_v62  ;;  %v2630_v18 = vpop.f32.mrf.mxu0  ;;  %v3265_v26 = vadd.f32 %v3219_v34, %v700_v11 }
  0xe0   : > { %2710 = vpow2.f32 %v2511_v63  ;;  %v2654_v21 = vpop.f32.mrf.mxu1  ;;  %v3268_v28 = vadd.f32 %v2630_v18, %v3219_v34  ;;  %v2510_v31 = vmul.f32 -1.442695, %v3262_v25 }
  0xe1   : > { %2712 = vpow2.f32 %v2527_v0  ;;  %v630_v27 = vpop.f32.mrf.mxu0  ;;  %v3271_v30 = vadd.f32 %v2654_v21, %v3219_v34  ;;  %v2526_v33 = vmul.f32 -1.442695, %v3265_v26  ;;  %v1053_v0 = vmul.f32 %v3293_v51, %v1016_v48 }
  0xe2   : > { %v710_v29 = vpop.f32.mrf.mxu1  ;;  %v3275_v32 = vadd.f32 %v3219_v34, %v630_v27  ;;  %v2513_v39 = vmul.f32 -1.442695, %v3268_v28 }
  0xe3   : > { %v3279_v35 = vadd.f32 %v3219_v34, %v710_v29  ;;  %v2529_v45 = vmul.f32 -1.442695, %v3271_v30 }
  0xe5   : > { %v2695_v1 = vpop.eup %2694  ;;  %v2528_v57 = vmul.f32 -1.442695, %v3279_v35 }
  0xe6   : > { %v2697_v2 = vpop.eup %2696  ;;  %v856_v3 = vadd.f32 1.0, %v2695_v1  ;;  %v1154_v1 = vmul.f32 %v3286_v42, %v1117_v52 }
  0xe7   : > { %v2699_v4 = vpop.eup %2698  ;;  %v872_v5 = vadd.f32 1.0, %v2697_v2 }
  0xe8   : > { %v2701_v6 = vpop.eup %2700  ;;  %2714 = vrcp.f32 %v856_v3  ;;  %v855_v7 = vadd.f32 1.0, %v2699_v4  ;;  %v3308_v3 = vld [vmem:[%s4590_s3 + $0x2] ss:$0 sm:$0xff] }
  0xe9   : > { %v2703_v9 = vpop.eup %2702  ;;  %2716 = vrcp.f32 %v872_v5  ;;  %v871_v10 = vadd.f32 1.0, %v2701_v6  ;;  %v1218_v4 = vld [vmem:[#allocation2 + $0x2] sm:$0xff] }
  0xea   : > { %v2705_v12 = vpop.eup %2704  ;;  %2718 = vrcp.f32 %v855_v7  ;;  %v858_v13 = vadd.f32 1.0, %v2703_v9  ;;  %v1155_v7 = vmul.f32 %v3286_v42, %v1118_v59  ;;  %v1219_v9 = vld [vmem:[#allocation2 + $0xa] sm:$0xff] }
  0xeb   : > { %v2707_v14 = vpop.eup %2706  ;;  %2720 = vrcp.f32 %v871_v10  ;;  %v874_v15 = vadd.f32 1.0, %v2705_v12  ;;  %v1186_v12 = vadd.f32 %v1154_v1, %v1053_v0 }
  0xec   : > { %v2709_v16 = vpop.eup %2708  ;;  %2722 = vrcp.f32 %v858_v13  ;;  %v857_v17 = vadd.f32 1.0, %v2707_v14 }
  0xed   : > { %v2711_v19 = vpop.eup %2710  ;;  %2724 = vrcp.f32 %v874_v15  ;;  %v873_v20 = vadd.f32 1.0, %v2709_v16  ;;  %v1256_v15 = vmul.f32 %v3308_v3, %v1219_v9  ;;  %v3327_v16 = vld [vmem:[%s4590_s3 + $0x3] ss:$0 sm:$0xff] }
  0xee   : > { %v2713_v22 = vpop.eup %2712  ;;  %2726 = vrcp.f32 %v857_v17  ;;  %v860_v23 = vadd.f32 1.0, %v2711_v19 }
  0xef   : > { %2728 = vrcp.f32 %v873_v20  ;;  %v876_v24 = vadd.f32 1.0, %v2713_v22 }
  0xf0   : > { %2730 = vrcp.f32 %v860_v23 }
  0xf1   : > { %2732 = vrcp.f32 %v876_v24 }
  0xf2   : > { %2734 = vpow2.f32 %v2510_v31  ;;  %v3344_v31 = vld [vmem:[%s4590_s3 + $0x4] ss:$0 sm:$0xff] }
  0xf3   : > { %2736 = vpow2.f32 %v2526_v33 }
  0xf4   : > { %2738 = vpow2.f32 %v2513_v39 }
  0xf5   : > { %v2715_v36 = vpop.eup %2714  ;;  %2740 = vpow2.f32 %v2529_v45  ;;  %v2633_v45 = vpop.f32.mrf.mxu0 }
  0xf6   : > { %v2717_v40 = vpop.eup %2716  ;;  %v952_v41 = vmul.f32 %v2715_v36, %v3222_v37  ;;  %v2512_v37 = vmul.f32 -1.442695, %v3275_v32 }
  0xf7   : > { %v2719_v46 = vpop.eup %2718  ;;  %v968_v47 = vmul.f32 %v2717_v40, %v3225_v38  ;;  %v1017_v38 = vld [vmem:[#allocation2 + $0x8] sm:$0xff]  ;;  %v640_v0 = vpop.f32.mrf.mxu0 }
  0xf8   : > { %v2721_v53 = vpop.eup %2720  ;;  %985 = vst.msk [vmem:[#allocation2 + $0x21] sm:$0xff] %vm351_vm0, %v952_v41  ;;  %v951_v56 = vmul.f32 %v2719_v46, %v3230_v43  ;;  %2742 = vpow2.f32 %v2512_v37  ;;  %v1054_v6 = vmul.f32 %v3293_v51, %v1017_v38 }
  0xf9   : > { %v2723_v58 = vpop.eup %2722  ;;  %1001 = vst.msk [vmem:[#allocation2 + $0xe1] sm:$0xff] %vm351_vm0, %v968_v47  ;;  %v967_v60 = vmul.f32 %v2721_v53, %v3233_v44  ;;  %2744 = vpow2.f32 %v2528_v57  ;;  %v2636_v9 = vpop.f32.mrf.mxu0 }
  0xfa   : > { %v2725_v63 = vpop.eup %2724  ;;  %984 = vst.msk [vmem:[#allocation2 + $0x19] sm:$0xff] %vm351_vm0, %v951_v56  ;;  %v954_v43 = vmul.f32 %v2723_v58, %v3238_v49  ;;  %v2657_v56 = vpop.f32.mrf.mxu1  ;;  %v3356_v58 = vld [vmem:[%s4590_s3 + $0x5] ss:$0 sm:$0xff] }
  0xfb   : > { %v2727_v2 = vpop.eup %2726  ;;  %1000 = vst.msk [vmem:[#allocation2 + $0xd9] sm:$0xff] %vm351_vm0, %v967_v60  ;;  %v970_v44 = vmul.f32 %v2725_v63, %v3241_v50  ;;  %v1255_v50 = vmul.f32 %v3308_v3, %v1218_v4 }
  0xfc   : > { %v2729_v5 = vpop.eup %2728  ;;  %987 = vst.msk [vmem:[#allocation2 + $0x39] sm:$0xff] %vm351_vm0, %v954_v43  ;;  %v953_v49 = vmul.f32 %v2727_v2, %v3245_v54  ;;  %v1187_v54 = vadd.f32 %v1155_v7, %v1054_v6 }
  0xfd   : > { %v2731_v8 = vpop.eup %2730  ;;  %1003 = vst.msk [vmem:[#allocation2 + $0xf9] sm:$0xff] %vm351_vm0, %v970_v44  ;;  %v969_v10 = vmul.f32 %v2729_v5, %v3248_v55  ;;  %v720_v44 = vpop.f32.mrf.mxu1  ;;  %v3369_v5 = vld [vmem:[%s4590_s3 + $0x6] ss:$0 sm:$0xff] }
  0xfe   : > { %v2733_v11 = vpop.eup %2732  ;;  %986 = vst.msk [vmem:[#allocation2 + $0x31] sm:$0xff] %vm351_vm0, %v953_v49  ;;  %v956_v13 = vmul.f32 %v2731_v8, %v3254_v61  ;;  %v1287_v61 = vadd.f32 %v1255_v50, %v1186_v12  ;;  %v1288_v19 = vadd.f32 %v1256_v15, %v1187_v54  ;;  %4626 = vst [vmem:[#allocation3_spill] sm:$0xff] %v3369_v5 }
  0xff   : > { %1002 = vst.msk [vmem:[#allocation2 + $0xf1] sm:$0xff] %vm351_vm0, %v969_v10  ;;  %v972_v14 = vmul.f32 %v2733_v11, %v3257_v62  ;;  %v2735_v18 = vpop.eup %2734  ;;  %v3339_v29 = vld [vmem:[#allocation2 + $0x21] sm:$0xff]  ;;  %v3387_v50 = vadd.f32 %v2633_v45, %v3219_v34  ;;  %v3394_v15 = vadd.f32 %v2657_v56, %v3219_v34  ;;  %v3424_v45 = vld [vmem:[%s4591_s4] ss:$0 sm:$0xff] }
 0x100   : > { %989 = vst.msk [vmem:[#allocation2 + $0x51] sm:$0xff] %vm351_vm0, %v956_v13  ;;  %v2737_v21 = vpop.eup %2736  ;;  %v859_v33 = vadd.f32 1.0, %v2735_v18  ;;  %v1458_v52 = vmul.f32 %v3344_v31, %v3339_v29  ;;  %v3351_v57 = vld [vmem:[#allocation2 + $0x22] sm:$0xff] }
 0x101   : > { %v3330_v55 = vld [vmem:[#allocation2 + $0x18] sm:$0xff]  ;;  %v3332_v17 = vld [vmem:[#allocation2 + $0x20] sm:$0xff]  ;;  %1005 = vst.msk [vmem:[#allocation2 + $0x111] sm:$0xff] %vm351_vm0, %v972_v14  ;;  %v2739_v23 = vpop.eup %2738  ;;  %v875_v41 = vadd.f32 1.0, %v2737_v21  ;;  %v1559_v43 = vmul.f32 %v3356_v58, %v3351_v57  ;;  %v3402_v18 = vld [vmem:[%s4590_s3 + $0x8] ss:$0 sm:$0xff]  ;;  %v3407_v21 = vadd.f32 %v3219_v34, %v720_v44 }
 0x102   : > { %v1356_v62 = vmul.f32 %v3327_v16, %v3330_v55  ;;  %v1357_v20 = vmul.f32 %v3327_v16, %v3332_v17  ;;  %v1119_v22 = vld [vmem:[#allocation2 + $0x19] sm:$0xff]  ;;  %v2741_v27 = vpop.eup %2740  ;;  %v862_v48 = vadd.f32 1.0, %v2739_v23  ;;  %2746 = vrcp.f32 %v859_v33  ;;  %v3380_v10 = vld [vmem:[%s4590_s3 + $0x7] ss:$0 sm:$0xff] }
 0x103   : > { %v1457_v40 = vmul.f32 %v3344_v31, %v1119_v22  ;;  %v3347_v47 = vld [vmem:[#allocation2 + $0x1a] sm:$0xff]  ;;  %v878_v53 = vadd.f32 1.0, %v2741_v27  ;;  %2748 = vrcp.f32 %v875_v41  ;;  %v3410_v23 = vadd.f32 %v2636_v9, %v3219_v34 }
 0x104   : > { %v1388_v24 = vadd.f32 %v1356_v62, %v1287_v61  ;;  %v1389_v39 = vadd.f32 %v1357_v20, %v1288_v19  ;;  %v1558_v60 = vmul.f32 %v3356_v58, %v3347_v47  ;;  %2750 = vrcp.f32 %v862_v48  ;;  %v3373_v7 = vld [vmem:[#allocation2 + $0x39] sm:$0xff]  ;;  %v2660_v62 = vpop.f32.mrf.mxu1  ;;  %v650_v48 = vpop.f32.mrf.mxu0 }
 0x105   : > { %v2743_v36 = vpop.eup %2742  ;;  %v3360_v1 = vld [vmem:[#allocation2 + $0x30] sm:$0xff]  ;;  %v3364_v4 = vld [vmem:[#allocation2 + $0x38] sm:$0xff]  ;;  %2752 = vrcp.f32 %v878_v53  ;;  %v3397_v61 = vadd.f32 %v3219_v34, %v640_v0  ;;  %v1762_v19 = vmul.f32 %v3380_v10, %v3373_v7  ;;  %v1156_v27 = vmul.f32 %v3286_v42, %v1119_v22 }
 0x106   : > { %v2745_v46 = vpop.eup %2744  ;;  %v1489_v37 = vadd.f32 %v1457_v40, %v1388_v24  ;;  %v861_v38 = vadd.f32 1.0, %v2743_v36  ;;  %v1490_v59 = vadd.f32 %v1458_v52, %v1389_v39  ;;  %v3371_v6 = vld [vmem:[#allocation2 + $0x31] sm:$0xff]  ;;  %v1660_v8 = vmul.f32 %v3369_v5, %v3360_v1  ;;  %v3389_v13 = vld [vmem:[#allocation2 + $0x3a] sm:$0xff]  ;;  %v730_v56 = vpop.f32.mrf.mxu1 }
 0x107   : > { %v877_v63 = vadd.f32 1.0, %v2745_v46  ;;  %v3382_v11 = vld [vmem:[#allocation2 + $0x32] sm:$0xff]  ;;  %v1661_v12 = vmul.f32 %v3369_v5, %v3364_v4  ;;  %v1761_v54 = vmul.f32 %v3380_v10, %v3371_v6  ;;  %v1055_v24 = vmul.f32 %v3293_v51, %v3330_v55 }
 0x108   : > { %v1590_v2 = vadd.f32 %v1558_v60, %v1489_v37  ;;  %2754 = vrcp.f32 %v861_v38  ;;  %v1591_v49 = vadd.f32 %v1559_v43, %v1490_v59  ;;  %v1862_v36 = vmul.f32 %v3402_v18, %v3382_v11  ;;  %v1034_v60 = vld [vmem:[#allocation2 + $0xd8] sm:$0xff] }
 0x109   : > { %2756 = vrcp.f32 %v877_v63  ;;  %v1056_v39 = vmul.f32 %v3293_v51, %v3332_v17  ;;  %v1863_v40 = vmul.f32 %v3402_v18, %v3389_v13  ;;  %v3427_v55 = vadd.f32 %v2660_v62, %v3219_v34 }
 0x10a   : > { %v1692_v14 = vadd.f32 %v1660_v8, %v1590_v2  ;;  %v1693_v20 = vadd.f32 %v1661_v12, %v1591_v49  ;;  %v2515_v46 = vmul.f32 -1.442695, %v3387_v50  ;;  %v1157_v52 = vmul.f32 %v3286_v42, %v3339_v29  ;;  %v1035_v49 = vld [vmem:[#allocation2 + $0xe0] sm:$0xff] }
 0x10b   : > { %v2531_v37 = vmul.f32 -1.442695, %v3394_v15  ;;  %v2514_v53 = vmul.f32 -1.442695, %v3397_v61  ;;  %v1188_v59 = vadd.f32 %v1156_v27, %v1055_v24  ;;  %v2530_v0 = vmul.f32 -1.442695, %v3407_v21 }
 0x10c   : > { %v1793_v33 = vadd.f32 %v1761_v54, %v1692_v14  ;;  %v1794_v41 = vadd.f32 %v1762_v19, %v1693_v20  ;;  %v2517_v43 = vmul.f32 -1.442695, %v3410_v23  ;;  %v1189_v44 = vadd.f32 %v1157_v52, %v1056_v39  ;;  %v1135_v29 = vld [vmem:[#allocation2 + $0xd9] sm:$0xff]  ;;  %v1136_v27 = vld [vmem:[#allocation2 + $0xe1] sm:$0xff] }
 0x10d   : > { %v2533_v9 = vmul.f32 -1.442695, %v3427_v55  ;;  %v3444_v12 = vadd.f32 %v3219_v34, %v650_v48  ;;  %v1257_v54 = vmul.f32 %v3308_v3, %v3347_v47  ;;  %2758 = vpow2.f32 %v2515_v46 }
 0x10e   : > { %v1894_v22 = vadd.f32 %v1862_v36, %v1793_v33  ;;  %v1895_v17 = vadd.f32 %v1863_v40, %v1794_v41  ;;  %v3450_v19 = vadd.f32 %v3219_v34, %v730_v56  ;;  %v1258_v24 = vmul.f32 %v3308_v3, %v3351_v57  ;;  %v1236_v56 = vld [vmem:[#allocation2 + $0xda] sm:$0xff] }
 0x10f   : > { %v2747_v38 = vpop.eup %2746  ;;  %4627 = vst [vmem:[#allocation4_spill] sm:$0xff] %v3444_v12  ;;  %v1071_v33 = vmul.f32 %v3293_v51, %v1034_v60  ;;  %2760 = vpow2.f32 %v2531_v37  ;;  %v1289_v40 = vadd.f32 %v1257_v54, %v1188_v59  ;;  %v1072_v47 = vmul.f32 %v3293_v51, %v1035_v49  ;;  %v1237_v37 = vld [vmem:[#allocation2 + $0xe2] sm:$0xff]  ;;  %v1037_v54 = vld [vmem:[#allocation2 + $0xf8] sm:$0xff] }
 0x110   : > { %v3435_v63 = vadd.f32 %v3424_v45, %v1894_v22  ;;  %v2749_v2 = vpop.eup %2748  ;;  %v3440_v8 = vadd.f32 %v3424_v45, %v1895_v17  ;;  %4628 = vst [vmem:[#allocation5_spill] sm:$0xff] %v3450_v19  ;;  %v1172_v41 = vmul.f32 %v3286_v42, %v1135_v29  ;;  %v1290_v34 = vadd.f32 %v1258_v24, %v1189_v44 }
 0x111   : > { %v2751_v14 = vpop.eup %2750  ;;  %v1358_v46 = vmul.f32 %v3327_v16, %v3360_v1  ;;  %v1359_v57 = vmul.f32 %v3327_v16, %v3364_v4  ;;  %v1173_v48 = vmul.f32 %v3286_v42, %v1136_v27  ;;  %v955_v52 = vmul.f32 %v2747_v38, %v3262_v25 }
 0x112   : > { %v2548_v62 = vmul.f32 -1.442695, %v3435_v63  ;;  %v2753_v20 = vpop.eup %2752  ;;  %v2549_v36 = vmul.f32 -1.442695, %v3440_v8  ;;  %v971_v17 = vmul.f32 %v2749_v2, %v3265_v26  ;;  %v958_v59 = vmul.f32 %v2751_v14, %v3268_v28  ;;  %v1036_v2 = vld [vmem:[#allocation2 + $0xf0] sm:$0xff] }
 0x113   : > { %v974_v60 = vmul.f32 %v2753_v20, %v3271_v30  ;;  %v2516_v44 = vmul.f32 -1.442695, %v3444_v12  ;;  %v1204_v49 = vadd.f32 %v1172_v41, %v1071_v33  ;;  %v1205_v29 = vadd.f32 %v1173_v48, %v1072_v47  ;;  %988 = vst.msk [vmem:[#allocation2 + $0x49] sm:$0xff] %vm351_vm0, %v955_v52 }
 0x114   : > { %2762 = vpow2.f32 %v2548_v62  ;;  %1004 = vst.msk [vmem:[#allocation2 + $0x109] sm:$0xff] %vm351_vm0, %v971_v17  ;;  %v1391_v38 = vadd.f32 %v1359_v57, %v1290_v34  ;;  %991 = vst.msk [vmem:[#allocation2 + $0x69] sm:$0xff] %vm351_vm0, %v958_v59  ;;  %v2532_v28 = vmul.f32 -1.442695, %v3450_v19  ;;  %v1274_v30 = vmul.f32 %v3308_v3, %v1237_v37  ;;  %v1137_v62 = vld [vmem:[#allocation2 + $0xf1] sm:$0xff] }
 0x115   : > { %v2755_v39 = vpop.eup %2754  ;;  %2764 = vpow2.f32 %v2549_v36  ;;  %1007 = vst.msk [vmem:[#allocation2 + $0x129] sm:$0xff] %vm351_vm0, %v974_v60  ;;  %v1374_v24 = vmul.f32 %v3327_v16, %v1036_v2  ;;  %v1375_v27 = vmul.f32 %v3327_v16, %v1037_v54  ;;  %v1159_v33 = vmul.f32 %v3286_v42, %v3373_v7  ;;  %v1239_v36 = vld [vmem:[#allocation2 + $0xfa] sm:$0xff] }
 0x116   : > { %v2757_v22 = vpop.eup %2756  ;;  %2766 = vpow2.f32 %v2514_v53  ;;  %v957_v25 = vmul.f32 %v2755_v39, %v3275_v32  ;;  %v1390_v53 = vadd.f32 %v1358_v46, %v1289_v40  ;;  %v1460_v32 = vmul.f32 %v3344_v31, %v3373_v7 }
 0x117   : > { %2768 = vpow2.f32 %v2530_v0  ;;  %v973_v26 = vmul.f32 %v2757_v22, %v3279_v35  ;;  %v1273_v0 = vmul.f32 %v3308_v3, %v1236_v56  ;;  %v1459_v35 = vmul.f32 %v3344_v31, %v3371_v6 }
 0x118   : > { %2770 = vpow2.f32 %v2517_v43  ;;  %990 = vst.msk [vmem:[#allocation2 + $0x61] sm:$0xff] %vm351_vm0, %v957_v25  ;;  %v1138_v43 = vld [vmem:[#allocation2 + $0xf9] sm:$0xff]  ;;  %v1306_v20 = vadd.f32 %v1274_v30, %v1205_v29  ;;  %v1492_v39 = vadd.f32 %v1460_v32, %v1391_v38  ;;  %v3489_v40 = vmul.f32 %v3308_v3, %v3389_v13  ;;  %v3517_v29 = vld [vmem:[#allocation2 + $0x51] sm:$0xff] }
 0x119   : > { %1006 = vst.msk [vmem:[#allocation2 + $0x121] sm:$0xff] %vm351_vm0, %v973_v26  ;;  %2772 = vpow2.f32 %v2533_v9  ;;  %v1305_v14 = vadd.f32 %v1273_v0, %v1204_v49  ;;  %v1491_v9 = vadd.f32 %v1459_v35, %v1390_v53  ;;  %v1561_v47 = vmul.f32 %v3356_v58, %v3389_v13 }
 0x11a   : > { %2774 = vpow2.f32 %v2516_v44  ;;  %v1057_v41 = vmul.f32 %v3293_v51, %v3360_v1  ;;  %v1158_v22 = vmul.f32 %v3286_v42, %v3371_v6  ;;  %v3497_v34 = vpop.eup %2758  ;;  %v1175_v7 = vmul.f32 %v3286_v42, %v1138_v43  ;;  %v3510_v37 = vld [vmem:[#allocation2 + $0x48] sm:$0xff]  ;;  %v3512_v56 = vld [vmem:[#allocation2 + $0x50] sm:$0xff] }
 0x11b   : > { %2776 = vpow2.f32 %v2532_v28  ;;  %v1560_v46 = vmul.f32 %v3356_v58, %v3382_v11  ;;  %v1073_v57 = vmul.f32 %v3293_v51, %v1036_v2  ;;  %v1174_v48 = vmul.f32 %v3286_v42, %v1137_v62  ;;  %v3521_v30 = vld [vmem:[#allocation2 + $0x49] sm:$0xff] }
 0x11c   : > { %v3504_v52 = vpop.eup %2760  ;;  %v3507_v13 = vmul.f32 %v3308_v3, %v1239_v36  ;;  %v1476_v1 = vmul.f32 %v3344_v31, %v1138_v43  ;;  %v1406_v17 = vadd.f32 %v1374_v24, %v1305_v14  ;;  %v1407_v6 = vadd.f32 %v1375_v27, %v1306_v20  ;;  %v1238_v14 = vld [vmem:[#allocation2 + $0xf2] sm:$0xff] }
 0x11d   : > { %v1577_v60 = vmul.f32 %v3356_v58, %v1239_v36  ;;  %v1058_v44 = vmul.f32 %v3293_v51, %v3364_v4  ;;  %v1592_v49 = vadd.f32 %v1560_v46, %v1491_v9  ;;  %v1593_v25 = vadd.f32 %v1561_v47, %v1492_v39  ;;  %v3531_v27 = vld [vmem:[#allocation2 + $0x52] sm:$0xff]  ;;  %v3535_v36 = vld [vmem:[#allocation2 + $0x4a] sm:$0xff] }
 0x11e   : > { %v1190_v53 = vadd.f32 %v1158_v22, %v1057_v41  ;;  %v1074_v2 = vmul.f32 %v3293_v51, %v1037_v54  ;;  %v1475_v28 = vmul.f32 %v3344_v31, %v1137_v62  ;;  %v1206_v35 = vadd.f32 %v1174_v48, %v1073_v57 }
 0x11f   : > { %v1662_v4 = vmul.f32 %v3369_v5, %v3510_v37  ;;  %v1663_v43 = vmul.f32 %v3369_v5, %v3512_v56  ;;  %v1508_v54 = vadd.f32 %v1476_v1, %v1407_v6  ;;  %v1764_v62 = vmul.f32 %v3380_v10, %v3517_v29  ;;  %v3547_v6 = vld [vmem:[#allocation2 + $0x111] sm:$0xff] }
 0x120   : > { %v1507_v24 = vadd.f32 %v1475_v28, %v1406_v17  ;;  %v1763_v47 = vmul.f32 %v3380_v10, %v3521_v30  ;;  %v1191_v22 = vadd.f32 %v1159_v33, %v1058_v44  ;;  %v1259_v46 = vmul.f32 %v3308_v3, %v3382_v11  ;;  %v3551_v33 = vld [vmem:[#allocation2 + $0x108] sm:$0xff]  ;;  %v3553_v44 = vld [vmem:[#allocation2 + $0x110] sm:$0xff] }
 0x121   : > { %v2763_v59 = vpop.eup %2762  ;;  %v1694_v9 = vadd.f32 %v1662_v4, %v1592_v49  ;;  %v1695_v39 = vadd.f32 %v1663_v43, %v1593_v25  ;;  %v1275_v57 = vmul.f32 %v3308_v3, %v1238_v14  ;;  %v1576_v48 = vmul.f32 %v3356_v58, %v1238_v14 }
 0x122   : > { %v2765_v26 = vpop.eup %2764  ;;  %v2061_v38 = vadd.f32 1.0, %v2763_v59  ;;  %v1865_v17 = vmul.f32 %v3402_v18, %v3531_v27  ;;  %v1864_v25 = vmul.f32 %v3402_v18, %v3535_v36  ;;  %v1609_v14 = vadd.f32 %v1577_v60, %v1508_v54  ;;  %v3583_v54 = vld [vmem:[#allocation2 + $0x10a] sm:$0xff] }
 0x123   : > { %v3523_v0 = vpop.eup %2766  ;;  %v2062_v32 = vadd.f32 1.0, %v2765_v26  ;;  %v1795_v59 = vadd.f32 %v1763_v47, %v1694_v9  ;;  %v1796_v49 = vadd.f32 %v1764_v62, %v1695_v39  ;;  %v1291_v26 = vadd.f32 %v1259_v46, %v1190_v53  ;;  %v3561_v62 = vld [vmem:[#allocation2 + $0x109] sm:$0xff] }
 0x124   : > { %v3529_v20 = vpop.eup %2768  ;;  %2778 = vrcp.f32 %v2061_v38  ;;  %v1207_v38 = vadd.f32 %v1175_v7, %v1074_v2  ;;  %v1608_v28 = vadd.f32 %v1576_v48, %v1507_v24  ;;  %v3559_v4 = vadd.f32 %v1275_v57, %v1206_v35 }
 0x125   : > { %2780 = vrcp.f32 %v2062_v32  ;;  %v2771_v41 = vpop.eup %2770  ;;  %v3557_v32 = vld [vmem:[#allocation2 + $0x112] sm:$0xff]  ;;  %v1896_v43 = vadd.f32 %v1864_v25, %v1795_v59  ;;  %v1897_v9 = vadd.f32 %v1865_v17, %v1796_v49  ;;  %v864_v39 = vadd.f32 1.0, %v3497_v34 }
 0x126   : > { %v3543_v1 = vpop.eup %2772  ;;  %v1780_v19 = vmul.f32 %v3380_v10, %v3547_v6  ;;  %v1360_v7 = vmul.f32 %v3327_v16, %v3510_v37  ;;  %v1678_v53 = vmul.f32 %v3369_v5, %v3551_v33  ;;  %v1679_v60 = vmul.f32 %v3369_v5, %v3553_v44 }
 0x127   : > { %v3555_v11 = vpop.eup %2774  ;;  %v1881_v2 = vmul.f32 %v3402_v18, %v3557_v32  ;;  %v1292_v35 = vadd.f32 %v3489_v40, %v1191_v22  ;;  %v3578_v34 = vadd.f32 %v3424_v45, %v1896_v43  ;;  %v3581_v24 = vadd.f32 %v3424_v45, %v1897_v9 }
 0x128   : > { %v3564_v47 = vpop.eup %2776  ;;  %v1361_v46 = vmul.f32 %v3327_v16, %v3512_v56  ;;  %v1710_v57 = vadd.f32 %v1678_v53, %v1608_v28  ;;  %v1711_v48 = vadd.f32 %v1679_v60, %v1609_v14  ;;  %v1779_v17 = vmul.f32 %v3380_v10, %v3561_v62 }
 0x129   : > { %4629 = vst [vmem:[#allocation6_spill] sm:$0xff] %v3564_v47  ;;  %v2550_v59 = vmul.f32 -1.442695, %v3578_v34  ;;  %v2551_v40 = vmul.f32 -1.442695, %v3581_v24  ;;  %2782 = vrcp.f32 %v864_v39  ;;  %v880_v22 = vadd.f32 1.0, %v3504_v52 }
 0x12a   : > { %v1392_v49 = vadd.f32 %v1360_v7, %v1291_v26  ;;  %v1811_v25 = vadd.f32 %v1779_v17, %v1710_v57  ;;  %v1812_v43 = vadd.f32 %v1780_v19, %v1711_v48  ;;  %v1880_v9 = vmul.f32 %v3402_v18, %v3583_v54 }
 0x12b   : > { %v1462_v28 = vmul.f32 %v3344_v31, %v3517_v29  ;;  %v1461_v14 = vmul.f32 %v3344_v31, %v3521_v30  ;;  %2784 = vpow2.f32 %v2550_v59  ;;  %v863_v53 = vadd.f32 1.0, %v3523_v0  ;;  %v3630_v59 = vld [vmem:[#allocation2 + $0x60] sm:$0xff] }
 0x12c   : > { %v1393_v60 = vadd.f32 %v1361_v46, %v1292_v35  ;;  %2786 = vpow2.f32 %v2551_v40  ;;  %v1912_v39 = vadd.f32 %v1880_v9, %v1811_v25  ;;  %v1913_v12 = vadd.f32 %v1881_v2, %v1812_v43  ;;  %v3637_v43 = vld [vmem:[#allocation2 + $0x68] sm:$0xff] }
 0x12d   : > { %v1308_v19 = vadd.f32 %v3507_v13, %v1207_v38  ;;  %2788 = vrcp.f32 %v880_v22  ;;  %v879_v26 = vadd.f32 1.0, %v3529_v20  ;;  %v866_v7 = vadd.f32 1.0, %v2771_v41 }
 0x12e   : > { %v1493_v46 = vadd.f32 %v1461_v14, %v1392_v49  ;;  %v3610_v2 = vadd.f32 %v3424_v45, %v1912_v39  ;;  %v3613_v57 = vadd.f32 %v3424_v45, %v1913_v12  ;;  %v1562_v13 = vmul.f32 %v3356_v58, %v3535_v36  ;;  %v3642_v14 = vld [vmem:[#allocation2 + $0x69] sm:$0xff] }
 0x12f   : > { %v1376_v20 = vmul.f32 %v3327_v16, %v3551_v33  ;;  %2790 = vrcp.f32 %v863_v53  ;;  %v1494_v41 = vadd.f32 %v1462_v28, %v1393_v60  ;;  %v1377_v12 = vmul.f32 %v3327_v16, %v3553_v44  ;;  %v3640_v28 = vld [vmem:[#allocation2 + $0x61] sm:$0xff] }
 0x130   : > { %4630 = vst [vmem:[#allocation7_spill] sm:$0xff] %v3613_v57  ;;  %v2566_v38 = vmul.f32 -1.442695, %v3610_v2  ;;  %v2567_v17 = vmul.f32 -1.442695, %v3613_v57  ;;  %2792 = vrcp.f32 %v879_v26  ;;  %v882_v40 = vadd.f32 1.0, %v3543_v1 }
 0x131   : > { %v2779_v52 = vpop.eup %2778  ;;  %v1563_v49 = vmul.f32 %v3356_v58, %v3531_v27  ;;  %v1594_v25 = vadd.f32 %v1562_v13, %v1493_v46  ;;  %v1408_v9 = vadd.f32 %v1376_v20, %v3559_v4  ;;  %v1664_v1 = vmul.f32 %v3369_v5, %v3630_v59  ;;  %v3656_v46 = vld [vmem:[#allocation2 + $0x6a] sm:$0xff] }
 0x132   : > { %v2781_v0 = vpop.eup %2780  ;;  %v2157_v35 = vmul.f32 %v2779_v52, %v3435_v63  ;;  %2794 = vpow2.f32 %v2566_v38  ;;  %v1409_v60 = vadd.f32 %v1377_v12, %v1308_v19  ;;  %v1477_v39 = vmul.f32 %v3344_v31, %v3561_v62  ;;  %v3648_v52 = vld [vmem:[#allocation2 + $0x62] sm:$0xff] }
 0x133   : > { %v2158_v48 = vmul.f32 %v2781_v0, %v3440_v8  ;;  %2796 = vpow2.f32 %v2567_v17  ;;  %v1595_v53 = vadd.f32 %v1563_v49, %v1494_v41  ;;  %v1665_v26 = vmul.f32 %v3369_v5, %v3637_v43 }
 0x134   : > { %2189 = vst.msk [vmem:[%s3604_s12] sm:$0xff] %vm351_vm0, %v2157_v35  ;;  %v2221_v63 = vsel %vm351_vm0, %v2157_v35, 0.0  ;;  %2798 = vrcp.f32 %v866_v7  ;;  %v1059_v0 = vmul.f32 %v3293_v51, %v3510_v37  ;;  %v1160_v35 = vmul.f32 %v3286_v42, %v3521_v30 }
 0x135   : > { %2190 = vst.msk [vmem:[%s3604_s12 + $0x8] sm:$0xff] %vm351_vm0, %v2158_v48  ;;  %v2222_v8 = vsel %vm351_vm0, %v2158_v48, 0.0  ;;  %2800 = vrcp.f32 %v882_v40  ;;  %v1696_v7 = vadd.f32 %v1664_v1, %v1594_v25  ;;  %v1765_v19 = vmul.f32 %v3380_v10, %v3640_v28 }
 0x136   : > { %v3633_v22 = vadd.f32 %v2222_v8, %v2221_v63  ;;  %v2783_v4 = vpop.eup %2782  ;;  %v1478_v48 = vmul.f32 %v3344_v31, %v3547_v6  ;;  %v1509_v13 = vadd.f32 %v1477_v39, %v1408_v9  ;;  %v1766_v20 = vmul.f32 %v3380_v10, %v3642_v14 }
 0x137   : > { %v1697_v63 = vadd.f32 %v1665_v26, %v1595_v53  ;;  %v1060_v37 = vmul.f32 %v3293_v51, %v3512_v56  ;;  %v1578_v30 = vmul.f32 %v3356_v58, %v3583_v54  ;;  %v1797_v38 = vadd.f32 %v1765_v19, %v1696_v7  ;;  %v3674_v26 = vld [vmem:[#allocation2 + $0x120] sm:$0xff] }
 0x138   : > { %v2785_v41 = vpop.eup %2784  ;;  %v1866_v17 = vmul.f32 %v3402_v18, %v3648_v52  ;;  %v1510_v40 = vadd.f32 %v1478_v48, %v1409_v60  ;;  %v1867_v49 = vmul.f32 %v3402_v18, %v3656_v46  ;;  %v1161_v53 = vmul.f32 %v3286_v42, %v3517_v29  ;;  %v3680_v48 = vld [vmem:[#allocation2 + $0x128] sm:$0xff] }
 0x139   : > { %v2787_v8 = vpop.eup %2786  ;;  %v2063_v12 = vadd.f32 1.0, %v2785_v41  ;;  %v1798_v25 = vadd.f32 %v1766_v20, %v1697_v63  ;;  %v1192_v1 = vadd.f32 %v1160_v35, %v1059_v0  ;;  %v1579_v7 = vmul.f32 %v3356_v58, %v3557_v32  ;;  %v3678_v41 = vld [vmem:[#allocation2 + $0x129] sm:$0xff]  ;;  %v3689_v35 = vld [vmem:[#allocation2 + $0x121] sm:$0xff] }
 0x13a   : > { %v2789_v9 = vpop.eup %2788  ;;  %v2064_v56 = vadd.f32 1.0, %v2787_v8  ;;  %v1898_v39 = vadd.f32 %v1866_v17, %v1797_v38  ;;  %v1610_v19 = vadd.f32 %v1578_v30, %v1509_v13  ;;  %4631 = vst [vmem:[#allocation8_spill] sm:$0xff] %v3678_v41  ;;  %v1262_v63 = vmul.f32 %v3308_v3, %v3531_v27  ;;  %v3691_v38 = vld [vmem:[#allocation2 + $0x122] sm:$0xff] }
 0x13b   : > { %2802 = vrcp.f32 %v2063_v12  ;;  %v1899_v60 = vadd.f32 %v1867_v49, %v1798_v25  ;;  %v1261_v29 = vmul.f32 %v3308_v3, %v3535_v36  ;;  %v1193_v13 = vadd.f32 %v1161_v53, %v1060_v37 }
 0x13c   : > { %v2791_v20 = vpop.eup %2790  ;;  %2804 = vrcp.f32 %v2064_v56  ;;  %v3687_v0 = vadd.f32 %v3424_v45, %v1898_v39  ;;  %v1611_v17 = vadd.f32 %v1579_v7, %v1510_v40  ;;  %v1680_v8 = vmul.f32 %v3369_v5, %v3674_v26  ;;  %v3703_v39 = vld [vmem:[#allocation2 + $0x12a] sm:$0xff] }
 0x13d   : > { %v3694_v30 = vadd.f32 %v3424_v45, %v1899_v60  ;;  %v2793_v27 = vpop.eup %2792  ;;  %v1293_v12 = vadd.f32 %v1261_v29, %v1192_v1  ;;  %v1782_v36 = vmul.f32 %v3380_v10, %v3678_v41  ;;  %v1681_v25 = vmul.f32 %v3369_v5, %v3680_v48 }
 0x13e   : > { %4632 = vst [vmem:[#allocation9_spill] sm:$0xff] %v3687_v0  ;;  %v2552_v49 = vmul.f32 -1.442695, %v3687_v0  ;;  %v1712_v53 = vadd.f32 %v1680_v8, %v1610_v19  ;;  %v1781_v40 = vmul.f32 %v3380_v10, %v3689_v35  ;;  %v1882_v1 = vmul.f32 %v3402_v18, %v3691_v38 }
 0x13f   : > { %4633 = vst [vmem:[#allocation10_spill] sm:$0xff] %v3694_v30  ;;  %v2795_v56 = vpop.eup %2794  ;;  %v2553_v37 = vmul.f32 -1.442695, %v3694_v30  ;;  %v1713_v29 = vadd.f32 %v1681_v25, %v1611_v17  ;;  %v960_v0 = vmul.f32 %v2783_v4, %v3387_v50  ;;  %v976_v57 = vmul.f32 %v2789_v9, %v3394_v15 }
 0x140   : > { %v2797_v7 = vpop.eup %2796  ;;  %v2079_v60 = vadd.f32 1.0, %v2795_v56  ;;  %2806 = vpow2.f32 %v2552_v49  ;;  %v1813_v47 = vadd.f32 %v1781_v40, %v1712_v53  ;;  %v1883_v19 = vmul.f32 %v3402_v18, %v3703_v39 }
 0x141   : > { %v2799_v41 = vpop.eup %2798  ;;  %v2080_v5 = vadd.f32 1.0, %v2797_v7  ;;  %2808 = vpow2.f32 %v2553_v37  ;;  %v1814_v8 = vadd.f32 %v1782_v36, %v1713_v29  ;;  %993 = vst.msk [vmem:[#allocation2 + $0x81] sm:$0xff] %vm351_vm0, %v960_v0  ;;  %v959_v56 = vmul.f32 %v2791_v20, %v3397_v61  ;;  %1009 = vst.msk [vmem:[#allocation2 + $0x141] sm:$0xff] %vm351_vm0, %v976_v57  ;;  %v2663_v36 = vpop.f32.mrf.mxu1 }
 0x142   : > { %v2801_v30 = vpop.eup %2800  ;;  %2810 = vrcp.f32 %v2079_v60  ;;  %v1075_v17 = vmul.f32 %v3293_v51, %v3551_v33  ;;  %v1914_v50 = vadd.f32 %v1882_v1, %v1813_v47  ;;  %v975_v4 = vmul.f32 %v2793_v27, %v3407_v21 }
 0x143   : > { %2812 = vrcp.f32 %v2080_v5  ;;  %v1176_v15 = vmul.f32 %v3286_v42, %v3561_v62  ;;  %v1294_v9 = vadd.f32 %v1262_v63, %v1193_v13  ;;  %v1915_v49 = vadd.f32 %v1883_v19, %v1814_v8  ;;  %992 = vst.msk [vmem:[#allocation2 + $0x79] sm:$0xff] %vm351_vm0, %v959_v56  ;;  %v2639_v63 = vpop.f32.mrf.mxu0 }
 0x144   : > { %v962_v0 = vmul.f32 %v2799_v41, %v3410_v23  ;;  %v1362_v61 = vmul.f32 %v3327_v16, %v3630_v59  ;;  %v1363_v5 = vmul.f32 %v3327_v16, %v3637_v43  ;;  %v3729_v33 = vadd.f32 %v3424_v45, %v1914_v50  ;;  %1008 = vst.msk [vmem:[#allocation2 + $0x139] sm:$0xff] %vm351_vm0, %v975_v4 }
 0x145   : > { %v978_v21 = vmul.f32 %v2801_v30, %v3427_v55  ;;  %v1076_v62 = vmul.f32 %v3293_v51, %v3553_v44  ;;  %v3736_v47 = vadd.f32 %v3424_v45, %v1915_v49  ;;  %v1177_v41 = vmul.f32 %v3286_v42, %v3547_v6 }
 0x146   : > { %995 = vst.msk [vmem:[#allocation2 + $0x99] sm:$0xff] %vm351_vm0, %v962_v0  ;;  %v2568_v23 = vmul.f32 -1.442695, %v3729_v33  ;;  %v1208_v20 = vadd.f32 %v1176_v15, %v1075_v17  ;;  %v1394_v30 = vadd.f32 %v1362_v61, %v1293_v12  ;;  %v1395_v27 = vadd.f32 %v1363_v5, %v1294_v9  ;;  %v3758_v12 = vld [vmem:[%s4589_s2] ss:$0 sm:$0xff] }
 0x147   : > { %1011 = vst.msk [vmem:[#allocation2 + $0x159] sm:$0xff] %vm351_vm0, %v978_v21  ;;  %v2569_v55 = vmul.f32 -1.442695, %v3736_v47  ;;  %v1209_v37 = vadd.f32 %v1177_v41, %v1076_v62  ;;  %v1277_v53 = vmul.f32 %v3308_v3, %v3583_v54  ;;  %v1464_v6 = vmul.f32 %v3344_v31, %v3642_v14  ;;  %v4635_v62 = vld [vmem:[#allocation7_spill] sm:$0xff] }
 0x148   : > { %v2803_v57 = vpop.eup %2802  ;;  %2814 = vpow2.f32 %v2568_v23  ;;  %v1278_v54 = vmul.f32 %v3308_v3, %v3557_v32  ;;  %v3769_v7 = vadd.f32 %v3758_v12, %v2663_v36  ;;  %v1378_v56 = vmul.f32 %v3327_v16, %v3674_v26 }
 0x149   : > { %v2805_v13 = vpop.eup %2804  ;;  %v2159_v44 = vmul.f32 %v2803_v57, %v3578_v34  ;;  %2816 = vpow2.f32 %v2569_v55  ;;  %v1463_v34 = vmul.f32 %v3344_v31, %v3640_v28  ;;  %v1309_v1 = vadd.f32 %v1277_v53, %v1208_v20  ;;  %v4639_v53 = vld [vmem:[#allocation3_spill] sm:$0xff] }
 0x14a   : > { %v2160_v25 = vmul.f32 %v2805_v13, %v3581_v24  ;;  %v3761_v24 = vadd.f32 %v3758_v12, %v2639_v63  ;;  %v1496_v19 = vadd.f32 %v1464_v6, %v1395_v27  ;;  %v1310_v3 = vadd.f32 %v1278_v54, %v1209_v37  ;;  %v3786_v21 = vld [vmem:[#allocation2 + $0x78] sm:$0xff]  ;;  %v3792_v20 = vld [vmem:[#allocation2 + $0x80] sm:$0xff]  ;;  %v4637_v13 = vld [vmem:[#allocation6_spill] sm:$0xff] }
 0x14b   : > { %2191 = vst.msk [vmem:[%s3604_s12 + $0x10] sm:$0xff] %vm351_vm0, %v2159_v44  ;;  %v2224_v42 = vsel %vm351_vm0, %v2159_v44, 0.0  ;;  %v1495_v29 = vadd.f32 %v1463_v34, %v1394_v30  ;;  %v1379_v32 = vmul.f32 %v3327_v16, %v3680_v48  ;;  %v1564_v15 = vmul.f32 %v3356_v58, %v3648_v52  ;;  %v3797_v55 = vld [vmem:[#allocation2 + $0x79] sm:$0xff]  ;;  %v3810_v37 = vld [vmem:[#allocation2 + $0x81] sm:$0xff] }
 0x14c   : > { %2192 = vst.msk [vmem:[%s3604_s12 + $0x18] sm:$0xff] %vm351_vm0, %v2160_v25  ;;  %v2225_v40 = vadd.f32 %v2224_v42, %v3633_v22  ;;  %v2226_v8 = vsel %vm351_vm0, %v2160_v25, 0.0  ;;  %v2519_v49 = vmul.f32 -1.442695, %v3761_v24  ;;  %v1565_v5 = vmul.f32 %v3356_v58, %v3656_v46 }
 0x14d   : > { %v2807_v60 = vpop.eup %2806  ;;  %v865_v16 = vadd.f32 1.0, %v3555_v11  ;;  %v1596_v57 = vadd.f32 %v1564_v15, %v1495_v29  ;;  %v1410_v41 = vadd.f32 %v1378_v56, %v1309_v1  ;;  %v881_v44 = vadd.f32 1.0, %v4637_v13  ;;  %v4638_v11 = vld [vmem:[#allocation8_spill] sm:$0xff]  ;;  %v3849_v13 = vld [vmem:[#allocation2 + $0x141] sm:$0xff] }
 0x14e   : > { %v2809_v17 = vpop.eup %2808  ;;  %v2065_v50 = vadd.f32 1.0, %v2807_v60  ;;  %v3774_v4 = vadd.f32 %v2226_v8, %v2225_v40  ;;  %v1597_v63 = vadd.f32 %v1565_v5, %v1496_v19  ;;  %v2535_v30 = vmul.f32 -1.442695, %v3769_v7  ;;  %v3820_v40 = vld [vmem:[#allocation2 + $0x7a] sm:$0xff]  ;;  %v3824_v60 = vld [vmem:[#allocation2 + $0x82] sm:$0xff] }
 0x14f   : > { %v2811_v22 = vpop.eup %2810  ;;  %v2066_v9 = vadd.f32 1.0, %v2809_v17  ;;  %v1480_v27 = vmul.f32 %v3344_v31, %v4638_v11  ;;  %v1581_v36 = vmul.f32 %v3356_v58, %v3703_v39  ;;  %v1479_v25 = vmul.f32 %v3344_v31, %v3689_v35  ;;  %v3834_v15 = vld [vmem:[#allocation2 + $0x138] sm:$0xff] }
 0x150   : > { %v2813_v0 = vpop.eup %2812  ;;  %v3782_v61 = vmul.f32 %v2811_v22, %v3610_v2  ;;  %2818 = vrcp.f32 %v2065_v50  ;;  %v1411_v2 = vadd.f32 %v1379_v32, %v1310_v3  ;;  %v1666_v42 = vmul.f32 %v4639_v53, %v3786_v21 }
 0x151   : > { %v3790_v23 = vmul.f32 %v2813_v0, %v4635_v62  ;;  %2820 = vrcp.f32 %v2066_v9  ;;  %v1061_v6 = vmul.f32 %v3293_v51, %v3630_v59  ;;  %v1062_v34 = vmul.f32 %v3293_v51, %v3637_v43  ;;  %v660_v9 = vpop.f32.mrf.mxu0  ;;  %v3839_v0 = vld [vmem:[%s4590_s3 + $0x1] ss:$0 sm:$0xff] }
 0x152   : > { %4634 = vst [vmem:[#allocation11_spill] sm:$0xff] %v3782_v61  ;;  %2207 = vst.msk [vmem:[%s3604_s12 + $0x90] sm:$0xff] %vm351_vm0, %v3782_v61  ;;  %v1580_v54 = vmul.f32 %v3356_v58, %v3691_v38  ;;  %v1667_v1 = vmul.f32 %v4639_v53, %v3792_v20  ;;  %v1511_v31 = vadd.f32 %v1479_v25, %v1410_v41  ;;  %2822 = vrcp.f32 %v865_v16  ;;  %v3843_v62 = vld [vmem:[#allocation2 + $0x140] sm:$0xff] }
 0x153   : > { %4636 = vst [vmem:[#allocation7_spill] sm:$0xff] %v3790_v23  ;;  %2208 = vst.msk [vmem:[%s3604_s12 + $0x98] sm:$0xff] %vm351_vm0, %v3790_v23  ;;  %v1698_v29 = vadd.f32 %v1666_v42, %v1596_v57  ;;  %v1767_v19 = vmul.f32 %v3380_v10, %v3797_v55  ;;  %v1512_v8 = vadd.f32 %v1480_v27, %v1411_v2  ;;  %2824 = vrcp.f32 %v881_v44  ;;  %v3847_v2 = vld [vmem:[#allocation2 + $0x139] sm:$0xff] }
 0x154   : > { %v1768_v51 = vmul.f32 %v3380_v10, %v3810_v37  ;;  %v1699_v43 = vadd.f32 %v1667_v1, %v1597_v63  ;;  %v1868_v50 = vmul.f32 %v3402_v18, %v3820_v40  ;;  %2826 = vpow2.f32 %v2519_v49  ;;  %v3869_v42 = vld [vmem:[#allocation2 + $0x13a] sm:$0xff] }
 0x155   : > { %v2815_v59 = vpop.eup %2814  ;;  %v1799_v17 = vadd.f32 %v1767_v19, %v1698_v29  ;;  %v1869_v32 = vmul.f32 %v3402_v18, %v3824_v60  ;;  %2828 = vpow2.f32 %v2535_v30  ;;  %v1162_v5 = vmul.f32 %v3839_v0, %v3640_v28  ;;  %4640 = vst [vmem:[#allocation6_spill] sm:$0xff] %v3869_v42 }
 0x156   : > { %v2817_v58 = vpop.eup %2816  ;;  %v2081_v56 = vadd.f32 1.0, %v2815_v59  ;;  %v1800_v22 = vadd.f32 %v1768_v51, %v1699_v43  ;;  %v1612_v16 = vadd.f32 %v1580_v54, %v1511_v31  ;;  %v1163_v57 = vmul.f32 %v3839_v0, %v3642_v14  ;;  %v3862_v14 = vld [vmem:[%s4590_s3 + $0x2] ss:$0 sm:$0xff] }
 0x157   : > { %v2082_v3 = vadd.f32 1.0, %v2817_v58  ;;  %v1900_v49 = vadd.f32 %v1868_v50, %v1799_v17  ;;  %v1613_v63 = vadd.f32 %v1581_v36, %v1512_v8  ;;  %v1682_v28 = vmul.f32 %v4639_v53, %v3834_v15  ;;  %v4642_v8 = vld [vmem:[#allocation9_spill] sm:$0xff] }
 0x158   : > { %2830 = vrcp.f32 %v2081_v56  ;;  %v1901_v41 = vadd.f32 %v1869_v32, %v1800_v22  ;;  %v3857_v30 = vadd.f32 %v3758_v12, %v660_v9  ;;  %v1195_v27 = vadd.f32 %v1163_v57, %v1062_v34  ;;  %v3873_v34 = vld [vmem:[#allocation2 + $0x142] sm:$0xff]  ;;  %v3896_v9 = vld [vmem:[%s4590_s3] ss:$0 sm:$0xff] }
 0x159   : > { %2832 = vrcp.f32 %v2082_v3  ;;  %v3852_v44 = vadd.f32 %v3424_v45, %v1900_v49  ;;  %v1263_v36 = vmul.f32 %v3862_v14, %v3648_v52  ;;  %v1683_v54 = vmul.f32 %v4639_v53, %v3843_v62  ;;  %4641 = vst [vmem:[#allocation8_spill] sm:$0xff] %v3873_v34  ;;  %v4643_v56 = vld [vmem:[#allocation10_spill] sm:$0xff] }
 0x15a   : > { %v3867_v25 = vadd.f32 %v3424_v45, %v1901_v41  ;;  %v1194_v31 = vadd.f32 %v1162_v5, %v1061_v6  ;;  %v1714_v19 = vadd.f32 %v1682_v28, %v1612_v16  ;;  %v1783_v52 = vmul.f32 %v3380_v10, %v3847_v2  ;;  %v740_v28 = vpop.f32.mrf.mxu1 }
 0x15b   : > { %v2554_v29 = vmul.f32 -1.442695, %v3852_v44  ;;  %v1784_v43 = vmul.f32 %v3380_v10, %v3849_v13  ;;  %v1715_v58 = vadd.f32 %v1683_v54, %v1613_v63  ;;  %v1884_v50 = vmul.f32 %v3402_v18, %v3869_v42 }
 0x15c   : > { %v2555_v53 = vmul.f32 -1.442695, %v3867_v25  ;;  %v1815_v17 = vadd.f32 %v1783_v52, %v1714_v19  ;;  %v1885_v32 = vmul.f32 %v3402_v18, %v3873_v34  ;;  %v1077_v5 = vmul.f32 %v3896_v9, %v3674_v26  ;;  %v3910_v26 = vld [vmem:[%s4590_s3 + $0x3] ss:$0 sm:$0xff] }
 0x15d   : > { %v2819_v1 = vpop.eup %2818  ;;  %2834 = vpow2.f32 %v2554_v29  ;;  %v1816_v22 = vadd.f32 %v1784_v43, %v1715_v58  ;;  %v1178_v16 = vmul.f32 %v3839_v0, %v3689_v35  ;;  %v1264_v18 = vmul.f32 %v3862_v14, %v3656_v46  ;;  %v4644_v43 = vld [vmem:[#allocation4_spill] sm:$0xff] }
 0x15e   : > { %v2821_v59 = vpop.eup %2820  ;;  %v2161_v51 = vmul.f32 %v2819_v1, %v4642_v8  ;;  %2836 = vpow2.f32 %v2555_v53  ;;  %v1916_v49 = vadd.f32 %v1884_v50, %v1815_v17  ;;  %v1078_v41 = vmul.f32 %v3896_v9, %v3680_v48  ;;  %v4646_v17 = vld [vmem:[#allocation5_spill] sm:$0xff] }
 0x15f   : > { %v2162_v6 = vmul.f32 %v2821_v59, %v4643_v56  ;;  %v2823_v57 = vpop.eup %2822  ;;  %v1917_v63 = vadd.f32 %v1885_v32, %v1816_v22  ;;  %v1295_v1 = vadd.f32 %v1263_v36, %v1194_v31  ;;  %v1364_v35 = vmul.f32 %v3910_v26, %v3786_v21 }
 0x160   : > { %2193 = vst.msk [vmem:[%s3604_s12 + $0x20] sm:$0xff] %vm351_vm0, %v2161_v51  ;;  %v2228_v3 = vsel %vm351_vm0, %v2161_v51, 0.0  ;;  %v2825_v54 = vpop.eup %2824  ;;  %v3917_v46 = vadd.f32 %v3424_v45, %v1916_v49  ;;  %v1179_v19 = vmul.f32 %v3839_v0, %v4638_v11  ;;  %v1296_v52 = vadd.f32 %v1264_v18, %v1195_v27  ;;  %v2666_v18 = vpop.f32.mrf.mxu1 }
 0x161   : > { %2194 = vst.msk [vmem:[%s3604_s12 + $0x28] sm:$0xff] %vm351_vm0, %v2162_v6  ;;  %v2229_v10 = vadd.f32 %v2228_v3, %v3774_v4  ;;  %v2230_v4 = vsel %vm351_vm0, %v2162_v6, 0.0  ;;  %v2827_v48 = vpop.eup %2826  ;;  %v1365_v36 = vmul.f32 %v3910_v26, %v3792_v20  ;;  %v3924_v31 = vadd.f32 %v3424_v45, %v1917_v63 }
 0x162   : > { %v2829_v59 = vpop.eup %2828  ;;  %v1210_v8 = vadd.f32 %v1178_v16, %v1077_v5  ;;  %v2570_v51 = vmul.f32 -1.442695, %v3917_v46  ;;  %v961_v53 = vmul.f32 %v2823_v57, %v4644_v43  ;;  %v3929_v58 = vadd.f32 %v3758_v12, %v740_v28  ;;  %v2642_v16 = vpop.f32.mrf.mxu0 }
 0x163   : > { %v3914_v29 = vadd.f32 %v2230_v4, %v2229_v10  ;;  %v1280_v11 = vmul.f32 %v3862_v14, %v3703_v39  ;;  %v1211_v27 = vadd.f32 %v1179_v19, %v1078_v41  ;;  %v2571_v6 = vmul.f32 -1.442695, %v3924_v31 }
 0x164   : > { %4645 = vst [vmem:[#allocation3_spill] sm:$0xff] %v3929_v58  ;;  %v977_v45 = vmul.f32 %v2825_v54, %v4646_v17  ;;  %v1279_v3 = vmul.f32 %v3862_v14, %v3691_v38  ;;  %v1396_v22 = vadd.f32 %v1364_v35, %v1295_v1  ;;  %2838 = vpow2.f32 %v2570_v51  ;;  %994 = vst.msk [vmem:[#allocation2 + $0x91] sm:$0xff] %vm351_vm0, %v961_v53 }
 0x165   : > { %v2831_v56 = vpop.eup %2830  ;;  %v1397_v10 = vadd.f32 %v1365_v36, %v1296_v52  ;;  %2840 = vpow2.f32 %v2571_v6  ;;  %v868_v5 = vadd.f32 1.0, %v2827_v48  ;;  %v1380_v38 = vmul.f32 %v3910_v26, %v3834_v15 }
 0x166   : > { %v2833_v50 = vpop.eup %2832  ;;  %v3938_v32 = vmul.f32 %v2831_v56, %v3729_v33  ;;  %1010 = vst.msk [vmem:[#allocation2 + $0x151] sm:$0xff] %vm351_vm0, %v977_v45  ;;  %v1311_v49 = vadd.f32 %v1279_v3, %v1210_v8  ;;  %v884_v33 = vadd.f32 1.0, %v2829_v59  ;;  %v2518_v57 = vmul.f32 -1.442695, %v3857_v30  ;;  %v3975_v59 = vld [vmem:[%s4590_s3 + $0x5] ss:$0 sm:$0xff] }
 0x167   : > { %v3942_v39 = vmul.f32 %v2833_v50, %v3736_v47  ;;  %v3957_v47 = vld [vmem:[%s4590_s3 + $0x4] ss:$0 sm:$0xff]  ;;  %v1312_v63 = vadd.f32 %v1280_v11, %v1211_v27  ;;  %v1381_v28 = vmul.f32 %v3910_v26, %v3843_v62  ;;  %v2534_v54 = vmul.f32 -1.442695, %v3929_v58 }
 0x168   : > { %4647 = vst [vmem:[#allocation9_spill] sm:$0xff] %v3938_v32  ;;  %2209 = vst.msk [vmem:[%s3604_s12 + $0xa0] sm:$0xff] %vm351_vm0, %v3938_v32  ;;  %v1466_v41 = vmul.f32 %v3957_v47, %v3810_v37  ;;  %v1465_v4 = vmul.f32 %v3957_v47, %v3797_v55  ;;  %v3967_v1 = vadd.f32 %v3758_v12, %v2642_v16  ;;  %2842 = vrcp.f32 %v868_v5 }
 0x169   : > { %4648 = vst [vmem:[#allocation10_spill] sm:$0xff] %v3942_v39  ;;  %2210 = vst.msk [vmem:[%s3604_s12 + $0xa8] sm:$0xff] %vm351_vm0, %v3942_v39  ;;  %v3970_v52 = vadd.f32 %v3758_v12, %v2666_v18  ;;  %v1567_v8 = vmul.f32 %v3975_v59, %v3824_v60  ;;  %v1412_v43 = vadd.f32 %v1380_v38, %v1311_v49  ;;  %2844 = vrcp.f32 %v884_v33  ;;  %v3998_v33 = vld [vmem:[#allocation2 + $0x159] sm:$0xff] }
 0x16a   : > { %4649 = vst [vmem:[#allocation4_spill] sm:$0xff] %v3967_v1  ;;  %v2835_v35 = vpop.eup %2834  ;;  %v1497_v48 = vadd.f32 %v1465_v4, %v1396_v22  ;;  %v1498_v19 = vadd.f32 %v1466_v41, %v1397_v10  ;;  %v1566_v53 = vmul.f32 %v3975_v59, %v3820_v40  ;;  %v1413_v11 = vadd.f32 %v1381_v28, %v1312_v63  ;;  %v3990_v22 = vld [vmem:[#allocation2 + $0x99] sm:$0xff]  ;;  %v4008_v63 = vld [vmem:[%s4590_s3 + $0x6] ss:$0 sm:$0xff] }
 0x16b   : > { %4650 = vst [vmem:[#allocation5_spill] sm:$0xff] %v3970_v52  ;;  %v2837_v36 = vpop.eup %2836  ;;  %v2067_v51 = vadd.f32 1.0, %v2835_v35  ;;  %2846 = vpow2.f32 %v2518_v57  ;;  %v1481_v27 = vmul.f32 %v3957_v47, %v3847_v2  ;;  %v3983_v6 = vld [vmem:[#allocation2 + $0x90] sm:$0xff]  ;;  %v3985_v17 = vld [vmem:[#allocation2 + $0x98] sm:$0xff]  ;;  %v2521_v45 = vmul.f32 -1.442695, %v3967_v1 }
 0x16c   : > { %v2068_v56 = vadd.f32 1.0, %v2837_v36  ;;  %v1482_v50 = vmul.f32 %v3957_v47, %v3849_v13  ;;  %v1598_v3 = vadd.f32 %v1566_v53, %v1497_v48  ;;  %4651 = vst [vmem:[#allocation12_spill] sm:$0xff] %v3990_v22  ;;  %v3992_v10 = vld [vmem:[#allocation2 + $0x9a] sm:$0xff]  ;;  %v1599_v5 = vadd.f32 %v1567_v8, %v1498_v19  ;;  %v4000_v57 = vld [vmem:[#allocation2 + $0x91] sm:$0xff]  ;;  %v4021_v19 = vld [vmem:[%s4590_s3 + $0x7] ss:$0 sm:$0xff] }
 0x16d   : > { %2848 = vrcp.f32 %v2067_v51  ;;  %4652 = vst [vmem:[#allocation13_spill] sm:$0xff] %v3992_v10  ;;  %v3994_v16 = vld [vmem:[#allocation2 + $0x150] sm:$0xff]  ;;  %v1583_v49 = vmul.f32 %v3975_v59, %v3873_v34  ;;  %v1513_v38 = vadd.f32 %v1481_v27, %v1412_v43  ;;  %4653 = vst [vmem:[#allocation14_spill] sm:$0xff] %v4000_v57  ;;  %v2537_v18 = vmul.f32 -1.442695, %v3970_v52  ;;  %v4014_v48 = vld [vmem:[#allocation2 + $0x158] sm:$0xff] }
 0x16e   : > { %2850 = vrcp.f32 %v2068_v56  ;;  %v1514_v41 = vadd.f32 %v1482_v50, %v1413_v11  ;;  %v1582_v4 = vmul.f32 %v3975_v59, %v3869_v42  ;;  %v1668_v28 = vmul.f32 %v4008_v63, %v3983_v6  ;;  %v4028_v8 = vld [vmem:[%s4590_s3 + $0x8] ss:$0 sm:$0xff]  ;;  %v4032_v43 = vld [vmem:[#allocation2 + $0x92] sm:$0xff] }
 0x16f   : > { %2852 = vpow2.f32 %v2534_v54  ;;  %v1669_v35 = vmul.f32 %v4008_v63, %v3985_v17  ;;  %v4016_v54 = vld [vmem:[#allocation2 + $0x151] sm:$0xff]  ;;  %v1770_v36 = vmul.f32 %v4021_v19, %v3990_v22  ;;  %v1871_v51 = vmul.f32 %v4028_v8, %v3992_v10 }
 0x170   : > { %v1081_v53 = vmul.f32 %v3896_v9, %v3994_v16  ;;  %2854 = vpow2.f32 %v2521_v45  ;;  %v1183_v11 = vmul.f32 %v3839_v0, %v3998_v33  ;;  %v1700_v27 = vadd.f32 %v1668_v28, %v1598_v3  ;;  %v4040_v32 = vld [vmem:[#allocation2 + $0x152] sm:$0xff] }
 0x171   : > { %v2839_v56 = vpop.eup %2838  ;;  %v1701_v50 = vadd.f32 %v1669_v35, %v1599_v5  ;;  %v1769_v39 = vmul.f32 %v4021_v19, %v4000_v57  ;;  %v1082_v52 = vmul.f32 %v3896_v9, %v4014_v48  ;;  %v1182_v10 = vmul.f32 %v3839_v0, %v4016_v54  ;;  %v4050_v57 = vld [vmem:[#allocation2 + $0x15a] sm:$0xff] }
 0x172   : > { %v2841_v23 = vpop.eup %2840  ;;  %v2083_v61 = vadd.f32 1.0, %v2839_v56  ;;  %2856 = vpow2.f32 %v2537_v18  ;;  %v1870_v3 = vmul.f32 %v4028_v8, %v4032_v43  ;;  %v1283_v35 = vmul.f32 %v3862_v14, %v4040_v32 }
 0x173   : > { %v2084_v45 = vadd.f32 1.0, %v2841_v23  ;;  %v1801_v22 = vadd.f32 %v1769_v39, %v1700_v27  ;;  %v1802_v1 = vadd.f32 %v1770_v36, %v1701_v50  ;;  %v1214_v5 = vadd.f32 %v1182_v10, %v1081_v53 }
 0x174   : > { %2858 = vrcp.f32 %v2083_v61  ;;  %v1215_v28 = vadd.f32 %v1183_v11, %v1082_v52  ;;  %v1614_v56 = vadd.f32 %v1582_v4, %v1513_v38  ;;  %v1615_v23 = vadd.f32 %v1583_v49, %v1514_v41  ;;  %v4057_v61 = vld [vmem:[%s4591_s4] ss:$0 sm:$0xff] }
 0x175   : > { %2860 = vrcp.f32 %v2084_v45  ;;  %v1902_v34 = vadd.f32 %v1870_v3, %v1801_v22  ;;  %v1903_v42 = vadd.f32 %v1871_v51, %v1802_v1  ;;  %v2843_v58 = vpop.eup %2842  ;;  %v4052_v18 = vadd.f32 %v1283_v35, %v1214_v5  ;;  %v670_v3 = vpop.f32.mrf.mxu0 }
 0x176   : > { %v2845_v39 = vpop.eup %2844  ;;  %v1684_v22 = vmul.f32 %v4008_v63, %v3994_v16  ;;  %v1786_v38 = vmul.f32 %v4021_v19, %v3998_v33  ;;  %v1887_v49 = vmul.f32 %v4028_v8, %v4050_v57  ;;  %v1685_v41 = vmul.f32 %v4008_v63, %v4014_v48 }
 0x177   : > { %4654 = vst [vmem:[#allocation15_spill] sm:$0xff] %v4052_v18  ;;  %v4060_v52 = vadd.f32 %v4057_v61, %v1902_v34  ;;  %v4063_v10 = vadd.f32 %v4057_v61, %v1903_v42  ;;  %v1785_v51 = vmul.f32 %v4021_v19, %v4016_v54  ;;  %v1886_v50 = vmul.f32 %v4028_v8, %v4040_v32 }
 0x178   : > { %v2847_v1 = vpop.eup %2846  ;;  %v1716_v36 = vadd.f32 %v1684_v22, %v1614_v56  ;;  %v1717_v27 = vadd.f32 %v1685_v41, %v1615_v23  ;;  %v964_v45 = vmul.f32 %v2843_v58, %v3761_v24  ;;  %v980_v56 = vmul.f32 %v2845_v39, %v3769_v7 }
 0x179   : > { %v2556_v34 = vmul.f32 -1.442695, %v4060_v52  ;;  %v2557_v42 = vmul.f32 -1.442695, %v4063_v10  ;;  %v867_v23 = vadd.f32 1.0, %v2847_v1  ;;  %v4094_v7 = vadd.f32 %v3758_v12, %v670_v3 }
 0x17a   : > { %v2849_v4 = vpop.eup %2848  ;;  %v1817_v18 = vadd.f32 %v1785_v51, %v1716_v36  ;;  %997 = vst.msk [vmem:[#allocation2 + $0xb1] sm:$0xff] %vm351_vm0, %v964_v45  ;;  %1013 = vst.msk [vmem:[#allocation2 + $0x171] sm:$0xff] %vm351_vm0, %v980_v56  ;;  %v1064_v3 = vmul.f32 %v3896_v9, %v3792_v20  ;;  %v2962_v20 = vld [vmem:[#allocation2 + $0xe2] sm:$0xff] }
 0x17b   : > { %v2851_v53 = vpop.eup %2850  ;;  %v2163_v11 = vmul.f32 %v2849_v4, %v3852_v44  ;;  %2862 = vpow2.f32 %v2556_v34  ;;  %v1818_v44 = vadd.f32 %v1786_v38, %v1717_v27 }
 0x17c   : > { %v2853_v5 = vpop.eup %2852  ;;  %v2164_v35 = vmul.f32 %v2851_v53, %v3867_v25  ;;  %2864 = vpow2.f32 %v2557_v42  ;;  %v1284_v25 = vmul.f32 %v3862_v14, %v4050_v57  ;;  %v1918_v58 = vadd.f32 %v1886_v50, %v1817_v18 }
 0x17d   : > { %2195 = vst.msk [vmem:[%s3604_s12 + $0x30] sm:$0xff] %vm351_vm0, %v2163_v11  ;;  %v2232_v22 = vsel %vm351_vm0, %v2163_v11, 0.0  ;;  %v2855_v41 = vpop.eup %2854  ;;  %v1919_v38 = vadd.f32 %v1887_v49, %v1818_v44  ;;  %2866 = vrcp.f32 %v867_v23  ;;  %v883_v4 = vadd.f32 1.0, %v2853_v5 }
 0x17e   : > { %2196 = vst.msk [vmem:[%s3604_s12 + $0x38] sm:$0xff] %vm351_vm0, %v2164_v35  ;;  %v2233_v24 = vadd.f32 %v2232_v22, %v3914_v29  ;;  %v2234_v39 = vsel %vm351_vm0, %v2164_v35, 0.0  ;;  %v4100_v42 = vadd.f32 %v4057_v61, %v1918_v58  ;;  %v4102_v29 = vadd.f32 %v1284_v25, %v1215_v28  ;;  %v2964_v25 = vld [vmem:[#allocation2 + $0xe0] sm:$0xff] }
 0x17f   : > { %v2857_v1 = vpop.eup %2856  ;;  %v4105_v18 = vadd.f32 %v4057_v61, %v1919_v38  ;;  %2868 = vrcp.f32 %v883_v4  ;;  %v870_v36 = vadd.f32 1.0, %v2855_v41  ;;  %v1063_v49 = vmul.f32 %v3896_v9, %v3786_v21  ;;  %v2966_v4 = vld [vmem:[#allocation2 + $0xda] sm:$0xff] }
 0x180   : > { %v4097_v34 = vadd.f32 %v2234_v39, %v2233_v24  ;;  %v2572_v53 = vmul.f32 -1.442695, %v4100_v42  ;;  %v2520_v11 = vmul.f32 -1.442695, %v4094_v7  ;;  %v1164_v28 = vmul.f32 %v3839_v0, %v3797_v55  ;;  %v2965_v39 = vld [vmem:[#allocation2 + $0xd9] sm:$0xff] }
 0x181   : > { %v2859_v51 = vpop.eup %2858  ;;  %v2573_v45 = vmul.f32 -1.442695, %v4105_v18  ;;  %2870 = vrcp.f32 %v870_v36  ;;  %v886_v21 = vadd.f32 1.0, %v2857_v1  ;;  %v1165_v55 = vmul.f32 %v3839_v0, %v3810_v37  ;;  %v2963_v37 = vld [vmem:[#allocation2 + $0xd8] sm:$0xff] }
 0x182   : > { %v2861_v27 = vpop.eup %2860  ;;  %v4114_v50 = vmul.f32 %v2859_v51, %v3917_v46  ;;  %2872 = vpow2.f32 %v2572_v53  ;;  %v2961_v46 = vld [vmem:[#allocation2 + $0xe1] sm:$0xff]  ;;  %v1196_v22 = vadd.f32 %v1164_v28, %v1063_v49  ;;  %v4140_v44 = vmul.f32 %v2962_v20, %v4028_v8 }
 0x183   : > { %v4120_v5 = vmul.f32 %v2861_v27, %v3924_v31  ;;  %2874 = vpow2.f32 %v2573_v45  ;;  %v4131_v35 = vmul.f32 %v2961_v46, %v3957_v47  ;;  %v4134_v31 = vmul.f32 %v2962_v20, %v3975_v59 }
 0x184   : > { %4655 = vst [vmem:[#allocation16_spill] sm:$0xff] %v4114_v50  ;;  %2211 = vst.msk [vmem:[%s3604_s12 + $0xb0] sm:$0xff] %vm351_vm0, %v4114_v50  ;;  %2876 = vpow2.f32 %v2520_v11  ;;  %v4137_v56 = vmul.f32 %v2961_v46, %v4021_v19  ;;  %v4143_v23 = vmul.f32 %v2963_v37, %v3910_v26  ;;  %v1197_v41 = vadd.f32 %v1165_v55, %v1064_v3 }
 0x185   : > { %4656 = vst [vmem:[#allocation17_spill] sm:$0xff] %v4120_v5  ;;  %2212 = vst.msk [vmem:[%s3604_s12 + $0xb8] sm:$0xff] %vm351_vm0, %v4120_v5  ;;  %2878 = vrcp.f32 %v886_v21  ;;  %v4146_v58 = vmul.f32 %v2964_v25, %v3910_v26  ;;  %v4149_v38 = vmul.f32 %v2965_v39, %v3957_v47  ;;  %v4152_v1 = vmul.f32 %v2966_v4, %v3975_v59  ;;  %v2970_v5 = vld [vmem:[#allocation2 + $0xf8] sm:$0xff] }
 0x186   : > { %4657 = vst [vmem:[#allocation18_spill] sm:$0xff] %v4140_v44  ;;  %v1265_v36 = vmul.f32 %v3862_v14, %v3820_v40  ;;  %v1266_v49 = vmul.f32 %v3862_v14, %v3824_v60  ;;  %v1079_v53 = vmul.f32 %v3896_v9, %v3834_v15  ;;  %v1180_v11 = vmul.f32 %v3839_v0, %v3847_v2 }
 0x187   : > { %v1080_v45 = vmul.f32 %v3896_v9, %v3843_v62  ;;  %v1366_v3 = vmul.f32 %v3910_v26, %v3983_v6  ;;  %v4167_v55 = vmul.f32 %v2963_v37, %v4008_v63  ;;  %v1367_v15 = vmul.f32 %v3910_v26, %v3985_v17 }
 0x188   : > { %v2863_v24 = vpop.eup %2862  ;;  %v1297_v28 = vadd.f32 %v1265_v36, %v1196_v22  ;;  %v1298_v60 = vadd.f32 %v1266_v49, %v1197_v41  ;;  %v4172_v2 = vmul.f32 %v2964_v25, %v4008_v63  ;;  %v1181_v46 = vmul.f32 %v3839_v0, %v3849_v13  ;;  %v2967_v41 = vld [vmem:[#allocation2 + $0xf9] sm:$0xff] }
 0x189   : > { %v2865_v51 = vpop.eup %2864  ;;  %v2069_v27 = vadd.f32 1.0, %v2863_v24  ;;  %v4178_v22 = vmul.f32 %v2965_v39, %v4021_v19  ;;  %v4181_v37 = vmul.f32 %v2966_v4, %v4028_v8  ;;  %v4184_v24 = vmul.f32 %v2967_v41, %v4021_v19  ;;  %v2968_v25 = vld [vmem:[#allocation2 + $0xfa] sm:$0xff]  ;;  %v750_v39 = vpop.f32.mrf.mxu1 }
 0x18a   : > { %v2070_v21 = vadd.f32 1.0, %v2865_v51  ;;  %v2867_v40 = vpop.eup %2866  ;;  %v1212_v36 = vadd.f32 %v1180_v11, %v1079_v53  ;;  %v4187_v51 = vmul.f32 %v2968_v25, %v4028_v8  ;;  %v1213_v13 = vadd.f32 %v1181_v46, %v1080_v45  ;;  %v4662_v53 = vld [vmem:[#allocation6_spill] sm:$0xff]  ;;  %v4664_v46 = vld [vmem:[#allocation8_spill] sm:$0xff] }
 0x18b   : > { %2880 = vrcp.f32 %v2069_v27  ;;  %v963_v62 = vmul.f32 %v2867_v40, %v3857_v30  ;;  %4658 = vst [vmem:[#allocation19_spill] sm:$0xff] %v4181_v37  ;;  %4659 = vst [vmem:[#allocation20_spill] sm:$0xff] %v4184_v24  ;;  %v1398_v49 = vadd.f32 %v1366_v3, %v1297_v28  ;;  %v4661_v30 = vld [vmem:[#allocation3_spill] sm:$0xff]  ;;  %v4195_v41 = vmul.f32 %v2970_v5, %v4008_v63  ;;  %v4667_v24 = vld [vmem:[#allocation12_spill] sm:$0xff] }
 0x18c   : > { %2882 = vrcp.f32 %v2070_v21  ;;  %v2869_v20 = vpop.eup %2868  ;;  %4660 = vst [vmem:[#allocation21_spill] sm:$0xff] %v4187_v51  ;;  %v2969_v40 = vld [vmem:[#allocation2 + $0xf0] sm:$0xff]  ;;  %v1281_v11 = vmul.f32 %v3862_v14, %v4662_v53  ;;  %v1399_v25 = vadd.f32 %v1367_v15, %v1298_v60  ;;  %v1468_v60 = vmul.f32 %v3957_v47, %v4667_v24 }
 0x18d   : > { %996 = vst.msk [vmem:[#allocation2 + $0xa9] sm:$0xff] %vm351_vm0, %v963_v62  ;;  %v979_v27 = vmul.f32 %v2869_v20, %v4661_v30  ;;  %v4192_v4 = vmul.f32 %v2969_v40, %v4008_v63  ;;  %v2971_v28 = vld [vmem:[#allocation2 + $0xf1] sm:$0xff]  ;;  %v1282_v62 = vmul.f32 %v3862_v14, %v4664_v46  ;;  %v4665_v20 = vld [vmem:[#allocation14_spill] sm:$0xff]  ;;  %v4211_v53 = vadd.f32 %v3758_v12, %v750_v39 }
 0x18e   : > { %v2871_v21 = vpop.eup %2870  ;;  %v4200_v3 = vmul.f32 %v2971_v28, %v4021_v19  ;;  %v1467_v30 = vmul.f32 %v3957_v47, %v4665_v20  ;;  %v4666_v40 = vld [vmem:[#allocation4_spill] sm:$0xff]  ;;  %v1313_v51 = vadd.f32 %v1281_v11, %v1212_v36  ;;  %v1065_v46 = vmul.f32 %v3896_v9, %v3983_v6 }
 0x18f   : > { %v2873_v45 = vpop.eup %2872  ;;  %1012 = vst.msk [vmem:[#allocation2 + $0x169] sm:$0xff] %vm351_vm0, %v979_v27  ;;  %v966_v5 = vmul.f32 %v2871_v21, %v4666_v40  ;;  %v1314_v44 = vadd.f32 %v1282_v62, %v1213_v13  ;;  %v1066_v27 = vmul.f32 %v3896_v9, %v3985_v17  ;;  %v1500_v36 = vadd.f32 %v1468_v60, %v1399_v25  ;;  %v2972_v13 = vld [vmem:[#allocation2 + $0xf2] sm:$0xff]  ;;  %v4669_v17 = vld [vmem:[#allocation13_spill] sm:$0xff] }
 0x190   : > { %4663 = vst [vmem:[#allocation3_spill] sm:$0xff] %v4200_v3  ;;  %v2875_v50 = vpop.eup %2874  ;;  %v2085_v15 = vadd.f32 1.0, %v2873_v45  ;;  %v1499_v3 = vadd.f32 %v1467_v30, %v1398_v49  ;;  %v1382_v21 = vmul.f32 %v3910_v26, %v3994_v16  ;;  %v1166_v12 = vmul.f32 %v3839_v0, %v4665_v20  ;;  %v4670_v25 = vld [vmem:[#allocation5_spill] sm:$0xff] }
 0x191   : > { %v2877_v28 = vpop.eup %2876  ;;  %v2086_v37 = vadd.f32 1.0, %v2875_v50  ;;  %999 = vst.msk [vmem:[#allocation2 + $0xc9] sm:$0xff] %vm351_vm0, %v966_v5  ;;  %v1568_v6 = vmul.f32 %v3975_v59, %v4032_v43  ;;  %v1383_v50 = vmul.f32 %v3910_v26, %v4014_v48  ;;  %v4227_v49 = vmul.f32 %v2972_v13, %v4028_v8 }
 0x192   : > { %2884 = vrcp.f32 %v2085_v15  ;;  %v2879_v11 = vpop.eup %2878  ;;  %v1569_v39 = vmul.f32 %v3975_v59, %v4669_v17  ;;  %v869_v62 = vadd.f32 1.0, %v2877_v28  ;;  %v1167_v20 = vmul.f32 %v3839_v0, %v4667_v24 }
 0x193   : > { %2886 = vrcp.f32 %v2086_v37  ;;  %4668 = vst [vmem:[#allocation6_spill] sm:$0xff] %v4227_v49  ;;  %v982_v45 = vmul.f32 %v2879_v11, %v4670_v25  ;;  %v1268_v30 = vmul.f32 %v3862_v14, %v4669_v17  ;;  %v1600_v48 = vadd.f32 %v1568_v6, %v1499_v3  ;;  %v1132_v17 = vld [vmem:[#allocation2 + $0xb1] sm:$0xff] }
 0x194   : > { %v4231_v16 = vld [vmem:[#allocation2 + $0xa8] sm:$0xff]  ;;  %v4238_v37 = vld [vmem:[#allocation2 + $0xb0] sm:$0xff]  ;;  %v2536_v40 = vmul.f32 -1.442695, %v4211_v53  ;;  %v1484_v5 = vmul.f32 %v3957_v47, %v3998_v33  ;;  %v1585_v60 = vmul.f32 %v3975_v59, %v4050_v57  ;;  %v1414_v15 = vadd.f32 %v1382_v21, %v1313_v51 }
 0x195   : > { %v4245_v11 = vld [vmem:[#allocation2 + $0xa9] sm:$0xff]  ;;  %v1601_v28 = vadd.f32 %v1569_v39, %v1500_v36  ;;  %1015 = vst.msk [vmem:[#allocation2 + $0x189] sm:$0xff] %vm351_vm0, %v982_v45  ;;  %v1198_v13 = vadd.f32 %v1166_v12, %v1065_v46  ;;  %v1199_v3 = vadd.f32 %v1167_v20, %v1066_v27  ;;  %v1415_v6 = vadd.f32 %v1383_v50, %v1314_v44  ;;  %v1233_v44 = vld [vmem:[#allocation2 + $0xb2] sm:$0xff]  ;;  %v1654_v20 = vld [vmem:[#allocation2 + $0x1a0] sm:$0xff] }
 0x196   : > { %v1670_v25 = vmul.f32 %v4008_v63, %v4231_v16  ;;  %v1483_v57 = vmul.f32 %v3957_v47, %v4016_v54  ;;  %v4253_v51 = vld [vmem:[#allocation2 + $0xaa] sm:$0xff]  ;;  %v1671_v36 = vmul.f32 %v4008_v63, %v4238_v37  ;;  %2888 = vrcp.f32 %v869_v62  ;;  %v1653_v39 = vld [vmem:[#allocation2 + $0x198] sm:$0xff] }
 0x197   : > { %v1771_v21 = vmul.f32 %v4021_v19, %v4245_v11  ;;  %2890 = vpow2.f32 %v2536_v40  ;;  %v1772_v54 = vmul.f32 %v4021_v19, %v1132_v17  ;;  %v1872_v62 = vmul.f32 %v4028_v8, %v4253_v51 }
 0x198   : > { %v2881_v24 = vpop.eup %2880  ;;  %v1702_v27 = vadd.f32 %v1670_v25, %v1600_v48  ;;  %v1515_v12 = vadd.f32 %v1483_v57, %v1414_v15  ;;  %v1703_v50 = vadd.f32 %v1671_v36, %v1601_v28  ;;  %v1754_v48 = vld [vmem:[#allocation2 + $0x199] sm:$0xff]  ;;  %v1267_v40 = vmul.f32 %v3862_v14, %v4032_v43  ;;  %v1046_v36 = vld [vmem:[#allocation2 + $0x168] sm:$0xff] }
 0x199   : > { %v2883_v49 = vpop.eup %2882  ;;  %v2165_v33 = vmul.f32 %v2881_v24, %v4060_v52  ;;  %v1873_v15 = vmul.f32 %v4028_v8, %v1233_v44  ;;  %v1584_v25 = vmul.f32 %v3975_v59, %v4040_v32  ;;  %v4284_v43 = vmul.f32 %v4021_v19, %v1754_v48 }
 0x19a   : > { %v2166_v46 = vmul.f32 %v2883_v49, %v4063_v10  ;;  %v1516_v10 = vadd.f32 %v1484_v5, %v1415_v6  ;;  %v1803_v49 = vadd.f32 %v1771_v21, %v1702_v27  ;;  %v1804_v24 = vadd.f32 %v1772_v54, %v1703_v50  ;;  %v1047_v54 = vld [vmem:[#allocation2 + $0x170] sm:$0xff] }
 0x19b   : > { %2197 = vst.msk [vmem:[%s3604_s12 + $0x40] sm:$0xff] %vm351_vm0, %v2165_v33  ;;  %v2236_v52 = vsel %vm351_vm0, %v2165_v33, 0.0  ;;  %v4278_v5 = vmul.f32 %v4008_v63, %v1653_v39  ;;  %v1299_v6 = vadd.f32 %v1267_v40, %v1198_v13  ;;  %v4281_v27 = vmul.f32 %v4008_v63, %v1654_v20  ;;  %4674 = vst [vmem:[#allocation12_spill] sm:$0xff] %v4284_v43  ;;  %v1249_v20 = vld [vmem:[#allocation2 + $0x172] sm:$0xff] }
 0x19c   : > { %2198 = vst.msk [vmem:[%s3604_s12 + $0x48] sm:$0xff] %vm351_vm0, %v2166_v46  ;;  %v2237_v45 = vadd.f32 %v2236_v52, %v4097_v34  ;;  %v2238_v28 = vsel %vm351_vm0, %v2166_v46, 0.0  ;;  %v1904_v33 = vadd.f32 %v1872_v62, %v1803_v49  ;;  %v1905_v57 = vadd.f32 %v1873_v15, %v1804_v24  ;;  %v1148_v62 = vld [vmem:[#allocation2 + $0x171] sm:$0xff] }
 0x19d   : > { %4672 = vst [vmem:[#allocation14_spill] sm:$0xff] %v4278_v5  ;;  %4673 = vst [vmem:[#allocation4_spill] sm:$0xff] %v4281_v27  ;;  %v1616_v46 = vadd.f32 %v1584_v25, %v1515_v12  ;;  %v1300_v52 = vadd.f32 %v1268_v30, %v1199_v3  ;;  %v1617_v50 = vadd.f32 %v1585_v60, %v1516_v10  ;;  %v4305_v12 = vld [vmem:[#allocation2 + $0x169] sm:$0xff] }
 0x19e   : > { %v4275_v34 = vadd.f32 %v2238_v28, %v2237_v45  ;;  %v4287_v32 = vadd.f32 %v4057_v61, %v1904_v33  ;;  %v1169_v45 = vmul.f32 %v3839_v0, %v1132_v17  ;;  %v4294_v49 = vmul.f32 %v3862_v14, %v1233_v44  ;;  %v1248_v25 = vld [vmem:[#allocation2 + $0x16a] sm:$0xff] }
 0x19f   : > { %v2885_v21 = vpop.eup %2884  ;;  %v4297_v30 = vadd.f32 %v4057_v61, %v1905_v57  ;;  %v1368_v60 = vmul.f32 %v3910_v26, %v4231_v16  ;;  %v1686_v10 = vmul.f32 %v4008_v63, %v1046_v36  ;;  %v1470_v48 = vmul.f32 %v3957_v47, %v1132_v17 }
 0x1a0   : > { %4671 = vst [vmem:[#allocation8_spill] sm:$0xff] %v4275_v34  ;;  %4675 = vst [vmem:[#allocation13_spill] sm:$0xff] %v4287_v32  ;;  %v2887_v39 = vpop.eup %2886  ;;  %v4290_v13 = vmul.f32 %v2885_v21, %v4100_v42  ;;  %v2558_v42 = vmul.f32 -1.442695, %v4287_v32  ;;  %v4313_v40 = vmul.f32 %v3975_v59, %v1233_v44  ;;  %v1687_v15 = vmul.f32 %v4008_v63, %v1047_v54 }
 0x1a1   : > { %4677 = vst [vmem:[#allocation22_spill] sm:$0xff] %v4297_v30  ;;  %v4300_v3 = vmul.f32 %v2887_v39, %v4105_v18  ;;  %v2559_v18 = vmul.f32 -1.442695, %v4297_v30  ;;  %v1185_v24 = vmul.f32 %v3839_v0, %v1148_v62  ;;  %v4322_v28 = vmul.f32 %v3862_v14, %v1249_v20 }
 0x1a2   : > { %4676 = vst [vmem:[#allocation5_spill] sm:$0xff] %v4290_v13  ;;  %2213 = vst.msk [vmem:[%s3604_s12 + $0xc0] sm:$0xff] %vm351_vm0, %v4290_v13  ;;  %2892 = vpow2.f32 %v2558_v42  ;;  %v1718_v33 = vadd.f32 %v1686_v10, %v1616_v46  ;;  %v1788_v17 = vmul.f32 %v4021_v19, %v1148_v62  ;;  %v1719_v44 = vadd.f32 %v1687_v15, %v1617_v50 }
 0x1a3   : > { %4678 = vst [vmem:[#allocation23_spill] sm:$0xff] %v4300_v3  ;;  %2214 = vst.msk [vmem:[%s3604_s12 + $0xc8] sm:$0xff] %vm351_vm0, %v4300_v3  ;;  %2894 = vpow2.f32 %v2559_v18  ;;  %v1787_v57 = vmul.f32 %v4021_v19, %v4305_v12  ;;  %v2889_v21 = vpop.eup %2888  ;;  %v1067_v39 = vmul.f32 %v3896_v9, %v4231_v16  ;;  %v1168_v3 = vmul.f32 %v3839_v0, %v4245_v11 }
 0x1a4   : > { %4679 = vst [vmem:[#allocation24_spill] sm:$0xff] %v4322_v28  ;;  %v1369_v13 = vmul.f32 %v3910_v26, %v4238_v37  ;;  %v1400_v42 = vadd.f32 %v1368_v60, %v1299_v6  ;;  %v2891_v34 = vpop.eup %2890  ;;  %v1889_v46 = vmul.f32 %v4028_v8, %v1249_v20  ;;  %v1820_v18 = vadd.f32 %v1788_v17, %v1719_v44 }
 0x1a5   : > { %v1819_v10 = vadd.f32 %v1787_v57, %v1718_v33  ;;  %v1888_v50 = vmul.f32 %v4028_v8, %v1248_v25  ;;  %v4336_v15 = vmul.f32 %v3957_v47, %v1148_v62  ;;  %v1469_v16 = vmul.f32 %v3957_v47, %v4245_v11 }
 0x1a6   : > { %v1083_v43 = vmul.f32 %v3896_v9, %v1046_v36  ;;  %v1184_v27 = vmul.f32 %v3839_v0, %v4305_v12  ;;  %v1068_v6 = vmul.f32 %v3896_v9, %v4238_v37  ;;  %v1921_v5 = vadd.f32 %v1889_v46, %v1820_v18  ;;  %v1235_v46 = vld [vmem:[#allocation2 + $0xca] sm:$0xff] }
 0x1a7   : > { %v1920_v60 = vadd.f32 %v1888_v50, %v1819_v10  ;;  %v965_v33 = vmul.f32 %v2889_v21, %v4094_v7  ;;  %v1200_v17 = vadd.f32 %v1168_v3, %v1067_v39  ;;  %v1401_v44 = vadd.f32 %v1369_v13, %v1300_v52 }
 0x1a8   : > { %v1501_v57 = vadd.f32 %v1469_v16, %v1400_v42  ;;  %v885_v62 = vadd.f32 1.0, %v2891_v34  ;;  %v1084_v28 = vmul.f32 %v3896_v9, %v1047_v54  ;;  %v1384_v11 = vmul.f32 %v3910_v26, %v1046_v36  ;;  %v1134_v42 = vld [vmem:[#allocation2 + $0xc9] sm:$0xff] }
 0x1a9   : > { %v4349_v30 = vadd.f32 %v4057_v61, %v1920_v60  ;;  %v4352_v32 = vadd.f32 %v4057_v61, %v1921_v5  ;;  %998 = vst.msk [vmem:[#allocation2 + $0xc1] sm:$0xff] %vm351_vm0, %v965_v33  ;;  %v4356_v37 = vmul.f32 %v3975_v59, %v1249_v20  ;;  %v1269_v7 = vmul.f32 %v3862_v14, %v4253_v51 }
 0x1aa   : > { %v1216_v52 = vadd.f32 %v1184_v27, %v1083_v43  ;;  %2896 = vrcp.f32 %v885_v62  ;;  %v1570_v34 = vmul.f32 %v3975_v59, %v4253_v51  ;;  %v1385_v36 = vmul.f32 %v3910_v26, %v1047_v54  ;;  %v4682_v27 = vld [vmem:[#allocation15_spill] sm:$0xff] }
 0x1ab   : > { %4680 = vst [vmem:[#allocation25_spill] sm:$0xff] %v4349_v30  ;;  %4681 = vst [vmem:[#allocation26_spill] sm:$0xff] %v4352_v32  ;;  %v2574_v13 = vmul.f32 -1.442695, %v4349_v30  ;;  %v2575_v5 = vmul.f32 -1.442695, %v4352_v32  ;;  %v1201_v3 = vadd.f32 %v1169_v45, %v1068_v6  ;;  %v1301_v21 = vadd.f32 %v1269_v7, %v1200_v17 }
 0x1ac   : > { %v1502_v39 = vadd.f32 %v1470_v48, %v1401_v44  ;;  %v1285_v20 = vmul.f32 %v3862_v14, %v1248_v25  ;;  %v1602_v10 = vadd.f32 %v1570_v34, %v1501_v57  ;;  %v4366_v18 = vadd.f32 %v1185_v24, %v1084_v28 }
 0x1ad   : > { %v1416_v43 = vadd.f32 %v1384_v11, %v4682_v27  ;;  %2898 = vpow2.f32 %v2574_v13  ;;  %v1485_v54 = vmul.f32 %v3957_v47, %v4305_v12  ;;  %v4374_v50 = vmul.f32 %v3975_v59, %v1248_v25 }
 0x1ae   : > { %v4369_v51 = vadd.f32 %v1285_v20, %v1216_v52  ;;  %2900 = vpow2.f32 %v2575_v5  ;;  %v4377_v48 = vadd.f32 %v1385_v36, %v4102_v29  ;;  %v1171_v16 = vmul.f32 %v3839_v0, %v1134_v42 }
 0x1af   : > { %v2893_v45 = vpop.eup %2892  ;;  %v1272_v24 = vmul.f32 %v3862_v14, %v1235_v46  ;;  %v1472_v28 = vmul.f32 %v3957_v47, %v1134_v42  ;;  %v1573_v33 = vmul.f32 %v3975_v59, %v1235_v46  ;;  %v1774_v12 = vmul.f32 %v4021_v19, %v1134_v42 }
 0x1b0   : > { %v2895_v6 = vpop.eup %2894  ;;  %v2071_v60 = vadd.f32 1.0, %v2893_v45  ;;  %v1032_v17 = vld [vmem:[#allocation2 + $0xc0] sm:$0xff]  ;;  %v1033_v25 = vld [vmem:[#allocation2 + $0xc8] sm:$0xff]  ;;  %v1302_v57 = vadd.f32 %v4294_v49, %v1201_v3  ;;  %v1603_v13 = vadd.f32 %v4313_v40, %v1502_v39 }
 0x1b1   : > { %v1133_v44 = vld [vmem:[#allocation2 + $0xc1] sm:$0xff]  ;;  %v2072_v62 = vadd.f32 1.0, %v2895_v6  ;;  %v1069_v29 = vmul.f32 %v3896_v9, %v1032_v17  ;;  %v1070_v11 = vmul.f32 %v3896_v9, %v1033_v25  ;;  %v1370_v34 = vmul.f32 %v3910_v26, %v1032_v17 }
 0x1b2   : > { %v1170_v7 = vmul.f32 %v3839_v0, %v1133_v44  ;;  %v1234_v52 = vld [vmem:[#allocation2 + $0xc2] sm:$0xff]  ;;  %2902 = vrcp.f32 %v2071_v60  ;;  %v1371_v36 = vmul.f32 %v3910_v26, %v1033_v25  ;;  %v1471_v27 = vmul.f32 %v3957_v47, %v1133_v44 }
 0x1b3   : > { %2904 = vrcp.f32 %v2072_v62  ;;  %v1203_v20 = vadd.f32 %v1171_v16, %v1070_v11  ;;  %v1271_v49 = vmul.f32 %v3862_v14, %v1234_v52  ;;  %v1402_v3 = vadd.f32 %v1370_v34, %v1301_v21 }
 0x1b4   : > { %v1202_v5 = vadd.f32 %v1170_v7, %v1069_v29  ;;  %v1403_v42 = vadd.f32 %v1371_v36, %v1302_v57  ;;  %v1672_v9 = vmul.f32 %v4008_v63, %v1032_v17  ;;  %v1572_v6 = vmul.f32 %v3975_v59, %v1234_v52 }
 0x1b5   : > { %v1304_v45 = vadd.f32 %v1272_v24, %v1203_v20  ;;  %v1673_v60 = vmul.f32 %v4008_v63, %v1033_v25  ;;  %v1503_v32 = vadd.f32 %v1471_v27, %v1402_v3  ;;  %v1773_v39 = vmul.f32 %v4021_v19, %v1133_v44  ;;  %v4685_v20 = vld [vmem:[#allocation3_spill] sm:$0xff]  ;;  %v4686_v3 = vld [vmem:[#allocation20_spill] sm:$0xff]  ;;  %v4687_v27 = vld [vmem:[#allocation13_spill] sm:$0xff] }
 0x1b6   : > { %v1303_v0 = vadd.f32 %v1271_v49, %v1202_v5  ;;  %v1504_v30 = vadd.f32 %v1472_v28, %v1403_v42  ;;  %v1704_v40 = vadd.f32 %v1672_v9, %v1602_v10  ;;  %v1874_v62 = vmul.f32 %v4028_v8, %v1234_v52  ;;  %v4684_v52 = vld [vmem:[#allocation18_spill] sm:$0xff] }
 0x1b7   : > { %v2897_v16 = vpop.eup %2896  ;;  %v1405_v21 = vadd.f32 %v4146_v58, %v1304_v45  ;;  %v1705_v57 = vadd.f32 %v1673_v60, %v1603_v13  ;;  %v1604_v17 = vadd.f32 %v1572_v6, %v1503_v32  ;;  %v1875_v25 = vmul.f32 %v4028_v8, %v1235_v46  ;;  %v4689_v60 = vld [vmem:[#allocation6_spill] sm:$0xff] }
 0x1b8   : > { %v1404_v14 = vadd.f32 %v4143_v23, %v1303_v0  ;;  %v1605_v29 = vadd.f32 %v1573_v33, %v1504_v30  ;;  %v1805_v24 = vadd.f32 %v1773_v39, %v1704_v40  ;;  %v981_v11 = vmul.f32 %v2897_v16, %v4211_v53  ;;  %v1451_v0 = vld [vmem:[#allocation2 + $0x189] sm:$0xff]  ;;  %v4690_v39 = vld [vmem:[#allocation21_spill] sm:$0xff] }
 0x1b9   : > { %v1506_v10 = vadd.f32 %v4131_v35, %v1405_v21  ;;  %v1806_v44 = vadd.f32 %v1774_v12, %v1705_v57  ;;  %v1517_v34 = vadd.f32 %v1485_v54, %v1416_v43  ;;  %v1706_v23 = vadd.f32 %v4167_v55, %v1604_v17 }
 0x1ba   : > { %v1505_v28 = vadd.f32 %v4149_v38, %v1404_v14  ;;  %v2899_v7 = vpop.eup %2898  ;;  %v1707_v58 = vadd.f32 %v4172_v2, %v1605_v29  ;;  %v1906_v36 = vadd.f32 %v1874_v62, %v1805_v24  ;;  %1014 = vst.msk [vmem:[#allocation2 + $0x181] sm:$0xff] %vm351_vm0, %v981_v11  ;;  %v4691_v29 = vld [vmem:[#allocation24_spill] sm:$0xff] }
 0x1bb   : > { %v2901_v32 = vpop.eup %2900  ;;  %v2087_v30 = vadd.f32 1.0, %v2899_v7  ;;  %v1607_v46 = vadd.f32 %v4134_v31, %v1506_v10  ;;  %v1907_v33 = vadd.f32 %v1875_v25, %v1806_v44  ;;  %v1807_v35 = vadd.f32 %v4178_v22, %v1706_v23  ;;  %v1552_v23 = vld [vmem:[#allocation2 + $0x18a] sm:$0xff] }
 0x1bc   : > { %v1606_v53 = vadd.f32 %v4152_v1, %v1505_v28  ;;  %v2088_v38 = vadd.f32 1.0, %v2901_v32  ;;  %v1808_v12 = vadd.f32 %v4137_v56, %v1707_v58  ;;  %v4412_v43 = vadd.f32 %v4057_v61, %v1906_v36  ;;  %v4683_v1 = vld [vmem:[#allocation19_spill] sm:$0xff] }
 0x1bd   : > { %2906 = vrcp.f32 %v2087_v30  ;;  %v1709_v2 = vadd.f32 %v4195_v41, %v1607_v46  ;;  %v4417_v54 = vadd.f32 %v4057_v61, %v1907_v33  ;;  %v1908_v31 = vadd.f32 %v4683_v1, %v1807_v35  ;;  %v1855_v35 = vld [vmem:[#allocation2 + $0x19a] sm:$0xff] }
 0x1be   : > { %v1708_v55 = vadd.f32 %v4192_v4, %v1606_v53  ;;  %2908 = vrcp.f32 %v2088_v38  ;;  %v1909_v13 = vadd.f32 %v4684_v52, %v1808_v12  ;;  %v2560_v22 = vmul.f32 -1.442695, %v4412_v43  ;;  %v1755_v38 = vld [vmem:[#allocation2 + $0x1a1] sm:$0xff] }
 0x1bf   : > { %v2903_v5 = vpop.eup %2902  ;;  %v1518_v56 = vadd.f32 %v4336_v15, %v4377_v48  ;;  %v1810_v4 = vadd.f32 %v4686_v3, %v1709_v2  ;;  %v2561_v41 = vmul.f32 -1.442695, %v4417_v54  ;;  %v4431_v45 = vadd.f32 %v4057_v61, %v1908_v31  ;;  %v4688_v15 = vld [vmem:[#allocation22_spill] sm:$0xff]  ;;  %v4693_v3 = vld [vmem:[#allocation25_spill] sm:$0xff] }
 0x1c0   : > { %v1809_v49 = vadd.f32 %v4685_v20, %v1708_v55  ;;  %v2905_v42 = vpop.eup %2904  ;;  %v4428_v9 = vmul.f32 %v2903_v5, %v4687_v27  ;;  %v4434_v6 = vadd.f32 %v4057_v61, %v1909_v13  ;;  %2910 = vpow2.f32 %v2560_v22  ;;  %v4692_v5 = vld [vmem:[#allocation14_spill] sm:$0xff] }
 0x1c1   : > { %v4437_v48 = vmul.f32 %v2905_v42, %v4688_v15  ;;  %v1911_v16 = vadd.f32 %v4690_v39, %v1810_v4  ;;  %2912 = vpow2.f32 %v2561_v41  ;;  %v1349_v14 = vld [vmem:[#allocation2 + $0x180] sm:$0xff]  ;;  %v1350_v21 = vld [vmem:[#allocation2 + $0x188] sm:$0xff]  ;;  %v2562_v62 = vmul.f32 -1.442695, %v4431_v45  ;;  %v4695_v15 = vld [vmem:[#allocation4_spill] sm:$0xff] }
 0x1c2   : > { %v1910_v40 = vadd.f32 %v4689_v60, %v1809_v49  ;;  %v1450_v57 = vld [vmem:[#allocation2 + $0x181] sm:$0xff]  ;;  %2199 = vst.msk [vmem:[%s3604_s12 + $0x50] sm:$0xff] %vm351_vm0, %v4428_v9  ;;  %v2563_v17 = vmul.f32 -1.442695, %v4434_v6  ;;  %v1318_v24 = vadd.f32 %v4691_v29, %v4366_v18  ;;  %v1386_v11 = vmul.f32 %v3910_v26, %v1349_v14 }
 0x1c3   : > { %2200 = vst.msk [vmem:[%s3604_s12 + $0x58] sm:$0xff] %vm351_vm0, %v4437_v48  ;;  %v1618_v25 = vadd.f32 %v4374_v50, %v1517_v34  ;;  %v1488_v28 = vmul.f32 %v3957_v47, %v1451_v0  ;;  %v4458_v44 = vadd.f32 %v4057_v61, %v1911_v16  ;;  %v1551_v7 = vld [vmem:[#allocation2 + $0x182] sm:$0xff]  ;;  %2914 = vpow2.f32 %v2562_v62 }
 0x1c4   : > { %v4455_v10 = vadd.f32 %v4057_v61, %v1910_v40  ;;  %v1387_v18 = vmul.f32 %v3910_v26, %v1350_v21  ;;  %v1418_v58 = vadd.f32 %v1386_v11, %v4369_v51  ;;  %v1487_v36 = vmul.f32 %v3957_v47, %v1450_v57  ;;  %v4694_v27 = vld [vmem:[#allocation26_spill] sm:$0xff]  ;;  %v4696_v40 = vld [vmem:[#allocation12_spill] sm:$0xff] }
 0x1c5   : > { %2916 = vpow2.f32 %v2563_v17  ;;  %v2565_v34 = vmul.f32 -1.442695, %v4458_v44  ;;  %v1619_v32 = vadd.f32 %v4356_v37, %v1518_v56  ;;  %v1588_v46 = vmul.f32 %v3975_v59, %v1551_v7  ;;  %v1856_v37 = vld [vmem:[#allocation2 + $0x1a2] sm:$0xff] }
 0x1c6   : > { %v2564_v50 = vmul.f32 -1.442695, %v4455_v10  ;;  %v1419_v30 = vadd.f32 %v1387_v18, %v1318_v24  ;;  %v1519_v53 = vadd.f32 %v1487_v36, %v1418_v58  ;;  %v1688_v33 = vmul.f32 %v4008_v63, %v1349_v14 }
 0x1c7   : > { %v1589_v26 = vmul.f32 %v3975_v59, %v1552_v23  ;;  %v1689_v47 = vmul.f32 %v4008_v63, %v1350_v21  ;;  %v1789_v51 = vmul.f32 %v4021_v19, %v1450_v57  ;;  %v1790_v1 = vmul.f32 %v4021_v19, %v1451_v0 }
 0x1c8   : > { %2918 = vpow2.f32 %v2564_v50  ;;  %v1520_v12 = vadd.f32 %v1488_v28, %v1419_v30  ;;  %v1620_v55 = vadd.f32 %v1588_v46, %v1519_v53  ;;  %v1720_v2 = vadd.f32 %v1688_v33, %v1618_v25 }
 0x1c9   : > { %2920 = vpow2.f32 %v2565_v34  ;;  %v1721_v31 = vadd.f32 %v1689_v47, %v1619_v32  ;;  %v1792_v52 = vmul.f32 %v4021_v19, %v1755_v38  ;;  %v1892_v13 = vmul.f32 %v4028_v8, %v1855_v35 }
 0x1ca   : > { %v2907_v22 = vpop.eup %2906  ;;  %v1621_v59 = vadd.f32 %v1589_v26, %v1520_v12  ;;  %v1722_v56 = vadd.f32 %v4692_v5, %v1620_v55  ;;  %v1821_v63 = vadd.f32 %v1789_v51, %v1720_v2  ;;  %v1890_v20 = vmul.f32 %v4028_v8, %v1551_v7 }
 0x1cb   : > { %v2909_v49 = vpop.eup %2908  ;;  %v4477_v4 = vmul.f32 %v2907_v22, %v4693_v3  ;;  %v1891_v41 = vmul.f32 %v4028_v8, %v1552_v23  ;;  %v1822_v42 = vadd.f32 %v1790_v1, %v1721_v31  ;;  %v1893_v19 = vmul.f32 %v4028_v8, %v1856_v37 }
 0x1cc   : > { %v4482_v0 = vmul.f32 %v2909_v49, %v4694_v27  ;;  %v1723_v60 = vadd.f32 %v4695_v15, %v1621_v59  ;;  %v1823_v39 = vadd.f32 %v4696_v40, %v1722_v56  ;;  %v1922_v16 = vadd.f32 %v1890_v20, %v1821_v63 }
 0x1cd   : > { %v2911_v14 = vpop.eup %2910  ;;  %2215 = vst.msk [vmem:[%s3604_s12 + $0xd0] sm:$0xff] %vm351_vm0, %v4477_v4  ;;  %v1923_v21 = vadd.f32 %v1891_v41, %v1822_v42  ;;  %v2240_v38 = vsel %vm351_vm0, %v4428_v9, 0.0  ;;  %v2242_v47 = vsel %vm351_vm0, %v4437_v48, 0.0 }
 0x1ce   : > { %v2913_v57 = vpop.eup %2912  ;;  %2216 = vst.msk [vmem:[%s3604_s12 + $0xd8] sm:$0xff] %vm351_vm0, %v4482_v0  ;;  %v2073_v62 = vadd.f32 1.0, %v2911_v14  ;;  %v1824_v17 = vadd.f32 %v1792_v52, %v1723_v60  ;;  %v1924_v8 = vadd.f32 %v1892_v13, %v1823_v39  ;;  %v4493_v29 = vadd.f32 %v4057_v61, %v1922_v16  ;;  %v4698_v14 = vld [vmem:[#allocation11_spill] sm:$0xff] }
 0x1cf   : > { %v2074_v24 = vadd.f32 1.0, %v2913_v57  ;;  %v4496_v11 = vadd.f32 %v4057_v61, %v1923_v21  ;;  %v4699_v57 = vld [vmem:[#allocation7_spill] sm:$0xff] }
 0x1d0   : > { %2922 = vrcp.f32 %v2073_v62  ;;  %v1925_v25 = vadd.f32 %v1893_v19, %v1824_v17  ;;  %v4499_v28 = vadd.f32 %v4057_v61, %v1924_v8  ;;  %v2576_v7 = vmul.f32 -1.442695, %v4493_v29  ;;  %v2915_v23 = vpop.eup %2914 }
 0x1d1   : > { %2924 = vrcp.f32 %v2074_v24  ;;  %v2577_v18 = vmul.f32 -1.442695, %v4496_v11  ;;  %v2075_v36 = vadd.f32 1.0, %v2915_v23  ;;  %v2258_v62 = vsel %vm351_vm0, %v4699_v57, 0.0 }
 0x1d2   : > { %v2917_v58 = vpop.eup %2916  ;;  %v4504_v50 = vadd.f32 %v4057_v61, %v1925_v25  ;;  %2926 = vpow2.f32 %v2576_v7  ;;  %v2578_v34 = vmul.f32 -1.442695, %v4499_v28  ;;  %v4697_v61 = vld [vmem:[#allocation8_spill] sm:$0xff]  ;;  %v4700_v25 = vld [vmem:[#allocation9_spill] sm:$0xff] }
 0x1d3   : > { %v2076_v32 = vadd.f32 1.0, %v2917_v58  ;;  %2928 = vpow2.f32 %v2577_v18  ;;  %v2241_v26 = vadd.f32 %v2240_v38, %v4697_v61  ;;  %v2260_v7 = vsel %vm351_vm0, %v4700_v25, 0.0 }
 0x1d4   : > { %2930 = vrcp.f32 %v2075_v36  ;;  %v2579_v33 = vmul.f32 -1.442695, %v4504_v50  ;;  %v4701_v36 = vld [vmem:[#allocation10_spill] sm:$0xff] }
 0x1d5   : > { %v2919_v30 = vpop.eup %2918  ;;  %2932 = vrcp.f32 %v2076_v32  ;;  %v2243_v12 = vadd.f32 %v2242_v47, %v2241_v26  ;;  %v4704_v47 = vld [vmem:[#allocation5_spill] sm:$0xff] }
 0x1d6   : > { %v2921_v53 = vpop.eup %2920  ;;  %v2077_v46 = vadd.f32 1.0, %v2919_v30  ;;  %2934 = vpow2.f32 %v2578_v34  ;;  %v2262_v34 = vsel %vm351_vm0, %v4701_v36, 0.0 }
 0x1d7   : > { %v2078_v35 = vadd.f32 1.0, %v2921_v53  ;;  %v4702_v53 = vld [vmem:[#allocation16_spill] sm:$0xff] }
 0x1d8   : > { %2936 = vrcp.f32 %v2077_v46  ;;  %v2264_v46 = vsel %vm351_vm0, %v4702_v53, 0.0 }
 0x1d9   : > { %2938 = vrcp.f32 %v2078_v35  ;;  %v4703_v35 = vld [vmem:[#allocation17_spill] sm:$0xff] }
 0x1da   : > { %2940 = vpow2.f32 %v2579_v33 }
 0x1dd   : > { %v2923_v51 = vpop.eup %2922 }
 0x1de   : > { %v2925_v55 = vpop.eup %2924  ;;  %v2169_v2 = vmul.f32 %v2923_v51, %v4412_v43  ;;  %v2268_v51 = vsel %vm351_vm0, %v4704_v47, 0.0 }
 0x1df   : > { %v2927_v37 = vpop.eup %2926  ;;  %v2170_v1 = vmul.f32 %v2925_v55, %v4417_v54  ;;  %v4705_v55 = vld [vmem:[#allocation23_spill] sm:$0xff] }
 0x1e0   : > { %v2929_v9 = vpop.eup %2928  ;;  %2201 = vst.msk [vmem:[%s3604_s12 + $0x60] sm:$0xff] %vm351_vm0, %v2169_v2  ;;  %v2244_v31 = vsel %vm351_vm0, %v2169_v2, 0.0  ;;  %v2089_v52 = vadd.f32 1.0, %v2927_v37  ;;  %v2270_v2 = vsel %vm351_vm0, %v4705_v55, 0.0  ;;  %v2272_v37 = vsel %vm351_vm0, %v4477_v4, 0.0 }
 0x1e1   : > { %v2931_v13 = vpop.eup %2930  ;;  %2202 = vst.msk [vmem:[%s3604_s12 + $0x68] sm:$0xff] %vm351_vm0, %v2170_v1  ;;  %v2245_v22 = vadd.f32 %v2244_v31, %v2243_v12  ;;  %v2090_v48 = vadd.f32 1.0, %v2929_v9  ;;  %v2246_v43 = vsel %vm351_vm0, %v2170_v1, 0.0  ;;  %v2274_v9 = vsel %vm351_vm0, %v4482_v0, 0.0 }
 0x1e2   : > { %v2933_v59 = vpop.eup %2932  ;;  %v2171_v5 = vmul.f32 %v2931_v13, %v4431_v45  ;;  %2942 = vrcp.f32 %v2089_v52 }
 0x1e3   : > { %v2935_v54 = vpop.eup %2934  ;;  %v2172_v56 = vmul.f32 %v2933_v59, %v4434_v6  ;;  %v2247_v63 = vadd.f32 %v2246_v43, %v2245_v22  ;;  %2944 = vrcp.f32 %v2090_v48 }
 0x1e4   : > { %2203 = vst.msk [vmem:[%s3604_s12 + $0x70] sm:$0xff] %vm351_vm0, %v2171_v5  ;;  %v2248_v49 = vsel %vm351_vm0, %v2171_v5, 0.0  ;;  %v2091_v3 = vadd.f32 1.0, %v2935_v54 }
 0x1e5   : > { %v2937_v20 = vpop.eup %2936  ;;  %2204 = vst.msk [vmem:[%s3604_s12 + $0x78] sm:$0xff] %vm351_vm0, %v2172_v56  ;;  %v2249_v45 = vadd.f32 %v2248_v49, %v2247_v63  ;;  %v2250_v6 = vsel %vm351_vm0, %v2172_v56, 0.0 }
 0x1e6   : > { %v2939_v41 = vpop.eup %2938  ;;  %v2173_v42 = vmul.f32 %v2937_v20, %v4455_v10  ;;  %2946 = vrcp.f32 %v2091_v3 }
 0x1e7   : > { %v2941_v19 = vpop.eup %2940  ;;  %v2174_v27 = vmul.f32 %v2939_v41, %v4458_v44  ;;  %v2251_v15 = vadd.f32 %v2250_v6, %v2249_v45  ;;  %v2256_v44 = vsel %vm351_vm0, %v4698_v14, 0.0 }
 0x1e8   : > { %2205 = vst.msk [vmem:[%s3604_s12 + $0x80] sm:$0xff] %vm351_vm0, %v2173_v42  ;;  %v2252_v60 = vsel %vm351_vm0, %v2173_v42, 0.0  ;;  %v2092_v40 = vadd.f32 1.0, %v2941_v19 }
 0x1e9   : > { %2206 = vst.msk [vmem:[%s3604_s12 + $0x88] sm:$0xff] %vm351_vm0, %v2174_v27  ;;  %v2253_v39 = vadd.f32 %v2252_v60, %v2251_v15  ;;  %v2254_v10 = vsel %vm351_vm0, %v2174_v27, 0.0 }
 0x1ea   : > { %2948 = vrcp.f32 %v2092_v40 }
 0x1eb   : > { %v2255_v16 = vadd.f32 %v2254_v10, %v2253_v39 }
 0x1ed   : > { %v2257_v21 = vadd.f32 %v2256_v44, %v2255_v16 }
 0x1ef   : > { %v2943_v17 = vpop.eup %2942  ;;  %v2259_v8 = vadd.f32 %v2258_v62, %v2257_v21 }
 0x1f0   : > { %v2945_v24 = vpop.eup %2944  ;;  %v2185_v23 = vmul.f32 %v2943_v17, %v4493_v29 }
 0x1f1   : > { %v2186_v18 = vmul.f32 %v2945_v24, %v4496_v11  ;;  %v2261_v58 = vadd.f32 %v2260_v7, %v2259_v8  ;;  %v2266_v11 = vsel %vm351_vm0, %v4703_v35, 0.0 }
 0x1f2   : > { %2217 = vst.msk [vmem:[%s3604_s12 + $0xe0] sm:$0xff] %vm351_vm0, %v2185_v23  ;;  %v2276_v31 = vsel %vm351_vm0, %v2185_v23, 0.0 }
 0x1f3   : > { %v2947_v32 = vpop.eup %2946  ;;  %2218 = vst.msk [vmem:[%s3604_s12 + $0xe8] sm:$0xff] %vm351_vm0, %v2186_v18  ;;  %v2263_v30 = vadd.f32 %v2262_v34, %v2261_v58  ;;  %v2278_v13 = vsel %vm351_vm0, %v2186_v18, 0.0 }
 0x1f4   : > { %v2187_v33 = vmul.f32 %v2947_v32, %v4499_v28 }
 0x1f5   : > { %v2265_v38 = vadd.f32 %v2264_v46, %v2263_v30 }
 0x1f6   : > { %2219 = vst.msk [vmem:[%s3604_s12 + $0xf0] sm:$0xff] %vm351_vm0, %v2187_v33  ;;  %v2280_v48 = vsel %vm351_vm0, %v2187_v33, 0.0 }
 0x1f7   : > { %v2949_v29 = vpop.eup %2948  ;;  %v2267_v26 = vadd.f32 %v2266_v11, %v2265_v38 }
 0x1f8   : > { %v2188_v61 = vmul.f32 %v2949_v29, %v4504_v50 }
 0x1f9   : > { %v2269_v12 = vadd.f32 %v2268_v51, %v2267_v26 }
 0x1fa   : > { %2220 = vst.msk [vmem:[%s3604_s12 + $0xf8] sm:$0xff] %vm351_vm0, %v2188_v61  ;;  %v2282_v5 = vsel %vm351_vm0, %v2188_v61, 0.0 }
 0x1fb   : > { %v2271_v28 = vadd.f32 %v2270_v2, %v2269_v12 }
 0x1fd   : > { %v2273_v1 = vadd.f32 %v2272_v37, %v2271_v28 }
 0x1ff   : > { %v2275_v50 = vadd.f32 %v2274_v9, %v2273_v1 }
 0x201   : > { %v2277_v52 = vadd.f32 %v2276_v31, %v2275_v50 }
 0x203   : > { %v2279_v22 = vadd.f32 %v2278_v13, %v2277_v52 }
 0x205   : > { %v2281_v59 = vadd.f32 %v2280_v48, %v2279_v22 }
 0x207   : > { %v2283_v43 = vadd.f32 %v2282_v5, %v2281_v59 }
 0x209   : > { %v2284_v54 = vrot.slane %v2283_v43, 4 }
 0x20b   : > { %v2285_v4 = vadd.f32 %v2284_v54, %v2283_v43 }
 0x20d   : > { %v2286_v56 = vrot.slane %v2285_v4, 2 }
 0x20f   : > { %v2287_v63 = vadd.f32 %v2286_v56, %v2285_v4 }
 0x211   : > { %v2288_v20 = vrot.slane %v2287_v63, 1 }
 0x213   : > { %v2289_v0 = vadd.f32 %v2288_v20, %v2287_v63 }
 0x215   : > { %v2291_v49 = vmul.f32 0.00390625, %v2289_v0 }
 0x217   : > { %2292 = vst.msk [vmem:[%s350_s16] sm:$0x1] %vm360_vm1, %v2291_v49 }
 0x218 PF: > { %s17_s23 = sadd.s32 1, %s2995_s23   ;;  %s4706_s21 = smov %s2991_s22 }
 0x219   : > { %p14_p5 = scmp.ge.s32.totalorder %s17_s23, 4   ;;  %s4707_s22 = smov %s4709_s24 }
 0x21b   :  { %16 = sbr.rel (!%p14_p5) target bundleno = 2 (0x2), region = 97 }

</bundles_post_ra>
